<compile_context>
chip_gen: v5e
topology: v5e:2x2
jax: 0.10.0
libtpu: 0.0.40
codegen_flags: <defaults>
</compile_context>

<pallas_src>
import jax
import jax.numpy as jnp
from jax import lax
from jax.experimental import pallas as pl
from jax.experimental.pallas import tpu as pltpu

D_MODEL = 32
N_HEADS = 4
HEAD_DIM = D_MODEL // N_HEADS
D_FF = 64
VOCAB = 64
UNIQUE_ANNOTATORS = 4
ANNOTATION_VOCAB = 16
ANNOTATION_VOCAB_PAD = 128          # lane-dense padded projection width (unmasked vst)
NEG_INF = -1e9


# ---------------- in-kernel helpers (pure value functions) ----------------

def _rms(x, w_row):
    """T5 LayerNorm (RMSNorm, eps=1e-6, no mean subtraction). x: (M, D) f32, w_row: (1, D)."""
    var = jnp.mean(x * x, axis=-1, keepdims=True)
    return x * lax.rsqrt(var + 1e-6) * w_row


def _split_heads(x):
    """(M, D) bf16 -> (H, M, Dh) via lane slices stacked along a new leading dim.

    Leading-dim concat lowers trivially in Mosaic; avoids a minor-dim reshape/transpose.
    """
    return jnp.concatenate(
        [x[:, h * HEAD_DIM:(h + 1) * HEAD_DIM][None] for h in range(N_HEADS)], axis=0)


def _mha(q_in, kv_in, wq, wk, wv, wo_heads, bias):
    """T5-style (unscaled) multi-head attention, heads batched into single einsums.

    q_in: (Mq, D) bf16 (pre-normed), kv_in: (Mk, D) bf16, wq/wk/wv: (D, D) bf16,
    wo_heads: (H, Dh, D) bf16 (output projection pre-split per head),
    bias: (Mq, Mk) f32 additive mask (0 = attend, -1e9 = masked). Returns (Mq, D) f32.
    """
    q = jnp.dot(q_in, wq, preferred_element_type=jnp.float32).astype(jnp.bfloat16)
    k = jnp.dot(kv_in, wk, preferred_element_type=jnp.float32).astype(jnp.bfloat16)
    v = jnp.dot(kv_in, wv, preferred_element_type=jnp.float32).astype(jnp.bfloat16)
    qh, kh, vh = _split_heads(q), _split_heads(k), _split_heads(v)          # (H, M, Dh)

    # scores = q_h @ k_h^T  (no 1/sqrt(head_dim) scaling in T5), all heads in one einsum.
    s = jnp.einsum('hqd,hkd->hqk', qh, kh, preferred_element_type=jnp.float32)
    s = s + bias[None, :, :]                                                # f32 mask add
    m = jnp.max(s, axis=-1, keepdims=True)
    p = jnp.exp(s - m)
    p = p * pl.reciprocal(jnp.sum(p, axis=-1, keepdims=True), approx=True)

    o = jnp.einsum('hqk,hkd->hqd', p.astype(jnp.bfloat16), vh,
                   preferred_element_type=jnp.float32)                      # (H, Mq, Dh)
    # concat_h(o_h) @ Wo  ==  sum_h o_h @ Wo[h*Dh:(h+1)*Dh, :]  (Wo pre-split host-side).
    out = jnp.einsum('hqd,hde->hqe', o.astype(jnp.bfloat16), wo_heads,
                     preferred_element_type=jnp.float32)                    # (H, Mq, D)
    return jnp.sum(out, axis=0)                                             # (Mq, D) f32


# ---------------- the single fused kernel (one grid step = one batch group) ----------------

def _fused_forward_kernel(
        x_enc_ref, x_dec_ref, enc_bias_ref, dec_bias_ref, cross_bias_ref,
        ln_ref,
        e_wq_ref, e_wk_ref, e_wv_ref, e_wo_ref, e_wi_ref, e_woff_ref,
        ds_wq_ref, ds_wk_ref, ds_wv_ref, ds_wo_ref,
        dc_wq_ref, dc_wk_ref, dc_wv_ref, dc_wo_ref,
        d_wi_ref, d_woff_ref,
        proj_w_ref, proj_b_ref,
        o_ref):
    ln = ln_ref[...]                      # (8, D) packed RMSNorm weights, f32
    enc_bias = enc_bias_ref[0]            # (Me, Me) block-diagonal encoder key-padding bias
    dec_bias = dec_bias_ref[0]            # (Md, Md) block-diagonal causal + key-padding bias
    cross_bias = cross_bias_ref[0]        # (Md, Me) block-diagonal cross-attention bias

    # TODO(synk): T5 relative position bias omitted (synthetic weights, no bucketed bias table).

    # ----- encoder layer -----
    x = x_enc_ref[...]                                            # (Me, D) f32
    h = _rms(x, ln[0:1]).astype(jnp.bfloat16)
    x = x + _mha(h, h, e_wq_ref[...], e_wk_ref[...], e_wv_ref[...], e_wo_ref[...], enc_bias)
    h = _rms(x, ln[1:2]).astype(jnp.bfloat16)
    ff = jnp.dot(
        jnp.maximum(jnp.dot(h, e_wi_ref[...], preferred_element_type=jnp.float32),
                    0.0).astype(jnp.bfloat16),
        e_woff_ref[...], preferred_element_type=jnp.float32)
    x = x + ff
    enc_out = _rms(x, ln[2:3])                                    # final encoder hidden, f32
    enc_out_b = enc_out.astype(jnp.bfloat16)

    # ----- decoder layer -----
    y = x_dec_ref[...]                                            # (Md, D) f32
    h = _rms(y, ln[3:4]).astype(jnp.bfloat16)
    y = y + _mha(h, h, ds_wq_ref[...], ds_wk_ref[...], ds_wv_ref[...], ds_wo_ref[...],
                 dec_bias)
    h = _rms(y, ln[4:5]).astype(jnp.bfloat16)
    y = y + _mha(h, enc_out_b, dc_wq_ref[...], dc_wk_ref[...], dc_wv_ref[...],
                 dc_wo_ref[...], cross_bias)
    h = _rms(y, ln[5:6]).astype(jnp.bfloat16)
    ff = jnp.dot(
        jnp.maximum(jnp.dot(h, d_wi_ref[...], preferred_element_type=jnp.float32),
                    0.0).astype(jnp.bfloat16),
        d_woff_ref[...], preferred_element_type=jnp.float32)
    y = y + ff
    y = _rms(y, ln[6:7])                                          # last_hidden_state, f32

    # ----- projection head: Linear(d_model -> annotation_vocab), padded to 128 lanes -----
    o_ref[...] = (jnp.dot(y.astype(jnp.bfloat16), proj_w_ref[...],
                          preferred_element_type=jnp.float32) + proj_b_ref[...])


# ---------------- wrapper ----------------

def forward(params, text_tokens, text_mask, annotator_tokens, annotator_mask):
    B, Se = text_tokens.shape
    Sd = annotator_tokens.shape[1]
    D = D_MODEL

    # Few fat grid steps: 2 (one per v7x TensorCore) when the batch splits evenly, else 1.
    nb = 2 if (B % 2 == 0 and B >= 2) else 1
    bt = B // nb
    me, md = bt * Se, bt * Sd

    emb = params["embedding"]
    # Embedding lookup stays one tiny XLA gather; batch*seq is flattened host-side so every
    # in-kernel matmul sees M = bt*S rows (fills MXU rows / 8-sublane vregs).
    x_enc = emb[text_tokens].reshape(B * Se, D)
    x_dec = emb[annotator_tokens].reshape(B * Sd, D)

    # Mask inversion exactly as in the PyTorch module: attention_mask = ~mask (1 = attend).
    enc_att = jnp.logical_not(text_mask).astype(jnp.float32)           # (B, Se)
    dec_att = jnp.logical_not(annotator_mask).astype(jnp.float32)      # (B, Sd)
    causal = jnp.tril(jnp.ones((Sd, Sd), jnp.float32))

    # Hoisted, block-diagonal additive biases (built once per call, outside the kernel).
    enc_attend = jnp.broadcast_to(enc_att[:, None, :], (B, Se, Se))
    dec_attend = causal[None, :, :] * dec_att[:, None, :]
    cross_attend = jnp.broadcast_to(enc_att[:, None, :], (B, Sd, Se))

    def block_diag_bias(attend):
        _, sq, sk = attend.shape
        eye = jnp.eye(bt, dtype=jnp.float32)
        grouped = attend.reshape(nb, bt, sq, sk)
        blk = jnp.einsum('ij,gjqk->giqjk', eye, grouped).reshape(nb, bt * sq, bt * sk)
        return (1.0 - blk) * NEG_INF

    enc_bias = block_diag_bias(enc_attend)        # (nb, me, me)
    dec_bias = block_diag_bias(dec_attend)        # (nb, md, md)
    cross_bias = block_diag_bias(cross_attend)    # (nb, md, me)

    def act(rows):
        return pl.BlockSpec((rows, D), lambda g: (g, 0))

    def bias_spec(sq, sk):
        return pl.BlockSpec((1, sq, sk), lambda g: (g, 0, 0))

    def w_spec(shape):
        # Full-array weight block with a constant index -> VMEM-resident across grid steps.
        nd = len(shape)
        return pl.BlockSpec(shape, lambda g, _nd=nd: (0,) * _nd)

    weights = [
        params["ln"],
        params["e_wq"], params["e_wk"], params["e_wv"], params["e_wo_heads"],
        params["e_wi"], params["e_wo_ff"],
        params["d_self_wq"], params["d_self_wk"], params["d_self_wv"],
        params["d_self_wo_heads"],
        params["d_cross_wq"], params["d_cross_wk"], params["d_cross_wv"],
        params["d_cross_wo_heads"],
        params["d_wi"], params["d_wo_ff"],
        params["proj_w_pad"], params["proj_b_pad"],
    ]

    in_specs = ([act(me), act(md), bias_spec(me, me), bias_spec(md, md), bias_spec(md, me)]
                + [w_spec(w.shape) for w in weights])

    logits_pad = pl.pallas_call(
        _fused_forward_kernel,
        grid=(nb,),
        in_specs=in_specs,
        out_specs=pl.BlockSpec((md, ANNOTATION_VOCAB_PAD), lambda g: (g, 0)),
        out_shape=jax.ShapeDtypeStruct((B * Sd, ANNOTATION_VOCAB_PAD), jnp.float32),
        compiler_params=pltpu.CompilerParams(
            dimension_semantics=("parallel",)),   # 2 fat steps -> both v7x TensorCores busy
    )(x_enc, x_dec, enc_bias, dec_bias, cross_bias, *weights)

    # Drop the lane padding and restore (B, Sd, annotation_vocab_size).
    return logits_pad.reshape(B, Sd, ANNOTATION_VOCAB_PAD)[:, :, :ANNOTATION_VOCAB]


# ---------------- deterministic parameter init (fused / pre-split layouts) ----------------

def init_params(key):
    keys = iter(jax.random.split(key, 32))

    def w(shape, scale=0.02, dtype=jnp.bfloat16):
        return (jax.random.normal(next(keys), shape, jnp.float32) * scale).astype(dtype)

    def wo_heads(scale=0.02):
        # Output projection stored pre-split per head: (H, Dh, D); applied in-kernel as one
        # batched einsum + head-sum (== concat(heads) @ Wo).
        full = jax.random.normal(next(keys), (D_MODEL, D_MODEL), jnp.float32) * scale
        return full.reshape(N_HEADS, HEAD_DIM, D_MODEL).astype(jnp.bfloat16)

    # self.projection = nn.Linear(d_model, annotation_vocab_size, bias=True), zero-padded to
    # 128 output columns so the kernel's stores are lane-dense; wrapper slices back to 16.
    proj_w = jax.random.normal(next(keys), (D_MODEL, ANNOTATION_VOCAB), jnp.float32) * 0.02
    proj_b = jax.random.normal(next(keys), (ANNOTATION_VOCAB,), jnp.float32) * 0.02
    proj_w_pad = jnp.zeros((D_MODEL, ANNOTATION_VOCAB_PAD), jnp.float32)
    proj_w_pad = proj_w_pad.at[:, :ANNOTATION_VOCAB].set(proj_w)
    proj_b_pad = jnp.zeros((1, ANNOTATION_VOCAB_PAD), jnp.float32)
    proj_b_pad = proj_b_pad.at[:, :ANNOTATION_VOCAB].set(proj_b)

    return {
        # resize_token_embeddings(vocab_size + unique_annotators)
        "embedding": w((VOCAB + UNIQUE_ANNOTATORS, D_MODEL), 1.0, jnp.float32),
        # Packed RMSNorm weights: rows = [e_ln1, e_ln2, enc_final, d_ln1(self), d_ln2(cross),
        #                                 d_ln3(ff), dec_final, <pad>]  (T5 LayerNorm init = 1).
        "ln": jnp.ones((8, D_MODEL), jnp.float32),
        # Encoder layer.
        "e_wq": w((D_MODEL, D_MODEL)), "e_wk": w((D_MODEL, D_MODEL)),
        "e_wv": w((D_MODEL, D_MODEL)), "e_wo_heads": wo_heads(),
        "e_wi": w((D_MODEL, D_FF)), "e_wo_ff": w((D_FF, D_MODEL)),
        # Decoder layer: self-attention.
        "d_self_wq": w((D_MODEL, D_MODEL)), "d_self_wk": w((D_MODEL, D_MODEL)),
        "d_self_wv": w((D_MODEL, D_MODEL)), "d_self_wo_heads": wo_heads(),
        # Decoder layer: cross-attention (K/V computed from final encoder hidden states).
        "d_cross_wq": w((D_MODEL, D_MODEL)), "d_cross_wk": w((D_MODEL, D_MODEL)),
        "d_cross_wv": w((D_MODEL, D_MODEL)), "d_cross_wo_heads": wo_heads(),
        # Decoder FFN.
        "d_wi": w((D_MODEL, D_FF)), "d_wo_ff": w((D_FF, D_MODEL)),
        # Projection head (bf16 weight, f32 bias).
        "proj_w_pad": proj_w_pad.astype(jnp.bfloat16),
        "proj_b_pad": proj_b_pad,
    }


if __name__ == "__main__":
    key = jax.random.PRNGKey(0)
    pkey, tkey, akey = jax.random.split(key, 3)
    params = init_params(pkey)

    B, Se, Sd = 8, 8, 8
    text_tokens = jax.random.randint(tkey, (B, Se), 0, VOCAB + UNIQUE_ANNOTATORS,
                                     dtype=jnp.int32)
    annotator_tokens = jax.random.randint(akey, (B, Sd), 0, VOCAB + UNIQUE_ANNOTATORS,
                                          dtype=jnp.int32)
    # True == padding (the module applies ~mask before the transformer).
    text_mask = jnp.zeros((B, Se), dtype=bool).at[:, -2:].set(True)
    annotator_mask = jnp.zeros((B, Sd), dtype=bool).at[:, -1:].set(True)

    logits = jax.jit(forward)(params, text_tokens, text_mask, annotator_tokens, annotator_mask)
    jax.block_until_ready(logits)
    assert logits.shape == (B, Sd, ANNOTATION_VOCAB)
    assert bool(jnp.all(jnp.isfinite(logits)))
    print("KERNEL_OK")
</pallas_src>

<mosaic_0001>
module attributes {stable_mosaic.version = 11 : i64} {
  func.func @_fused_forward_kernel(%arg0: i32, %arg1: memref<32x32xf32, #tpu.memory_space<vmem>>, %arg2: memref<32x32xf32, #tpu.memory_space<vmem>>, %arg3: memref<1x32x32xf32, #tpu.memory_space<vmem>>, %arg4: memref<1x32x32xf32, #tpu.memory_space<vmem>>, %arg5: memref<1x32x32xf32, #tpu.memory_space<vmem>>, %arg6: memref<8x32xf32, #tpu.memory_space<vmem>>, %arg7: memref<32x32xbf16, #tpu.memory_space<vmem>>, %arg8: memref<32x32xbf16, #tpu.memory_space<vmem>>, %arg9: memref<32x32xbf16, #tpu.memory_space<vmem>>, %arg10: memref<4x8x32xbf16, #tpu.memory_space<vmem>>, %arg11: memref<32x64xbf16, #tpu.memory_space<vmem>>, %arg12: memref<64x32xbf16, #tpu.memory_space<vmem>>, %arg13: memref<32x32xbf16, #tpu.memory_space<vmem>>, %arg14: memref<32x32xbf16, #tpu.memory_space<vmem>>, %arg15: memref<32x32xbf16, #tpu.memory_space<vmem>>, %arg16: memref<4x8x32xbf16, #tpu.memory_space<vmem>>, %arg17: memref<32x32xbf16, #tpu.memory_space<vmem>>, %arg18: memref<32x32xbf16, #tpu.memory_space<vmem>>, %arg19: memref<32x32xbf16, #tpu.memory_space<vmem>>, %arg20: memref<4x8x32xbf16, #tpu.memory_space<vmem>>, %arg21: memref<32x64xbf16, #tpu.memory_space<vmem>>, %arg22: memref<64x32xbf16, #tpu.memory_space<vmem>>, %arg23: memref<32x128xbf16, #tpu.memory_space<vmem>>, %arg24: memref<1x128xf32, #tpu.memory_space<vmem>>, %arg25: memref<32x128xf32, #tpu.memory_space<vmem>>) attributes {dimension_semantics = [#tpu.dimension_semantics<parallel>], iteration_bounds = array<i64: 2>, scalar_prefetch = 0 : i64, scratch_operands = 0 : i64, tpu.core_type = #tpu.core_type<tc>, window_params = [{transform_indices = @transform_0, window_bounds = array<i64: 32, 32>}, {transform_indices = @transform_1, window_bounds = array<i64: 32, 32>}, {transform_indices = @transform_2, window_bounds = array<i64: 1, 32, 32>}, {transform_indices = @transform_3, window_bounds = array<i64: 1, 32, 32>}, {transform_indices = @transform_4, window_bounds = array<i64: 1, 32, 32>}, {pipeline_mode = #tpu.pipeline_mode<synchronous>, transform_indices = @transform_5, window_bounds = array<i64: 8, 32>}, {pipeline_mode = #tpu.pipeline_mode<synchronous>, transform_indices = @transform_6, window_bounds = array<i64: 32, 32>}, {pipeline_mode = #tpu.pipeline_mode<synchronous>, transform_indices = @transform_7, window_bounds = array<i64: 32, 32>}, {pipeline_mode = #tpu.pipeline_mode<synchronous>, transform_indices = @transform_8, window_bounds = array<i64: 32, 32>}, {pipeline_mode = #tpu.pipeline_mode<synchronous>, transform_indices = @transform_9, window_bounds = array<i64: 4, 8, 32>}, {pipeline_mode = #tpu.pipeline_mode<synchronous>, transform_indices = @transform_10, window_bounds = array<i64: 32, 64>}, {pipeline_mode = #tpu.pipeline_mode<synchronous>, transform_indices = @transform_11, window_bounds = array<i64: 64, 32>}, {pipeline_mode = #tpu.pipeline_mode<synchronous>, transform_indices = @transform_12, window_bounds = array<i64: 32, 32>}, {pipeline_mode = #tpu.pipeline_mode<synchronous>, transform_indices = @transform_13, window_bounds = array<i64: 32, 32>}, {pipeline_mode = #tpu.pipeline_mode<synchronous>, transform_indices = @transform_14, window_bounds = array<i64: 32, 32>}, {pipeline_mode = #tpu.pipeline_mode<synchronous>, transform_indices = @transform_15, window_bounds = array<i64: 4, 8, 32>}, {pipeline_mode = #tpu.pipeline_mode<synchronous>, transform_indices = @transform_16, window_bounds = array<i64: 32, 32>}, {pipeline_mode = #tpu.pipeline_mode<synchronous>, transform_indices = @transform_17, window_bounds = array<i64: 32, 32>}, {pipeline_mode = #tpu.pipeline_mode<synchronous>, transform_indices = @transform_18, window_bounds = array<i64: 32, 32>}, {pipeline_mode = #tpu.pipeline_mode<synchronous>, transform_indices = @transform_19, window_bounds = array<i64: 4, 8, 32>}, {pipeline_mode = #tpu.pipeline_mode<synchronous>, transform_indices = @transform_20, window_bounds = array<i64: 32, 64>}, {pipeline_mode = #tpu.pipeline_mode<synchronous>, transform_indices = @transform_21, window_bounds = array<i64: 64, 32>}, {pipeline_mode = #tpu.pipeline_mode<synchronous>, transform_indices = @transform_22, window_bounds = array<i64: 32, 128>}, {pipeline_mode = #tpu.pipeline_mode<synchronous>, transform_indices = @transform_23, window_bounds = array<i64: 1, 128>}, {transform_indices = @transform_24, window_bounds = array<i64: 32, 128>}]} {
    %c0 = arith.constant 0 : index
    %c0_0 = arith.constant 0 : index
    %0 = vector.load %arg6[%c0, %c0_0] : memref<8x32xf32, #tpu.memory_space<vmem>>, vector<8x32xf32>
    %c0_1 = arith.constant 0 : index
    %c0_2 = arith.constant 0 : index
    %c0_3 = arith.constant 0 : index
    %1 = vector.load %arg3[%c0_1, %c0_2, %c0_3] : memref<1x32x32xf32, #tpu.memory_space<vmem>>, vector<1x32x32xf32>
    %2 = vector.shape_cast %1 : vector<1x32x32xf32> to vector<32x32xf32>
    %c0_4 = arith.constant 0 : index
    %c0_5 = arith.constant 0 : index
    %c0_6 = arith.constant 0 : index
    %3 = vector.load %arg4[%c0_4, %c0_5, %c0_6] : memref<1x32x32xf32, #tpu.memory_space<vmem>>, vector<1x32x32xf32>
    %4 = vector.shape_cast %3 : vector<1x32x32xf32> to vector<32x32xf32>
    %c0_7 = arith.constant 0 : index
    %c0_8 = arith.constant 0 : index
    %c0_9 = arith.constant 0 : index
    %5 = vector.load %arg5[%c0_7, %c0_8, %c0_9] : memref<1x32x32xf32, #tpu.memory_space<vmem>>, vector<1x32x32xf32>
    %6 = vector.shape_cast %5 : vector<1x32x32xf32> to vector<32x32xf32>
    %c0_10 = arith.constant 0 : index
    %c0_11 = arith.constant 0 : index
    %7 = vector.load %arg1[%c0_10, %c0_11] : memref<32x32xf32, #tpu.memory_space<vmem>>, vector<32x32xf32>
    %8 = vector.extract_strided_slice %0 {offsets = [0, 0], sizes = [1, 32], strides = [1, 1]} : vector<8x32xf32> to vector<1x32xf32>
    %9 = arith.mulf %7, %7 : vector<32x32xf32>
    %cst = arith.constant dense<0.000000e+00> : vector<32xf32>
    %10 = vector.multi_reduction <add>, %9, %cst [1] : vector<32x32xf32> to vector<32xf32>
    %11 = vector.shape_cast %10 : vector<32xf32> to vector<32x1xf32>
    %cst_12 = arith.constant 3.200000e+01 : f32
    %12 = vector.broadcast %cst_12 : f32 to vector<32x1xf32>
    %13 = arith.divf %11, %12 : vector<32x1xf32>
    %cst_13 = arith.constant 9.99999997E-7 : f32
    %14 = vector.broadcast %cst_13 : f32 to vector<32x1xf32>
    %15 = arith.addf %13, %14 : vector<32x1xf32>
    %16 = math.rsqrt %15 : vector<32x1xf32>
    %17 = vector.broadcast %16 : vector<32x1xf32> to vector<32x32xf32>
    %18 = arith.mulf %7, %17 : vector<32x32xf32>
    %19 = vector.broadcast %8 : vector<1x32xf32> to vector<32x32xf32>
    %20 = arith.mulf %18, %19 : vector<32x32xf32>
    %21 = arith.truncf %20 : vector<32x32xf32> to vector<32x32xbf16>
    %c0_14 = arith.constant 0 : index
    %c0_15 = arith.constant 0 : index
    %22 = vector.load %arg7[%c0_14, %c0_15] : memref<32x32xbf16, #tpu.memory_space<vmem>>, vector<32x32xbf16>
    %c0_16 = arith.constant 0 : index
    %c0_17 = arith.constant 0 : index
    %23 = vector.load %arg8[%c0_16, %c0_17] : memref<32x32xbf16, #tpu.memory_space<vmem>>, vector<32x32xbf16>
    %c0_18 = arith.constant 0 : index
    %c0_19 = arith.constant 0 : index
    %24 = vector.load %arg9[%c0_18, %c0_19] : memref<32x32xbf16, #tpu.memory_space<vmem>>, vector<32x32xbf16>
    %c0_20 = arith.constant 0 : index
    %c0_21 = arith.constant 0 : index
    %c0_22 = arith.constant 0 : index
    %25 = vector.load %arg10[%c0_20, %c0_21, %c0_22] : memref<4x8x32xbf16, #tpu.memory_space<vmem>>, vector<4x8x32xbf16>
    %cst_23 = arith.constant dense<0.000000e+00> : vector<32x32xf32>
    %26 = tpu.matmul %21, %22, %cst_23 {dimension_numbers = #tpu.dot_dimension_numbers<[1], [0], [0], [1], [0, 0, 1, 1], [], []>} : vector<32x32xbf16>, vector<32x32xbf16>, vector<32x32xf32> -> vector<32x32xf32>
    %27 = arith.truncf %26 : vector<32x32xf32> to vector<32x32xbf16>
    %cst_24 = arith.constant dense<0.000000e+00> : vector<32x32xf32>
    %28 = tpu.matmul %21, %23, %cst_24 {dimension_numbers = #tpu.dot_dimension_numbers<[1], [0], [0], [1], [0, 0, 1, 1], [], []>} : vector<32x32xbf16>, vector<32x32xbf16>, vector<32x32xf32> -> vector<32x32xf32>
    %29 = arith.truncf %28 : vector<32x32xf32> to vector<32x32xbf16>
    %cst_25 = arith.constant dense<0.000000e+00> : vector<32x32xf32>
    %30 = tpu.matmul %21, %24, %cst_25 {dimension_numbers = #tpu.dot_dimension_numbers<[1], [0], [0], [1], [0, 0, 1, 1], [], []>} : vector<32x32xbf16>, vector<32x32xbf16>, vector<32x32xf32> -> vector<32x32xf32>
    %31 = arith.truncf %30 : vector<32x32xf32> to vector<32x32xbf16>
    %32 = vector.extract_strided_slice %27 {offsets = [0, 0], sizes = [32, 8], strides = [1, 1]} : vector<32x32xbf16> to vector<32x8xbf16>
    %33 = vector.shape_cast %32 : vector<32x8xbf16> to vector<1x32x8xbf16>
    %34 = vector.extract_strided_slice %27 {offsets = [0, 8], sizes = [32, 8], strides = [1, 1]} : vector<32x32xbf16> to vector<32x8xbf16>
    %35 = vector.shape_cast %34 : vector<32x8xbf16> to vector<1x32x8xbf16>
    %36 = vector.extract_strided_slice %27 {offsets = [0, 16], sizes = [32, 8], strides = [1, 1]} : vector<32x32xbf16> to vector<32x8xbf16>
    %37 = vector.shape_cast %36 : vector<32x8xbf16> to vector<1x32x8xbf16>
    %38 = vector.extract_strided_slice %27 {offsets = [0, 24], sizes = [32, 8], strides = [1, 1]} : vector<32x32xbf16> to vector<32x8xbf16>
    %39 = vector.shape_cast %38 : vector<32x8xbf16> to vector<1x32x8xbf16>
    %40 = tpu.concatenate %33, %35, %37, %39 in 0 : vector<1x32x8xbf16>, vector<1x32x8xbf16>, vector<1x32x8xbf16>, vector<1x32x8xbf16> -> vector<4x32x8xbf16>
    %41 = vector.extract_strided_slice %29 {offsets = [0, 0], sizes = [32, 8], strides = [1, 1]} : vector<32x32xbf16> to vector<32x8xbf16>
    %42 = vector.shape_cast %41 : vector<32x8xbf16> to vector<1x32x8xbf16>
    %43 = vector.extract_strided_slice %29 {offsets = [0, 8], sizes = [32, 8], strides = [1, 1]} : vector<32x32xbf16> to vector<32x8xbf16>
    %44 = vector.shape_cast %43 : vector<32x8xbf16> to vector<1x32x8xbf16>
    %45 = vector.extract_strided_slice %29 {offsets = [0, 16], sizes = [32, 8], strides = [1, 1]} : vector<32x32xbf16> to vector<32x8xbf16>
    %46 = vector.shape_cast %45 : vector<32x8xbf16> to vector<1x32x8xbf16>
    %47 = vector.extract_strided_slice %29 {offsets = [0, 24], sizes = [32, 8], strides = [1, 1]} : vector<32x32xbf16> to vector<32x8xbf16>
    %48 = vector.shape_cast %47 : vector<32x8xbf16> to vector<1x32x8xbf16>
    %49 = tpu.concatenate %42, %44, %46, %48 in 0 : vector<1x32x8xbf16>, vector<1x32x8xbf16>, vector<1x32x8xbf16>, vector<1x32x8xbf16> -> vector<4x32x8xbf16>
    %50 = vector.extract_strided_slice %31 {offsets = [0, 0], sizes = [32, 8], strides = [1, 1]} : vector<32x32xbf16> to vector<32x8xbf16>
    %51 = vector.shape_cast %50 : vector<32x8xbf16> to vector<1x32x8xbf16>
    %52 = vector.extract_strided_slice %31 {offsets = [0, 8], sizes = [32, 8], strides = [1, 1]} : vector<32x32xbf16> to vector<32x8xbf16>
    %53 = vector.shape_cast %52 : vector<32x8xbf16> to vector<1x32x8xbf16>
    %54 = vector.extract_strided_slice %31 {offsets = [0, 16], sizes = [32, 8], strides = [1, 1]} : vector<32x32xbf16> to vector<32x8xbf16>
    %55 = vector.shape_cast %54 : vector<32x8xbf16> to vector<1x32x8xbf16>
    %56 = vector.extract_strided_slice %31 {offsets = [0, 24], sizes = [32, 8], strides = [1, 1]} : vector<32x32xbf16> to vector<32x8xbf16>
    %57 = vector.shape_cast %56 : vector<32x8xbf16> to vector<1x32x8xbf16>
    %58 = tpu.concatenate %51, %53, %55, %57 in 0 : vector<1x32x8xbf16>, vector<1x32x8xbf16>, vector<1x32x8xbf16>, vector<1x32x8xbf16> -> vector<4x32x8xbf16>
    "tpu.trace_start"() <{level = 10 : i32, message = "hqd,hkd->hqk"}> : () -> ()
    %cst_26 = arith.constant dense<0.000000e+00> : vector<4x32x32xf32>
    %59 = tpu.matmul %40, %49, %cst_26 {dimension_numbers = #tpu.dot_dimension_numbers<[2], [2], [1], [1], [0, 0, 0, 1, 1, 1], [0], [0]>} : vector<4x32x8xbf16>, vector<4x32x8xbf16>, vector<4x32x32xf32> -> vector<4x32x32xf32>
    "tpu.trace_stop"() : () -> ()
    %60 = vector.shape_cast %2 : vector<32x32xf32> to vector<1x32x32xf32>
    %61 = vector.broadcast %60 : vector<1x32x32xf32> to vector<4x32x32xf32>
    %62 = arith.addf %59, %61 : vector<4x32x32xf32>
    %cst_27 = arith.constant dense<0xFF800000> : vector<4x32xf32>
    %63 = vector.multi_reduction <maximumf>, %62, %cst_27 [2] : vector<4x32x32xf32> to vector<4x32xf32>
    %64 = vector.shape_cast %63 : vector<4x32xf32> to vector<4x32x1xf32>
    %65 = vector.broadcast %64 : vector<4x32x1xf32> to vector<4x32x32xf32>
    %66 = arith.subf %62, %65 : vector<4x32x32xf32>
    %67 = math.exp %66 : vector<4x32x32xf32>
    %cst_28 = arith.constant dense<0.000000e+00> : vector<4x32xf32>
    %68 = vector.multi_reduction <add>, %67, %cst_28 [2] : vector<4x32x32xf32> to vector<4x32xf32>
    %69 = vector.shape_cast %68 : vector<4x32xf32> to vector<4x32x1xf32>
    %70 = tpu.reciprocal %69 {approx = true} : vector<4x32x1xf32> -> vector<4x32x1xf32>
    %71 = vector.broadcast %70 : vector<4x32x1xf32> to vector<4x32x32xf32>
    %72 = arith.mulf %67, %71 : vector<4x32x32xf32>
    %73 = arith.truncf %72 : vector<4x32x32xf32> to vector<4x32x32xbf16>
    "tpu.trace_start"() <{level = 10 : i32, message = "hqk,hkd->hqd"}> : () -> ()
    %cst_29 = arith.constant dense<0.000000e+00> : vector<4x32x8xf32>
    %74 = tpu.matmul %73, %58, %cst_29 {dimension_numbers = #tpu.dot_dimension_numbers<[2], [1], [1], [2], [0, 0, 0, 1, 1, 2], [0], [0]>} : vector<4x32x32xbf16>, vector<4x32x8xbf16>, vector<4x32x8xf32> -> vector<4x32x8xf32>
    "tpu.trace_stop"() : () -> ()
    %75 = arith.truncf %74 : vector<4x32x8xf32> to vector<4x32x8xbf16>
    "tpu.trace_start"() <{level = 10 : i32, message = "hqd,hde->hqe"}> : () -> ()
    %cst_30 = arith.constant dense<0.000000e+00> : vector<4x32x32xf32>
    %76 = tpu.matmul %75, %25, %cst_30 {dimension_numbers = #tpu.dot_dimension_numbers<[2], [1], [1], [2], [0, 0, 0, 1, 1, 2], [0], [0]>} : vector<4x32x8xbf16>, vector<4x8x32xbf16>, vector<4x32x32xf32> -> vector<4x32x32xf32>
    "tpu.trace_stop"() : () -> ()
    %cst_31 = arith.constant dense<0.000000e+00> : vector<32x32xf32>
    %77 = vector.multi_reduction <add>, %76, %cst_31 [0] : vector<4x32x32xf32> to vector<32x32xf32>
    %78 = arith.addf %7, %77 : vector<32x32xf32>
    %79 = vector.extract_strided_slice %0 {offsets = [1, 0], sizes = [1, 32], strides = [1, 1]} : vector<8x32xf32> to vector<1x32xf32>
    %80 = arith.mulf %78, %78 : vector<32x32xf32>
    %cst_32 = arith.constant dense<0.000000e+00> : vector<32xf32>
    %81 = vector.multi_reduction <add>, %80, %cst_32 [1] : vector<32x32xf32> to vector<32xf32>
    %82 = vector.shape_cast %81 : vector<32xf32> to vector<32x1xf32>
    %cst_33 = arith.constant 3.200000e+01 : f32
    %83 = vector.broadcast %cst_33 : f32 to vector<32x1xf32>
    %84 = arith.divf %82, %83 : vector<32x1xf32>
    %cst_34 = arith.constant 9.99999997E-7 : f32
    %85 = vector.broadcast %cst_34 : f32 to vector<32x1xf32>
    %86 = arith.addf %84, %85 : vector<32x1xf32>
    %87 = math.rsqrt %86 : vector<32x1xf32>
    %88 = vector.broadcast %87 : vector<32x1xf32> to vector<32x32xf32>
    %89 = arith.mulf %78, %88 : vector<32x32xf32>
    %90 = vector.broadcast %79 : vector<1x32xf32> to vector<32x32xf32>
    %91 = arith.mulf %89, %90 : vector<32x32xf32>
    %92 = arith.truncf %91 : vector<32x32xf32> to vector<32x32xbf16>
    %c0_35 = arith.constant 0 : index
    %c0_36 = arith.constant 0 : index
    %93 = vector.load %arg11[%c0_35, %c0_36] : memref<32x64xbf16, #tpu.memory_space<vmem>>, vector<32x64xbf16>
    %cst_37 = arith.constant dense<0.000000e+00> : vector<32x64xf32>
    %94 = tpu.matmul %92, %93, %cst_37 {dimension_numbers = #tpu.dot_dimension_numbers<[1], [0], [0], [1], [0, 0, 1, 1], [], []>} : vector<32x32xbf16>, vector<32x64xbf16>, vector<32x64xf32> -> vector<32x64xf32>
    %cst_38 = arith.constant 0.000000e+00 : f32
    %95 = vector.broadcast %cst_38 : f32 to vector<32x64xf32>
    %96 = arith.maximumf %94, %95 : vector<32x64xf32>
    %97 = arith.truncf %96 : vector<32x64xf32> to vector<32x64xbf16>
    %c0_39 = arith.constant 0 : index
    %c0_40 = arith.constant 0 : index
    %98 = vector.load %arg12[%c0_39, %c0_40] : memref<64x32xbf16, #tpu.memory_space<vmem>>, vector<64x32xbf16>
    %cst_41 = arith.constant dense<0.000000e+00> : vector<32x32xf32>
    %99 = tpu.matmul %97, %98, %cst_41 {dimension_numbers = #tpu.dot_dimension_numbers<[1], [0], [0], [1], [0, 0, 1, 1], [], []>} : vector<32x64xbf16>, vector<64x32xbf16>, vector<32x32xf32> -> vector<32x32xf32>
    %100 = arith.addf %78, %99 : vector<32x32xf32>
    %101 = vector.extract_strided_slice %0 {offsets = [2, 0], sizes = [1, 32], strides = [1, 1]} : vector<8x32xf32> to vector<1x32xf32>
    %102 = arith.mulf %100, %100 : vector<32x32xf32>
    %cst_42 = arith.constant dense<0.000000e+00> : vector<32xf32>
    %103 = vector.multi_reduction <add>, %102, %cst_42 [1] : vector<32x32xf32> to vector<32xf32>
    %104 = vector.shape_cast %103 : vector<32xf32> to vector<32x1xf32>
    %cst_43 = arith.constant 3.200000e+01 : f32
    %105 = vector.broadcast %cst_43 : f32 to vector<32x1xf32>
    %106 = arith.divf %104, %105 : vector<32x1xf32>
    %cst_44 = arith.constant 9.99999997E-7 : f32
    %107 = vector.broadcast %cst_44 : f32 to vector<32x1xf32>
    %108 = arith.addf %106, %107 : vector<32x1xf32>
    %109 = math.rsqrt %108 : vector<32x1xf32>
    %110 = vector.broadcast %109 : vector<32x1xf32> to vector<32x32xf32>
    %111 = arith.mulf %100, %110 : vector<32x32xf32>
    %112 = vector.broadcast %101 : vector<1x32xf32> to vector<32x32xf32>
    %113 = arith.mulf %111, %112 : vector<32x32xf32>
    %114 = arith.truncf %113 : vector<32x32xf32> to vector<32x32xbf16>
    %c0_45 = arith.constant 0 : index
    %c0_46 = arith.constant 0 : index
    %115 = vector.load %arg2[%c0_45, %c0_46] : memref<32x32xf32, #tpu.memory_space<vmem>>, vector<32x32xf32>
    %116 = vector.extract_strided_slice %0 {offsets = [3, 0], sizes = [1, 32], strides = [1, 1]} : vector<8x32xf32> to vector<1x32xf32>
    %117 = arith.mulf %115, %115 : vector<32x32xf32>
    %cst_47 = arith.constant dense<0.000000e+00> : vector<32xf32>
    %118 = vector.multi_reduction <add>, %117, %cst_47 [1] : vector<32x32xf32> to vector<32xf32>
    %119 = vector.shape_cast %118 : vector<32xf32> to vector<32x1xf32>
    %cst_48 = arith.constant 3.200000e+01 : f32
    %120 = vector.broadcast %cst_48 : f32 to vector<32x1xf32>
    %121 = arith.divf %119, %120 : vector<32x1xf32>
    %cst_49 = arith.constant 9.99999997E-7 : f32
    %122 = vector.broadcast %cst_49 : f32 to vector<32x1xf32>
    %123 = arith.addf %121, %122 : vector<32x1xf32>
    %124 = math.rsqrt %123 : vector<32x1xf32>
    %125 = vector.broadcast %124 : vector<32x1xf32> to vector<32x32xf32>
    %126 = arith.mulf %115, %125 : vector<32x32xf32>
    %127 = vector.broadcast %116 : vector<1x32xf32> to vector<32x32xf32>
    %128 = arith.mulf %126, %127 : vector<32x32xf32>
    %129 = arith.truncf %128 : vector<32x32xf32> to vector<32x32xbf16>
    %c0_50 = arith.constant 0 : index
    %c0_51 = arith.constant 0 : index
    %130 = vector.load %arg13[%c0_50, %c0_51] : memref<32x32xbf16, #tpu.memory_space<vmem>>, vector<32x32xbf16>
    %c0_52 = arith.constant 0 : index
    %c0_53 = arith.constant 0 : index
    %131 = vector.load %arg14[%c0_52, %c0_53] : memref<32x32xbf16, #tpu.memory_space<vmem>>, vector<32x32xbf16>
    %c0_54 = arith.constant 0 : index
    %c0_55 = arith.constant 0 : index
    %132 = vector.load %arg15[%c0_54, %c0_55] : memref<32x32xbf16, #tpu.memory_space<vmem>>, vector<32x32xbf16>
    %c0_56 = arith.constant 0 : index
    %c0_57 = arith.constant 0 : index
    %c0_58 = arith.constant 0 : index
    %133 = vector.load %arg16[%c0_56, %c0_57, %c0_58] : memref<4x8x32xbf16, #tpu.memory_space<vmem>>, vector<4x8x32xbf16>
    %cst_59 = arith.constant dense<0.000000e+00> : vector<32x32xf32>
    %134 = tpu.matmul %129, %130, %cst_59 {dimension_numbers = #tpu.dot_dimension_numbers<[1], [0], [0], [1], [0, 0, 1, 1], [], []>} : vector<32x32xbf16>, vector<32x32xbf16>, vector<32x32xf32> -> vector<32x32xf32>
    %135 = arith.truncf %134 : vector<32x32xf32> to vector<32x32xbf16>
    %cst_60 = arith.constant dense<0.000000e+00> : vector<32x32xf32>
    %136 = tpu.matmul %129, %131, %cst_60 {dimension_numbers = #tpu.dot_dimension_numbers<[1], [0], [0], [1], [0, 0, 1, 1], [], []>} : vector<32x32xbf16>, vector<32x32xbf16>, vector<32x32xf32> -> vector<32x32xf32>
    %137 = arith.truncf %136 : vector<32x32xf32> to vector<32x32xbf16>
    %cst_61 = arith.constant dense<0.000000e+00> : vector<32x32xf32>
    %138 = tpu.matmul %129, %132, %cst_61 {dimension_numbers = #tpu.dot_dimension_numbers<[1], [0], [0], [1], [0, 0, 1, 1], [], []>} : vector<32x32xbf16>, vector<32x32xbf16>, vector<32x32xf32> -> vector<32x32xf32>
    %139 = arith.truncf %138 : vector<32x32xf32> to vector<32x32xbf16>
    %140 = vector.extract_strided_slice %135 {offsets = [0, 0], sizes = [32, 8], strides = [1, 1]} : vector<32x32xbf16> to vector<32x8xbf16>
    %141 = vector.shape_cast %140 : vector<32x8xbf16> to vector<1x32x8xbf16>
    %142 = vector.extract_strided_slice %135 {offsets = [0, 8], sizes = [32, 8], strides = [1, 1]} : vector<32x32xbf16> to vector<32x8xbf16>
    %143 = vector.shape_cast %142 : vector<32x8xbf16> to vector<1x32x8xbf16>
    %144 = vector.extract_strided_slice %135 {offsets = [0, 16], sizes = [32, 8], strides = [1, 1]} : vector<32x32xbf16> to vector<32x8xbf16>
    %145 = vector.shape_cast %144 : vector<32x8xbf16> to vector<1x32x8xbf16>
    %146 = vector.extract_strided_slice %135 {offsets = [0, 24], sizes = [32, 8], strides = [1, 1]} : vector<32x32xbf16> to vector<32x8xbf16>
    %147 = vector.shape_cast %146 : vector<32x8xbf16> to vector<1x32x8xbf16>
    %148 = tpu.concatenate %141, %143, %145, %147 in 0 : vector<1x32x8xbf16>, vector<1x32x8xbf16>, vector<1x32x8xbf16>, vector<1x32x8xbf16> -> vector<4x32x8xbf16>
    %149 = vector.extract_strided_slice %137 {offsets = [0, 0], sizes = [32, 8], strides = [1, 1]} : vector<32x32xbf16> to vector<32x8xbf16>
    %150 = vector.shape_cast %149 : vector<32x8xbf16> to vector<1x32x8xbf16>
    %151 = vector.extract_strided_slice %137 {offsets = [0, 8], sizes = [32, 8], strides = [1, 1]} : vector<32x32xbf16> to vector<32x8xbf16>
    %152 = vector.shape_cast %151 : vector<32x8xbf16> to vector<1x32x8xbf16>
    %153 = vector.extract_strided_slice %137 {offsets = [0, 16], sizes = [32, 8], strides = [1, 1]} : vector<32x32xbf16> to vector<32x8xbf16>
    %154 = vector.shape_cast %153 : vector<32x8xbf16> to vector<1x32x8xbf16>
    %155 = vector.extract_strided_slice %137 {offsets = [0, 24], sizes = [32, 8], strides = [1, 1]} : vector<32x32xbf16> to vector<32x8xbf16>
    %156 = vector.shape_cast %155 : vector<32x8xbf16> to vector<1x32x8xbf16>
    %157 = tpu.concatenate %150, %152, %154, %156 in 0 : vector<1x32x8xbf16>, vector<1x32x8xbf16>, vector<1x32x8xbf16>, vector<1x32x8xbf16> -> vector<4x32x8xbf16>
    %158 = vector.extract_strided_slice %139 {offsets = [0, 0], sizes = [32, 8], strides = [1, 1]} : vector<32x32xbf16> to vector<32x8xbf16>
    %159 = vector.shape_cast %158 : vector<32x8xbf16> to vector<1x32x8xbf16>
    %160 = vector.extract_strided_slice %139 {offsets = [0, 8], sizes = [32, 8], strides = [1, 1]} : vector<32x32xbf16> to vector<32x8xbf16>
    %161 = vector.shape_cast %160 : vector<32x8xbf16> to vector<1x32x8xbf16>
    %162 = vector.extract_strided_slice %139 {offsets = [0, 16], sizes = [32, 8], strides = [1, 1]} : vector<32x32xbf16> to vector<32x8xbf16>
    %163 = vector.shape_cast %162 : vector<32x8xbf16> to vector<1x32x8xbf16>
    %164 = vector.extract_strided_slice %139 {offsets = [0, 24], sizes = [32, 8], strides = [1, 1]} : vector<32x32xbf16> to vector<32x8xbf16>
    %165 = vector.shape_cast %164 : vector<32x8xbf16> to vector<1x32x8xbf16>
    %166 = tpu.concatenate %159, %161, %163, %165 in 0 : vector<1x32x8xbf16>, vector<1x32x8xbf16>, vector<1x32x8xbf16>, vector<1x32x8xbf16> -> vector<4x32x8xbf16>
    "tpu.trace_start"() <{level = 10 : i32, message = "hqd,hkd->hqk"}> : () -> ()
    %cst_62 = arith.constant dense<0.000000e+00> : vector<4x32x32xf32>
    %167 = tpu.matmul %148, %157, %cst_62 {dimension_numbers = #tpu.dot_dimension_numbers<[2], [2], [1], [1], [0, 0, 0, 1, 1, 1], [0], [0]>} : vector<4x32x8xbf16>, vector<4x32x8xbf16>, vector<4x32x32xf32> -> vector<4x32x32xf32>
    "tpu.trace_stop"() : () -> ()
    %168 = vector.shape_cast %4 : vector<32x32xf32> to vector<1x32x32xf32>
    %169 = vector.broadcast %168 : vector<1x32x32xf32> to vector<4x32x32xf32>
    %170 = arith.addf %167, %169 : vector<4x32x32xf32>
    %cst_63 = arith.constant dense<0xFF800000> : vector<4x32xf32>
    %171 = vector.multi_reduction <maximumf>, %170, %cst_63 [2] : vector<4x32x32xf32> to vector<4x32xf32>
    %172 = vector.shape_cast %171 : vector<4x32xf32> to vector<4x32x1xf32>
    %173 = vector.broadcast %172 : vector<4x32x1xf32> to vector<4x32x32xf32>
    %174 = arith.subf %170, %173 : vector<4x32x32xf32>
    %175 = math.exp %174 : vector<4x32x32xf32>
    %cst_64 = arith.constant dense<0.000000e+00> : vector<4x32xf32>
    %176 = vector.multi_reduction <add>, %175, %cst_64 [2] : vector<4x32x32xf32> to vector<4x32xf32>
    %177 = vector.shape_cast %176 : vector<4x32xf32> to vector<4x32x1xf32>
    %178 = tpu.reciprocal %177 {approx = true} : vector<4x32x1xf32> -> vector<4x32x1xf32>
    %179 = vector.broadcast %178 : vector<4x32x1xf32> to vector<4x32x32xf32>
    %180 = arith.mulf %175, %179 : vector<4x32x32xf32>
    %181 = arith.truncf %180 : vector<4x32x32xf32> to vector<4x32x32xbf16>
    "tpu.trace_start"() <{level = 10 : i32, message = "hqk,hkd->hqd"}> : () -> ()
    %cst_65 = arith.constant dense<0.000000e+00> : vector<4x32x8xf32>
    %182 = tpu.matmul %181, %166, %cst_65 {dimension_numbers = #tpu.dot_dimension_numbers<[2], [1], [1], [2], [0, 0, 0, 1, 1, 2], [0], [0]>} : vector<4x32x32xbf16>, vector<4x32x8xbf16>, vector<4x32x8xf32> -> vector<4x32x8xf32>
    "tpu.trace_stop"() : () -> ()
    %183 = arith.truncf %182 : vector<4x32x8xf32> to vector<4x32x8xbf16>
    "tpu.trace_start"() <{level = 10 : i32, message = "hqd,hde->hqe"}> : () -> ()
    %cst_66 = arith.constant dense<0.000000e+00> : vector<4x32x32xf32>
    %184 = tpu.matmul %183, %133, %cst_66 {dimension_numbers = #tpu.dot_dimension_numbers<[2], [1], [1], [2], [0, 0, 0, 1, 1, 2], [0], [0]>} : vector<4x32x8xbf16>, vector<4x8x32xbf16>, vector<4x32x32xf32> -> vector<4x32x32xf32>
    "tpu.trace_stop"() : () -> ()
    %cst_67 = arith.constant dense<0.000000e+00> : vector<32x32xf32>
    %185 = vector.multi_reduction <add>, %184, %cst_67 [0] : vector<4x32x32xf32> to vector<32x32xf32>
    %186 = arith.addf %115, %185 : vector<32x32xf32>
    %187 = vector.extract_strided_slice %0 {offsets = [4, 0], sizes = [1, 32], strides = [1, 1]} : vector<8x32xf32> to vector<1x32xf32>
    %188 = arith.mulf %186, %186 : vector<32x32xf32>
    %cst_68 = arith.constant dense<0.000000e+00> : vector<32xf32>
    %189 = vector.multi_reduction <add>, %188, %cst_68 [1] : vector<32x32xf32> to vector<32xf32>
    %190 = vector.shape_cast %189 : vector<32xf32> to vector<32x1xf32>
    %cst_69 = arith.constant 3.200000e+01 : f32
    %191 = vector.broadcast %cst_69 : f32 to vector<32x1xf32>
    %192 = arith.divf %190, %191 : vector<32x1xf32>
    %cst_70 = arith.constant 9.99999997E-7 : f32
    %193 = vector.broadcast %cst_70 : f32 to vector<32x1xf32>
    %194 = arith.addf %192, %193 : vector<32x1xf32>
    %195 = math.rsqrt %194 : vector<32x1xf32>
    %196 = vector.broadcast %195 : vector<32x1xf32> to vector<32x32xf32>
    %197 = arith.mulf %186, %196 : vector<32x32xf32>
    %198 = vector.broadcast %187 : vector<1x32xf32> to vector<32x32xf32>
    %199 = arith.mulf %197, %198 : vector<32x32xf32>
    %200 = arith.truncf %199 : vector<32x32xf32> to vector<32x32xbf16>
    %c0_71 = arith.constant 0 : index
    %c0_72 = arith.constant 0 : index
    %201 = vector.load %arg17[%c0_71, %c0_72] : memref<32x32xbf16, #tpu.memory_space<vmem>>, vector<32x32xbf16>
    %c0_73 = arith.constant 0 : index
    %c0_74 = arith.constant 0 : index
    %202 = vector.load %arg18[%c0_73, %c0_74] : memref<32x32xbf16, #tpu.memory_space<vmem>>, vector<32x32xbf16>
    %c0_75 = arith.constant 0 : index
    %c0_76 = arith.constant 0 : index
    %203 = vector.load %arg19[%c0_75, %c0_76] : memref<32x32xbf16, #tpu.memory_space<vmem>>, vector<32x32xbf16>
    %c0_77 = arith.constant 0 : index
    %c0_78 = arith.constant 0 : index
    %c0_79 = arith.constant 0 : index
    %204 = vector.load %arg20[%c0_77, %c0_78, %c0_79] : memref<4x8x32xbf16, #tpu.memory_space<vmem>>, vector<4x8x32xbf16>
    %cst_80 = arith.constant dense<0.000000e+00> : vector<32x32xf32>
    %205 = tpu.matmul %200, %201, %cst_80 {dimension_numbers = #tpu.dot_dimension_numbers<[1], [0], [0], [1], [0, 0, 1, 1], [], []>} : vector<32x32xbf16>, vector<32x32xbf16>, vector<32x32xf32> -> vector<32x32xf32>
    %206 = arith.truncf %205 : vector<32x32xf32> to vector<32x32xbf16>
    %cst_81 = arith.constant dense<0.000000e+00> : vector<32x32xf32>
    %207 = tpu.matmul %114, %202, %cst_81 {dimension_numbers = #tpu.dot_dimension_numbers<[1], [0], [0], [1], [0, 0, 1, 1], [], []>} : vector<32x32xbf16>, vector<32x32xbf16>, vector<32x32xf32> -> vector<32x32xf32>
    %208 = arith.truncf %207 : vector<32x32xf32> to vector<32x32xbf16>
    %cst_82 = arith.constant dense<0.000000e+00> : vector<32x32xf32>
    %209 = tpu.matmul %114, %203, %cst_82 {dimension_numbers = #tpu.dot_dimension_numbers<[1], [0], [0], [1], [0, 0, 1, 1], [], []>} : vector<32x32xbf16>, vector<32x32xbf16>, vector<32x32xf32> -> vector<32x32xf32>
    %210 = arith.truncf %209 : vector<32x32xf32> to vector<32x32xbf16>
    %211 = vector.extract_strided_slice %206 {offsets = [0, 0], sizes = [32, 8], strides = [1, 1]} : vector<32x32xbf16> to vector<32x8xbf16>
    %212 = vector.shape_cast %211 : vector<32x8xbf16> to vector<1x32x8xbf16>
    %213 = vector.extract_strided_slice %206 {offsets = [0, 8], sizes = [32, 8], strides = [1, 1]} : vector<32x32xbf16> to vector<32x8xbf16>
    %214 = vector.shape_cast %213 : vector<32x8xbf16> to vector<1x32x8xbf16>
    %215 = vector.extract_strided_slice %206 {offsets = [0, 16], sizes = [32, 8], strides = [1, 1]} : vector<32x32xbf16> to vector<32x8xbf16>
    %216 = vector.shape_cast %215 : vector<32x8xbf16> to vector<1x32x8xbf16>
    %217 = vector.extract_strided_slice %206 {offsets = [0, 24], sizes = [32, 8], strides = [1, 1]} : vector<32x32xbf16> to vector<32x8xbf16>
    %218 = vector.shape_cast %217 : vector<32x8xbf16> to vector<1x32x8xbf16>
    %219 = tpu.concatenate %212, %214, %216, %218 in 0 : vector<1x32x8xbf16>, vector<1x32x8xbf16>, vector<1x32x8xbf16>, vector<1x32x8xbf16> -> vector<4x32x8xbf16>
    %220 = vector.extract_strided_slice %208 {offsets = [0, 0], sizes = [32, 8], strides = [1, 1]} : vector<32x32xbf16> to vector<32x8xbf16>
    %221 = vector.shape_cast %220 : vector<32x8xbf16> to vector<1x32x8xbf16>
    %222 = vector.extract_strided_slice %208 {offsets = [0, 8], sizes = [32, 8], strides = [1, 1]} : vector<32x32xbf16> to vector<32x8xbf16>
    %223 = vector.shape_cast %222 : vector<32x8xbf16> to vector<1x32x8xbf16>
    %224 = vector.extract_strided_slice %208 {offsets = [0, 16], sizes = [32, 8], strides = [1, 1]} : vector<32x32xbf16> to vector<32x8xbf16>
    %225 = vector.shape_cast %224 : vector<32x8xbf16> to vector<1x32x8xbf16>
    %226 = vector.extract_strided_slice %208 {offsets = [0, 24], sizes = [32, 8], strides = [1, 1]} : vector<32x32xbf16> to vector<32x8xbf16>
    %227 = vector.shape_cast %226 : vector<32x8xbf16> to vector<1x32x8xbf16>
    %228 = tpu.concatenate %221, %223, %225, %227 in 0 : vector<1x32x8xbf16>, vector<1x32x8xbf16>, vector<1x32x8xbf16>, vector<1x32x8xbf16> -> vector<4x32x8xbf16>
    %229 = vector.extract_strided_slice %210 {offsets = [0, 0], sizes = [32, 8], strides = [1, 1]} : vector<32x32xbf16> to vector<32x8xbf16>
    %230 = vector.shape_cast %229 : vector<32x8xbf16> to vector<1x32x8xbf16>
    %231 = vector.extract_strided_slice %210 {offsets = [0, 8], sizes = [32, 8], strides = [1, 1]} : vector<32x32xbf16> to vector<32x8xbf16>
    %232 = vector.shape_cast %231 : vector<32x8xbf16> to vector<1x32x8xbf16>
    %233 = vector.extract_strided_slice %210 {offsets = [0, 16], sizes = [32, 8], strides = [1, 1]} : vector<32x32xbf16> to vector<32x8xbf16>
    %234 = vector.shape_cast %233 : vector<32x8xbf16> to vector<1x32x8xbf16>
    %235 = vector.extract_strided_slice %210 {offsets = [0, 24], sizes = [32, 8], strides = [1, 1]} : vector<32x32xbf16> to vector<32x8xbf16>
    %236 = vector.shape_cast %235 : vector<32x8xbf16> to vector<1x32x8xbf16>
    %237 = tpu.concatenate %230, %232, %234, %236 in 0 : vector<1x32x8xbf16>, vector<1x32x8xbf16>, vector<1x32x8xbf16>, vector<1x32x8xbf16> -> vector<4x32x8xbf16>
    "tpu.trace_start"() <{level = 10 : i32, message = "hqd,hkd->hqk"}> : () -> ()
    %cst_83 = arith.constant dense<0.000000e+00> : vector<4x32x32xf32>
    %238 = tpu.matmul %219, %228, %cst_83 {dimension_numbers = #tpu.dot_dimension_numbers<[2], [2], [1], [1], [0, 0, 0, 1, 1, 1], [0], [0]>} : vector<4x32x8xbf16>, vector<4x32x8xbf16>, vector<4x32x32xf32> -> vector<4x32x32xf32>
    "tpu.trace_stop"() : () -> ()
    %239 = vector.shape_cast %6 : vector<32x32xf32> to vector<1x32x32xf32>
    %240 = vector.broadcast %239 : vector<1x32x32xf32> to vector<4x32x32xf32>
    %241 = arith.addf %238, %240 : vector<4x32x32xf32>
    %cst_84 = arith.constant dense<0xFF800000> : vector<4x32xf32>
    %242 = vector.multi_reduction <maximumf>, %241, %cst_84 [2] : vector<4x32x32xf32> to vector<4x32xf32>
    %243 = vector.shape_cast %242 : vector<4x32xf32> to vector<4x32x1xf32>
    %244 = vector.broadcast %243 : vector<4x32x1xf32> to vector<4x32x32xf32>
    %245 = arith.subf %241, %244 : vector<4x32x32xf32>
    %246 = math.exp %245 : vector<4x32x32xf32>
    %cst_85 = arith.constant dense<0.000000e+00> : vector<4x32xf32>
    %247 = vector.multi_reduction <add>, %246, %cst_85 [2] : vector<4x32x32xf32> to vector<4x32xf32>
    %248 = vector.shape_cast %247 : vector<4x32xf32> to vector<4x32x1xf32>
    %249 = tpu.reciprocal %248 {approx = true} : vector<4x32x1xf32> -> vector<4x32x1xf32>
    %250 = vector.broadcast %249 : vector<4x32x1xf32> to vector<4x32x32xf32>
    %251 = arith.mulf %246, %250 : vector<4x32x32xf32>
    %252 = arith.truncf %251 : vector<4x32x32xf32> to vector<4x32x32xbf16>
    "tpu.trace_start"() <{level = 10 : i32, message = "hqk,hkd->hqd"}> : () -> ()
    %cst_86 = arith.constant dense<0.000000e+00> : vector<4x32x8xf32>
    %253 = tpu.matmul %252, %237, %cst_86 {dimension_numbers = #tpu.dot_dimension_numbers<[2], [1], [1], [2], [0, 0, 0, 1, 1, 2], [0], [0]>} : vector<4x32x32xbf16>, vector<4x32x8xbf16>, vector<4x32x8xf32> -> vector<4x32x8xf32>
    "tpu.trace_stop"() : () -> ()
    %254 = arith.truncf %253 : vector<4x32x8xf32> to vector<4x32x8xbf16>
    "tpu.trace_start"() <{level = 10 : i32, message = "hqd,hde->hqe"}> : () -> ()
    %cst_87 = arith.constant dense<0.000000e+00> : vector<4x32x32xf32>
    %255 = tpu.matmul %254, %204, %cst_87 {dimension_numbers = #tpu.dot_dimension_numbers<[2], [1], [1], [2], [0, 0, 0, 1, 1, 2], [0], [0]>} : vector<4x32x8xbf16>, vector<4x8x32xbf16>, vector<4x32x32xf32> -> vector<4x32x32xf32>
    "tpu.trace_stop"() : () -> ()
    %cst_88 = arith.constant dense<0.000000e+00> : vector<32x32xf32>
    %256 = vector.multi_reduction <add>, %255, %cst_88 [0] : vector<4x32x32xf32> to vector<32x32xf32>
    %257 = arith.addf %186, %256 : vector<32x32xf32>
    %258 = vector.extract_strided_slice %0 {offsets = [5, 0], sizes = [1, 32], strides = [1, 1]} : vector<8x32xf32> to vector<1x32xf32>
    %259 = arith.mulf %257, %257 : vector<32x32xf32>
    %cst_89 = arith.constant dense<0.000000e+00> : vector<32xf32>
    %260 = vector.multi_reduction <add>, %259, %cst_89 [1] : vector<32x32xf32> to vector<32xf32>
    %261 = vector.shape_cast %260 : vector<32xf32> to vector<32x1xf32>
    %cst_90 = arith.constant 3.200000e+01 : f32
    %262 = vector.broadcast %cst_90 : f32 to vector<32x1xf32>
    %263 = arith.divf %261, %262 : vector<32x1xf32>
    %cst_91 = arith.constant 9.99999997E-7 : f32
    %264 = vector.broadcast %cst_91 : f32 to vector<32x1xf32>
    %265 = arith.addf %263, %264 : vector<32x1xf32>
    %266 = math.rsqrt %265 : vector<32x1xf32>
    %267 = vector.broadcast %266 : vector<32x1xf32> to vector<32x32xf32>
    %268 = arith.mulf %257, %267 : vector<32x32xf32>
    %269 = vector.broadcast %258 : vector<1x32xf32> to vector<32x32xf32>
    %270 = arith.mulf %268, %269 : vector<32x32xf32>
    %271 = arith.truncf %270 : vector<32x32xf32> to vector<32x32xbf16>
    %c0_92 = arith.constant 0 : index
    %c0_93 = arith.constant 0 : index
    %272 = vector.load %arg21[%c0_92, %c0_93] : memref<32x64xbf16, #tpu.memory_space<vmem>>, vector<32x64xbf16>
    %cst_94 = arith.constant dense<0.000000e+00> : vector<32x64xf32>
    %273 = tpu.matmul %271, %272, %cst_94 {dimension_numbers = #tpu.dot_dimension_numbers<[1], [0], [0], [1], [0, 0, 1, 1], [], []>} : vector<32x32xbf16>, vector<32x64xbf16>, vector<32x64xf32> -> vector<32x64xf32>
    %cst_95 = arith.constant 0.000000e+00 : f32
    %274 = vector.broadcast %cst_95 : f32 to vector<32x64xf32>
    %275 = arith.maximumf %273, %274 : vector<32x64xf32>
    %276 = arith.truncf %275 : vector<32x64xf32> to vector<32x64xbf16>
    %c0_96 = arith.constant 0 : index
    %c0_97 = arith.constant 0 : index
    %277 = vector.load %arg22[%c0_96, %c0_97] : memref<64x32xbf16, #tpu.memory_space<vmem>>, vector<64x32xbf16>
    %cst_98 = arith.constant dense<0.000000e+00> : vector<32x32xf32>
    %278 = tpu.matmul %276, %277, %cst_98 {dimension_numbers = #tpu.dot_dimension_numbers<[1], [0], [0], [1], [0, 0, 1, 1], [], []>} : vector<32x64xbf16>, vector<64x32xbf16>, vector<32x32xf32> -> vector<32x32xf32>
    %279 = arith.addf %257, %278 : vector<32x32xf32>
    %280 = vector.extract_strided_slice %0 {offsets = [6, 0], sizes = [1, 32], strides = [1, 1]} : vector<8x32xf32> to vector<1x32xf32>
    %281 = arith.mulf %279, %279 : vector<32x32xf32>
    %cst_99 = arith.constant dense<0.000000e+00> : vector<32xf32>
    %282 = vector.multi_reduction <add>, %281, %cst_99 [1] : vector<32x32xf32> to vector<32xf32>
    %283 = vector.shape_cast %282 : vector<32xf32> to vector<32x1xf32>
    %cst_100 = arith.constant 3.200000e+01 : f32
    %284 = vector.broadcast %cst_100 : f32 to vector<32x1xf32>
    %285 = arith.divf %283, %284 : vector<32x1xf32>
    %cst_101 = arith.constant 9.99999997E-7 : f32
    %286 = vector.broadcast %cst_101 : f32 to vector<32x1xf32>
    %287 = arith.addf %285, %286 : vector<32x1xf32>
    %288 = math.rsqrt %287 : vector<32x1xf32>
    %289 = vector.broadcast %288 : vector<32x1xf32> to vector<32x32xf32>
    %290 = arith.mulf %279, %289 : vector<32x32xf32>
    %291 = vector.broadcast %280 : vector<1x32xf32> to vector<32x32xf32>
    %292 = arith.mulf %290, %291 : vector<32x32xf32>
    %293 = arith.truncf %292 : vector<32x32xf32> to vector<32x32xbf16>
    %c0_102 = arith.constant 0 : index
    %c0_103 = arith.constant 0 : index
    %294 = vector.load %arg23[%c0_102, %c0_103] : memref<32x128xbf16, #tpu.memory_space<vmem>>, vector<32x128xbf16>
    %cst_104 = arith.constant dense<0.000000e+00> : vector<32x128xf32>
    %295 = tpu.matmul %293, %294, %cst_104 {dimension_numbers = #tpu.dot_dimension_numbers<[1], [0], [0], [1], [0, 0, 1, 1], [], []>} : vector<32x32xbf16>, vector<32x128xbf16>, vector<32x128xf32> -> vector<32x128xf32>
    %c0_105 = arith.constant 0 : index
    %c0_106 = arith.constant 0 : index
    %296 = vector.load %arg24[%c0_105, %c0_106] : memref<1x128xf32, #tpu.memory_space<vmem>>, vector<1x128xf32>
    %297 = vector.broadcast %296 : vector<1x128xf32> to vector<32x128xf32>
    %298 = arith.addf %295, %297 : vector<32x128xf32>
    %c0_107 = arith.constant 0 : index
    %c0_108 = arith.constant 0 : index
    %299 = vector.load %arg25[%c0_107, %c0_108] : memref<32x128xf32, #tpu.memory_space<vmem>>, vector<32x128xf32>
    tpu.vector_store %arg25[%c0_107, %c0_108], %298 {strides = array<i32>} : memref<32x128xf32, #tpu.memory_space<vmem>>, vector<32x128xf32>,
    return
  }
  func.func @transform_0(%arg0: i32) -> (i32, i32) {
    %c0_i32 = arith.constant 0 : i32
    %c0_i32_0 = arith.constant 0 : i32
    return %arg0, %c0_i32 : i32, i32
  }
  func.func @transform_1(%arg0: i32) -> (i32, i32) {
    %c0_i32 = arith.constant 0 : i32
    %c0_i32_0 = arith.constant 0 : i32
    return %arg0, %c0_i32 : i32, i32
  }
  func.func @transform_2(%arg0: i32) -> (i32, i32, i32) {
    %c0_i32 = arith.constant 0 : i32
    %c0_i32_0 = arith.constant 0 : i32
    %c0_i32_1 = arith.constant 0 : i32
    return %arg0, %c0_i32, %c0_i32_0 : i32, i32, i32
  }
  func.func @transform_3(%arg0: i32) -> (i32, i32, i32) {
    %c0_i32 = arith.constant 0 : i32
    %c0_i32_0 = arith.constant 0 : i32
    %c0_i32_1 = arith.constant 0 : i32
    return %arg0, %c0_i32, %c0_i32_0 : i32, i32, i32
  }
  func.func @transform_4(%arg0: i32) -> (i32, i32, i32) {
    %c0_i32 = arith.constant 0 : i32
    %c0_i32_0 = arith.constant 0 : i32
    %c0_i32_1 = arith.constant 0 : i32
    return %arg0, %c0_i32, %c0_i32_0 : i32, i32, i32
  }
  func.func @transform_5(%arg0: i32) -> (i32, i32) {
    %c0_i32 = arith.constant 0 : i32
    %c0_i32_0 = arith.constant 0 : i32
    %c0_i32_1 = arith.constant 0 : i32
    return %c0_i32, %c0_i32_0 : i32, i32
  }
  func.func @transform_6(%arg0: i32) -> (i32, i32) {
    %c0_i32 = arith.constant 0 : i32
    %c0_i32_0 = arith.constant 0 : i32
    %c0_i32_1 = arith.constant 0 : i32
    return %c0_i32, %c0_i32_0 : i32, i32
  }
  func.func @transform_7(%arg0: i32) -> (i32, i32) {
    %c0_i32 = arith.constant 0 : i32
    %c0_i32_0 = arith.constant 0 : i32
    %c0_i32_1 = arith.constant 0 : i32
    return %c0_i32, %c0_i32_0 : i32, i32
  }
  func.func @transform_8(%arg0: i32) -> (i32, i32) {
    %c0_i32 = arith.constant 0 : i32
    %c0_i32_0 = arith.constant 0 : i32
    %c0_i32_1 = arith.constant 0 : i32
    return %c0_i32, %c0_i32_0 : i32, i32
  }
  func.func @transform_9(%arg0: i32) -> (i32, i32, i32) {
    %c0_i32 = arith.constant 0 : i32
    %c0_i32_0 = arith.constant 0 : i32
    %c0_i32_1 = arith.constant 0 : i32
    %c0_i32_2 = arith.constant 0 : i32
    return %c0_i32, %c0_i32_0, %c0_i32_1 : i32, i32, i32
  }
  func.func @transform_10(%arg0: i32) -> (i32, i32) {
    %c0_i32 = arith.constant 0 : i32
    %c0_i32_0 = arith.constant 0 : i32
    %c0_i32_1 = arith.constant 0 : i32
    return %c0_i32, %c0_i32_0 : i32, i32
  }
  func.func @transform_11(%arg0: i32) -> (i32, i32) {
    %c0_i32 = arith.constant 0 : i32
    %c0_i32_0 = arith.constant 0 : i32
    %c0_i32_1 = arith.constant 0 : i32
    return %c0_i32, %c0_i32_0 : i32, i32
  }
  func.func @transform_12(%arg0: i32) -> (i32, i32) {
    %c0_i32 = arith.constant 0 : i32
    %c0_i32_0 = arith.constant 0 : i32
    %c0_i32_1 = arith.constant 0 : i32
    return %c0_i32, %c0_i32_0 : i32, i32
  }
  func.func @transform_13(%arg0: i32) -> (i32, i32) {
    %c0_i32 = arith.constant 0 : i32
    %c0_i32_0 = arith.constant 0 : i32
    %c0_i32_1 = arith.constant 0 : i32
    return %c0_i32, %c0_i32_0 : i32, i32
  }
  func.func @transform_14(%arg0: i32) -> (i32, i32) {
    %c0_i32 = arith.constant 0 : i32
    %c0_i32_0 = arith.constant 0 : i32
    %c0_i32_1 = arith.constant 0 : i32
    return %c0_i32, %c0_i32_0 : i32, i32
  }
  func.func @transform_15(%arg0: i32) -> (i32, i32, i32) {
    %c0_i32 = arith.constant 0 : i32
    %c0_i32_0 = arith.constant 0 : i32
    %c0_i32_1 = arith.constant 0 : i32
    %c0_i32_2 = arith.constant 0 : i32
    return %c0_i32, %c0_i32_0, %c0_i32_1 : i32, i32, i32
  }
  func.func @transform_16(%arg0: i32) -> (i32, i32) {
    %c0_i32 = arith.constant 0 : i32
    %c0_i32_0 = arith.constant 0 : i32
    %c0_i32_1 = arith.constant 0 : i32
    return %c0_i32, %c0_i32_0 : i32, i32
  }
  func.func @transform_17(%arg0: i32) -> (i32, i32) {
    %c0_i32 = arith.constant 0 : i32
    %c0_i32_0 = arith.constant 0 : i32
    %c0_i32_1 = arith.constant 0 : i32
    return %c0_i32, %c0_i32_0 : i32, i32
  }
  func.func @transform_18(%arg0: i32) -> (i32, i32) {
    %c0_i32 = arith.constant 0 : i32
    %c0_i32_0 = arith.constant 0 : i32
    %c0_i32_1 = arith.constant 0 : i32
    return %c0_i32, %c0_i32_0 : i32, i32
  }
  func.func @transform_19(%arg0: i32) -> (i32, i32, i32) {
    %c0_i32 = arith.constant 0 : i32
    %c0_i32_0 = arith.constant 0 : i32
    %c0_i32_1 = arith.constant 0 : i32
    %c0_i32_2 = arith.constant 0 : i32
    return %c0_i32, %c0_i32_0, %c0_i32_1 : i32, i32, i32
  }
  func.func @transform_20(%arg0: i32) -> (i32, i32) {
    %c0_i32 = arith.constant 0 : i32
    %c0_i32_0 = arith.constant 0 : i32
    %c0_i32_1 = arith.constant 0 : i32
    return %c0_i32, %c0_i32_0 : i32, i32
  }
  func.func @transform_21(%arg0: i32) -> (i32, i32) {
    %c0_i32 = arith.constant 0 : i32
    %c0_i32_0 = arith.constant 0 : i32
    %c0_i32_1 = arith.constant 0 : i32
    return %c0_i32, %c0_i32_0 : i32, i32
  }
  func.func @transform_22(%arg0: i32) -> (i32, i32) {
    %c0_i32 = arith.constant 0 : i32
    %c0_i32_0 = arith.constant 0 : i32
    %c0_i32_1 = arith.constant 0 : i32
    return %c0_i32, %c0_i32_0 : i32, i32
  }
  func.func @transform_23(%arg0: i32) -> (i32, i32) {
    %c0_i32 = arith.constant 0 : i32
    %c0_i32_0 = arith.constant 0 : i32
    %c0_i32_1 = arith.constant 0 : i32
    return %c0_i32, %c0_i32_0 : i32, i32
  }
  func.func @transform_24(%arg0: i32) -> (i32, i32) {
    %c0_i32 = arith.constant 0 : i32
    %c0_i32_0 = arith.constant 0 : i32
    return %arg0, %c0_i32 : i32, i32
  }
}

</mosaic_0001>

<bundles_post_ra>
// kernel: forward.1
= control target key start
LH: loop header
LB: loop body
LE: loop exit
PB: predicated region body
PF: predicated region fallthrough
CT: control target
= control target key end

     0   :  { %s6911_s0 = inlined_call_operand.vmem [shape: f32[64,32], index: 0, kind: input, shape index: {}]   ;;  %s6912_s1 = inlined_call_operand.vmem [shape: f32[64,32], index: 1, kind: input, shape index: {}]   ;;  %s6913_s2 = inlined_call_operand.vmem [shape: f32[2,32,32], index: 2, kind: input, shape index: {}, may-alias: {2,4}]   ;;  %s6914_s3 = inlined_call_operand.vmem [shape: f32[2,32,32], index: 3, kind: input, shape index: {}]   ;;  %s6915_s4 = inlined_call_operand.vmem [shape: f32[2,32,32], index: 4, kind: input, shape index: {}, may-alias: {2,4}]   ;;  %s6916_s5 = inlined_call_operand.vmem [shape: f32[8,32], index: 5, kind: input, shape index: {}]   ;;  %s6917_s6 = inlined_call_operand.vmem [shape: bf16[32,32], index: 6, kind: input, shape index: {}]   ;;  %s6918_s7 = inlined_call_operand.vmem [shape: bf16[32,32], index: 7, kind: input, shape index: {}]   ;;  %s6919_s8 = inlined_call_operand.vmem [shape: bf16[32,32], index: 8, kind: input, shape index: {}]   ;;  %s6920_s9 = inlined_call_operand.vmem [shape: bf16[4,8,32], index: 9, kind: input, shape index: {}]   ;;  %s6921_s10 = inlined_call_operand.vmem [shape: bf16[32,64], index: 10, kind: input, shape index: {}]   ;;  %s6922_s11 = inlined_call_operand.vmem [shape: bf16[64,32], index: 11, kind: input, shape index: {}]   ;;  %s6923_s12 = inlined_call_operand.vmem [shape: bf16[32,32], index: 12, kind: input, shape index: {}]   ;;  %s6924_s13 = inlined_call_operand.vmem [shape: bf16[32,32], index: 13, kind: input, shape index: {}]   ;;  %s6925_s14 = inlined_call_operand.vmem [shape: bf16[32,32], index: 14, kind: input, shape index: {}]   ;;  %s6926_s15 = inlined_call_operand.vmem [shape: bf16[4,8,32], index: 15, kind: input, shape index: {}]   ;;  %s6927_s16 = inlined_call_operand.vmem [shape: bf16[32,32], index: 16, kind: input, shape index: {}]   ;;  %s6928_s17 = inlined_call_operand.vmem [shape: bf16[32,32], index: 17, kind: input, shape index: {}]   ;;  %s6929_s18 = inlined_call_operand.vmem [shape: bf16[32,32], index: 18, kind: input, shape index: {}]   ;;  %s6930_s19 = inlined_call_operand.vmem [shape: bf16[4,8,32], index: 19, kind: input, shape index: {}]   ;;  %s6931_s20 = inlined_call_operand.vmem [shape: bf16[32,64], index: 20, kind: input, shape index: {}]   ;;  %s6932_s21 = inlined_call_operand.vmem [shape: bf16[64,32], index: 21, kind: input, shape index: {}]   ;;  %s6933_s22 = inlined_call_operand.vmem [shape: bf16[32,128], index: 22, kind: input, shape index: {}]   ;;  %s6934_s23 = inlined_call_operand.vmem [shape: f32[1,128], index: 23, kind: input, shape index: {}]   ;;  %s6935_s24 = inlined_call_operand.hbm [shape: f32[64,128], index: 24, kind: output, shape index: {}]  }
   0x1   :  { %6956 = sst [smem:[#allocation11_spill]] %s6911_s0 }
   0x2   :  { %6957 = sst [smem:[#allocation12_spill]] %s6912_s1 }
   0x3   :  { %6958 = sst [smem:[#allocation13_spill]] %s6913_s2 }
   0x4   :  { %6959 = sst [smem:[#allocation14_spill]] %s6914_s3 }
   0x5   :  { %6960 = sst [smem:[#allocation15_spill]] %s6915_s4 }
   0x6   :  { %6961 = sst [smem:[#allocation16_spill]] %s6916_s5 }
   0x7   :  { %6962 = sst [smem:[#allocation17_spill]] %s6917_s6 }
   0x8   :  { %6963 = sst [smem:[#allocation18_spill]] %s6918_s7 }
   0x9   :  { %6964 = sst [smem:[#allocation19_spill]] %s6919_s8 }
   0xa   :  { %6965 = sst [smem:[#allocation20_spill]] %s6920_s9 }
   0xb   :  { %6966 = sst [smem:[#allocation21_spill]] %s6921_s10 }
   0xc   :  { %6967 = sst [smem:[#allocation22_spill]] %s6922_s11 }
   0xd   :  { %6968 = sst [smem:[#allocation23_spill]] %s6923_s12 }
   0xe   :  { %6969 = sst [smem:[#allocation24_spill]] %s6935_s24 }
   0xf   :  { %29 = vsyncpa [#allocation3], 0 }
  0x10   :  { %31 = vsyncpa [#allocation3 + $0x1], 0  ;;  %s5407_s5 = smov 0   ;;  %s5409_s26 = smov 0  }
  0x11   :  { %s5411_s27 = smov 0   ;;  %s5413_s28 = smov 0  }
  0x12 LB: > { %6970 = sst [smem:[#allocation5_spill]] %s5262_s5  ;;  %s5428_s6 = sadd.s32 4294967295, %s5274_s28   ;;  %s5274_s28 = sphi %s5413_s28, %s7004_s28   ;;  %s5270_s27 = sphi %s5411_s27, %s7009_s27   ;;  %s5266_s26 = sphi %s5409_s26, %s7008_s26   ;;  %s5262_s5 = sphi %s5407_s5, %s7007_s5  }
  0x13   : > { %6971 = sst [smem:[#allocation6_spill]] %s5270_s27  ;;  %s4617_s2 = sadd.s32 4294967294, %s5274_s28  }
  0x14   : > { %6972 = sst [smem:[#allocation7_spill]] %s5274_s28  ;;  %s5432_s29 = sadd.s32 1, %s5274_s28  }
  0x15   : > { %6973 = sst [smem:[#allocation8_spill]] %s5432_s29  ;;  %s573_s0 = sadd.s32 1, %s5270_s27 }
  0x16   : > { %s570_s7 = ssub.s32 %s5274_s28, %s5432_s29  ;;  %p583_p0 = scmp.ne.s32.totalorder %s5270_s27, %s5266_s26 }
  0x17   : > { %p571_p1 = scmp.eq.s32.totalorder %s570_s7, 0  ;;  %p584_p2 = scmp.eq.s32.totalorder %s5428_s6, 1 }
  0x18   : > { %p589_p3 = scmp.ne.s32.totalorder %s5266_s26, %s5262_s5  ;;  %p590_p4 = scmp.eq.s32.totalorder %s4617_s2, 1 }
  0x19   : > { %s5443_s30 = scalar_select %p571_p1, %s5270_s27, %s573_s0  }
  0x1a   : > { %p5445_p5 = por %p584_p2, %p583_p0  ;;  %p5449_p6 = por %p590_p4, %p589_p3 }
  0x1b   : > { %6974 = sst [smem:[#allocation9_spill]] %s5443_s30  ;;  %p4620_p7 = scmp.ge.s32.totalorder %s5274_s28, 1 }
  0x1c   : > { %s6976_s25 = scalar_select %p5449_p6, 1, 0 }
  0x1d   : > { %p707_p8 = scmp.lt.s32.totalorder %s5274_s28, 3 }
  0x1e   : > { %6977 = sst [smem:[#allocation10_spill]] %s6976_s25 }
  0x1f   : > { %p708_p9 = pnand %p4620_p7, %p707_p8 }
  0x20   : > { %s4622_s8 = sshll.u32 (!%p708_p9), %s5428_s6, 2  ;;  %s6978_s0 = sld [smem:[#allocation11_spill]] (!%p708_p9) }
  0x21   : > { %711 = sbr.rel (%p708_p9) target bundleno = 4199 (0x1067), region = 116  ;;  %p794_p10 = scmp.lt.s32.totalorder (!%p708_p9), %s4622_s8, 7 }
  0x22   : > { %s6980_s27 = sld [smem:[#allocation18_spill]] (!%p708_p9)  ;;  %s6948_s2 = smov (!%p708_p9), 104  }
  0x23   : > { %s6982_s30 = sld [smem:[#allocation19_spill]] (!%p708_p9)  ;;  %s6950_s5 = smov (!%p708_p9), 120  }
  0x24   : > { %s6987_s1 = sld [smem:[#allocation16_spill]] (!%p708_p9)  ;;  %p805_p11 = scmp.lt.s32.totalorder (!%p708_p9), %s5428_s6, 1 }
  0x25   : > { %s6990_s9 = sld [smem:[#allocation20_spill]] (!%p708_p9) }
  0x26   : > { %s7011_s8 = smov (!%p794_p10, %s4622_s8), 7  ;;  %vm843_vm0 = vcmask 261120   ;;  %v5276_v12 = vmov 32.0   ;;  %vm1145_vm14 = vcmask 64512   ;;  %vm1702_vm15 = vcmask 1043456   ;;  %s6993_s12 = sld [smem:[#allocation23_spill]] }
  0x27   : > { %s6940_s4 = sshll.u32 %s7011_s8, 3  ;;  %4951 = vrcp.f32 %v5276_v12  ;;  %s6991_s25 = sshll.u32 %s7011_s8, 3 }
  0x28   : > { %s5464_s7 = scalar_lea.vmem %s6978_s0, %s6940_s4  ;;  %s6979_s0 = sld [smem:[#allocation17_spill]]  ;;  %v4871_v19 = vld [vmem:[%s6980_s27 + $0x8] sm:$0xff] }
  0x29   : > { %v5467_v0 = vld [vmem:[%s5464_s7 + $0x10] sm:$0xff]  ;;  %v5470_v1 = vld [vmem:[%s5464_s7] sm:$0xff]  ;;  %v5477_v4 = vld [vmem:[%s5464_s7 + $0x18] sm:$0xff]  ;;  %s6981_s29 = smov %s6980_s27  ;;  %997 = vmatpush.bf16.msra.mxu1 %v4871_v19  ;;  %4903 = vmatpush.bf16.msra.mxu3 %v4871_v19  ;;  %s6952_s27 = smov 112  }
  0x2a   : > { %v841_v2 = vmul.f32 %v5467_v0, %v5467_v0  ;;  %v839_v3 = vmul.f32 %v5470_v1, %v5470_v1  ;;  %v5480_v5 = vld [vmem:[%s5464_s7 + $0x8] sm:$0xff]  ;;  %v842_v8 = vmul.f32 %v5477_v4, %v5477_v4  ;;  %v4870_v24 = vld [vmem:[%s6981_s29] sm:$0xff]  ;;  %s806_s24 = scalar_select %p805_p11, %s5428_s6, 1 }
  0x2b   : > { %v840_v9 = vmul.f32 %v5480_v5, %v5480_v5  ;;  %v4873_v29 = vld [vmem:[%s6982_s30 + $0x8] sm:$0xff]  ;;  %v4872_v32 = vld [vmem:[%s6982_s30] sm:$0xff]  ;;  %s6994_s11 = sld [smem:[#allocation22_spill]] }
  0x2c   : > { %v850_v6 = vsel %vm843_vm0, %v841_v2, 0.0  ;;  %v844_v7 = vsel %vm843_vm0, %v839_v3, 0.0  ;;  %v853_v10 = vsel %vm843_vm0, %v842_v8, 0.0  ;;  %v822_v60 = vld [vmem:[%s6987_s1] sm:$0xff]  ;;  %s5605_s28 = sshll.u32 %s806_s24, 5  ;;  %s6992_s24 = sld [smem:[#allocation12_spill]] }
  0x2d   : > { %851 = vadd.xlane.f32.xlu0 %v850_v6  ;;  %845 = vadd.xlane.f32.xlu1 %v844_v7  ;;  %v847_v11 = vsel %vm843_vm0, %v840_v9, 0.0  ;;  %v4952_v13 = vpop.eup %4951  ;;  %v915_v6 = vperm.slane %v822_v60, 0  ;;  %s6997_s10 = sld [smem:[#allocation21_spill]] }
  0x2e   : > { %v857_v14 = vmul.f32 32.0, %v4952_v13  ;;  %vm861_vm1 = vweird.f32 %v4952_v13  ;;  %v4869_v18 = vld [vmem:[%s6979_s0 + $0x8] sm:$0xff]  ;;  %v4868_v21 = vld [vmem:[%s6979_s0] sm:$0xff]  ;;  %998 = vmatpush.bf16.msra.mxu1 %v4870_v24  ;;  %4904 = vmatpush.bf16.msra.mxu3 %v4870_v24  ;;  %s6998_s0 = sld [smem:[#allocation14_spill]] }
  0x2f   : > { %962 = vmatpush.bf16.msra.mxu0 %v4869_v18  ;;  %4901 = vmatpush.bf16.msra.mxu2 %v4869_v18  ;;  %s6999_s4 = sld [smem:[#allocation15_spill]] }
  0x30   : > { %v858_v15 = vsub.f32 1.0, %v857_v14 }
  0x32   : > { %v859_v16 = vmul.f32 %v4952_v13, %v858_v15 }
  0x33   : > { %963 = vmatpush.bf16.msra.mxu0 %v4868_v21  ;;  %4902 = vmatpush.bf16.msra.mxu2 %v4868_v21 }
  0x34   : > { %v860_v17 = vadd.f32 %v4952_v13, %v859_v16  ;;  %s6080_s8 = scalar_lea.vmem %s6998_s0, %s5605_s28 }
  0x35   : > { %854 = vadd.xlane.f32.xlu0 %v853_v10  ;;  %848 = vadd.xlane.f32.xlu1 %v847_v11 }
  0x36   : > { %v5496_v20 = vsel %vm861_vm1, %v4952_v13, %v860_v17 }
  0x37   : > { %1032 = vmatpush.bf16.msrb.mxu2 %v4873_v29 }
  0x3b   : > { %1033 = vmatpush.bf16.msrb.mxu2 %v4872_v32 }
  0xa0   : > { %v852_v22 = vpop.xlane.xlu0 %851  ;;  %v846_v23 = vpop.xlane.xlu1 %845 }
  0xa1   : > { %v865_v25 = vmul.f32 %v5496_v20, %v852_v22  ;;  %v863_v26 = vmul.f32 %v5496_v20, %v846_v23 }
  0xa3   : > { %v869_v27 = vadd.f32 1e-06, %v865_v25  ;;  %v867_v28 = vadd.f32 1e-06, %v863_v26 }
  0xa5   : > { %4953 = vrsqrt.f32 %v869_v27  ;;  %vm897_vm4 = vweird.f32 %v869_v27  ;;  %vm877_vm6 = vweird.f32 %v867_v28 }
  0xa6   : > { %4955 = vrsqrt.f32 %v867_v28 }
  0xa8   : > { %v855_v30 = vpop.xlane.xlu0 %854  ;;  %v849_v31 = vpop.xlane.xlu1 %848 }
  0xa9   : > { %v866_v33 = vmul.f32 %v5496_v20, %v855_v30  ;;  %v864_v34 = vmul.f32 %v5496_v20, %v849_v31 }
  0xab   : > { %v4954_v35 = vpop.eup %4953  ;;  %v870_v36 = vadd.f32 1e-06, %v866_v33  ;;  %v868_v37 = vadd.f32 1e-06, %v864_v34 }
  0xac   : > { %v4956_v38 = vpop.eup %4955  ;;  %v892_v39 = vmul.f32 %v4954_v35, %v869_v27  ;;  %vm898_vm2 = vweird.f32 %v4954_v35 }
  0xad   : > { %v872_v40 = vmul.f32 %v4956_v38, %v867_v28  ;;  %4957 = vrsqrt.f32 %v870_v36  ;;  %vm878_vm3 = vweird.f32 %v4956_v38  ;;  %vm5514_vm5 = vmor %vm897_vm4, %vm898_vm2  ;;  %vm907_vm10 = vweird.f32 %v870_v36 }
  0xae   : > { %v893_v41 = vmul.f32 %v4954_v35, %v892_v39  ;;  %4959 = vrsqrt.f32 %v868_v37  ;;  %vm5518_vm7 = vmor %vm877_vm6, %vm878_vm3  ;;  %vm887_vm12 = vweird.f32 %v868_v37 }
  0xaf   : > { %v873_v42 = vmul.f32 %v4956_v38, %v872_v40 }
  0xb0   : > { %v894_v43 = vmul.f32 0.5, %v893_v41 }
  0xb1   : > { %v874_v44 = vmul.f32 0.5, %v873_v42 }
  0xb2   : > { %v895_v45 = vsub.f32 1.5, %v894_v43 }
  0xb3   : > { %v4958_v46 = vpop.eup %4957  ;;  %v875_v47 = vsub.f32 1.5, %v874_v44 }
  0xb4   : > { %v4960_v48 = vpop.eup %4959  ;;  %v902_v49 = vmul.f32 %v4958_v46, %v870_v36  ;;  %v896_v51 = vmul.f32 %v4954_v35, %v895_v45  ;;  %vm908_vm8 = vweird.f32 %v4958_v46 }
  0xb5   : > { %v882_v50 = vmul.f32 %v4960_v48, %v868_v37  ;;  %v876_v53 = vmul.f32 %v4956_v38, %v875_v47  ;;  %vm888_vm9 = vweird.f32 %v4960_v48  ;;  %vm909_vm11 = vmor %vm907_vm10, %vm908_vm8 }
  0xb6   : > { %v903_v52 = vmul.f32 %v4958_v46, %v902_v49  ;;  %v900_v61 = vsel %vm5514_vm5, %v4954_v35, %v896_v51  ;;  %vm889_vm13 = vmor %vm887_vm12, %vm888_vm9 }
  0xb7   : > { %v883_v54 = vmul.f32 %v4960_v48, %v882_v50  ;;  %v880_v63 = vsel %vm5518_vm7, %v4956_v38, %v876_v53  ;;  %v913_v7 = vmul.f32 %v900_v61, %v5467_v0 }
  0xb8   : > { %v904_v55 = vmul.f32 0.5, %v903_v52  ;;  %v911_v8 = vmul.f32 %v880_v63, %v5470_v1 }
  0xb9   : > { %v884_v57 = vmul.f32 0.5, %v883_v54  ;;  %v918_v13 = vmul.f32 %v915_v6, %v913_v7 }
  0xba   : > { %v905_v59 = vsub.f32 1.5, %v904_v55  ;;  %v916_v15 = vmul.f32 %v915_v6, %v911_v8 }
  0xbb   : > { %v885_v62 = vsub.f32 1.5, %v884_v57 }
  0xbc   : > { %v906_v2 = vmul.f32 %v4958_v46, %v905_v59 }
  0xbd   : > { %v886_v3 = vmul.f32 %v4960_v48, %v885_v62 }
  0xbe   : > { %v910_v9 = vsel %vm909_vm11, %v4958_v46, %v906_v2 }
  0xbf   : > { %v890_v10 = vsel %vm889_vm13, %v4960_v48, %v886_v3  ;;  %v914_v11 = vmul.f32 %v910_v9, %v5477_v4 }
  0xc0   : > { %v912_v12 = vmul.f32 %v890_v10, %v5480_v5 }
  0xc1   : > { %v919_v14 = vmul.f32 %v915_v6, %v914_v11 }
  0xc2   : > { %v917_v16 = vmul.f32 %v915_v6, %v912_v12 }
  0xc3   : > { %v921_v17 = vpack.c.bf16 %v919_v14, %v918_v13 }
  0xc4   : > { %v920_v18 = vpack.c.bf16 %v917_v16, %v916_v15 }
  0xc5   : > { %4641 = vmatmul.msk.bf16.vlgmr.msra.gmra.mxu2 %vm843_vm0, %v921_v17  ;;  %4651 = vmatmul.msk.bf16.vlgmr.msra.gmra.mxu3 %vm843_vm0, %v921_v17 }
  0xc6   : > { %4640 = vmatmul.msk.bf16.vlgmr.msra.gmra.mxu0 %vm843_vm0, %v920_v18  ;;  %4650 = vmatmul.msk.bf16.vlgmr.msra.gmra.mxu1 %vm843_vm0, %v920_v18 }
  0xd5   : > { %4660 = vmatmul.msk.bf16.vlgmr.msrb.gmra.mxu2 %vm843_vm0, %v920_v18 }
  0xe5   : > { %4661 = vmatmul.msk.bf16.gmra.mxu2 %vm843_vm0, %v921_v17 }
 0x143   : > { %v965_v0 = vpop.f32.mrf.mxu0  ;;  %v1000_v1 = vpop.f32.mrf.mxu1 }
 0x144   : > { %v5539_v4 = vpack.c.bf16 %v965_v0, %v965_v0  ;;  %v1010_v5 = vpack.c.bf16 %v1000_v1, %v1000_v1 }
 0x146   : > { %1097 = vrot.lane.b32.xlu0 %v1010_v5, %s6948_s2  ;;  %1069 = vrot.lane.b32.xlu2 %v5539_v4, %s6948_s2  ;;  %v1139_v36 = vunpack.c.l.b16 %v1010_v5  ;;  %v1133_v41 = vunpack.c.l.b16 %v5539_v4 }
 0x148   : > { %v970_v19 = vpop.f32.mrf.mxu2  ;;  %v1005_v21 = vpop.f32.mrf.mxu3 }
 0x149   : > { %v1012_v24 = vpack.c.bf16 %v1005_v21, %v1005_v21  ;;  %v977_v44 = vpack.c.bf16 %v970_v19, %v970_v19 }
 0x14b   : > { %v1002_v22 = vpop.f32.mrf.mxu1  ;;  %v967_v27 = vpop.f32.mrf.mxu0  ;;  %v1141_v29 = vunpack.c.l.b16 %v1012_v24  ;;  %v1135_v52 = vunpack.c.l.b16 %v977_v44 }
 0x14c   : > { %v1011_v23 = vpack.c.bf16 %v1002_v22, %v1002_v22  ;;  %v976_v31 = vpack.c.bf16 %v967_v27, %v967_v27 }
 0x14e   : > { %1081 = vrot.lane.b32.xlu0 %v1010_v5, %s6950_s5  ;;  %1099 = vrot.lane.b32.xlu1 %v1011_v23, %s6948_s2  ;;  %v1140_v34 = vunpack.c.l.b16 %v1011_v23  ;;  %v1134_v40 = vunpack.c.l.b16 %v976_v31 }
 0x14f   : > { %1101 = vrot.lane.b32.xlu2 %v1012_v24, %s6948_s2 }
 0x150   : > { %v972_v25 = vpop.f32.mrf.mxu2  ;;  %v1007_v26 = vpop.f32.mrf.mxu3  ;;  %v1143_v37 = vpack.c.b16 %v1140_v34, %v1139_v36  ;;  %v1137_v42 = vpack.c.b16 %v1134_v40, %v1133_v41 }
 0x151   : > { %v1013_v28 = vpack.c.bf16 %v1007_v26, %v1007_v26  ;;  %v978_v45 = vpack.c.bf16 %v972_v25, %v972_v25 }
 0x152   : > { %v1153_v38 = vsel %vm1145_vm14, %v1143_v37, 0 }
 0x153   : > { %v1142_v30 = vunpack.c.l.b16 %v1013_v28  ;;  %v1136_v49 = vunpack.c.l.b16 %v978_v45 }
 0x155   : > { %v1144_v32 = vpack.c.b16 %v1142_v30, %v1141_v29  ;;  %v1138_v55 = vpack.c.b16 %v1136_v49, %v1135_v52 }
 0x156   : > { %1089 = vrot.lane.b32.xlu1 %v1010_v5, %s6952_s27  ;;  %1071 = vrot.lane.b32.xlu0 %v976_v31, %s6948_s2 }
 0x157   : > { %1085 = vrot.lane.b32.xlu2 %v1012_v24, %s6950_s5  ;;  %v1156_v33 = vsel %vm1145_vm14, %v1144_v32, 0 }
 0x158   : > { %v1035_v35 = vpop.f32.mrf.mxu2  ;;  %1164 = vmatpush.bf16.xpose.msrb.mxu3 %v1156_v33 }
 0x159   : > { %v5572_v54 = vpack.c.bf16 %v1035_v35, %v1035_v35 }
 0x15b   : > { %v1508_v58 = vunpack.c.l.b16 %v5572_v54 }
 0x15e   : > { %1095 = vrot.lane.b32.xlu1 %v1013_v28, %s6952_s27  ;;  %1091 = vrot.lane.b32.xlu0 %v1011_v23, %s6952_s27 }
 0x15f   : > { %1093 = vrot.lane.b32.xlu2 %v1012_v24, %s6952_s27 }
 0x160   : > { %v1037_v39 = vpop.f32.mrf.mxu2  ;;  %1165 = vmatpush.bf16.xpose.msrb.mxu3 %v1153_v38 }
 0x161   : > { %v5568_v50 = vpack.c.bf16 %v1037_v39, %v1037_v39 }
 0x163   : > { %v1509_v57 = vunpack.c.l.b16 %v5568_v50 }
 0x165   : > { %v1512_v59 = vpack.c.b16 %v1509_v57, %v1508_v58 }
 0x166   : > { %1055 = vrot.lane.b32.xlu1 %v976_v31, %s6950_s5  ;;  %1061 = vrot.lane.b32.xlu0 %v5539_v4, %s6952_s27 }
 0x167   : > { %1103 = vrot.lane.b32.xlu2 %v1013_v28, %s6948_s2  ;;  %4662 = vmatmul.msk.bf16.vlgmr.msrb.gmra.mxu3 %vm1145_vm14, %v1137_v42 }
 0x168   : > { %v1040_v43 = vpop.f32.mrf.mxu2 }
 0x169   : > { %v5563_v46 = vpack.c.bf16 %v1040_v43, %v1040_v43 }
 0x16b   : > { %v1510_v51 = vunpack.c.l.b16 %v5563_v46 }
 0x16e   : > { %1073 = vrot.lane.b32.xlu1 %v977_v44, %s6948_s2  ;;  %1075 = vrot.lane.b32.xlu0 %v978_v45, %s6948_s2 }
 0x16f   : > { %1087 = vrot.lane.b32.xlu2 %v1013_v28, %s6950_s5 }
 0x170   : > { %v1042_v47 = vpop.f32.mrf.mxu2 }
 0x171   : > { %v5566_v48 = vpack.c.bf16 %v1042_v47, %v1042_v47 }
 0x173   : > { %v1511_v53 = vunpack.c.l.b16 %v5566_v48 }
 0x175   : > { %v1513_v56 = vpack.c.b16 %v1511_v53, %v1510_v51 }
 0x176   : > { %1059 = vrot.lane.b32.xlu1 %v978_v45, %s6950_s5  ;;  %1065 = vrot.lane.b32.xlu0 %v977_v44, %s6952_s27 }
 0x177   : > { %1083 = vrot.lane.b32.xlu2 %v1011_v23, %s6950_s5  ;;  %4663 = vmatmul.msk.bf16.gmra.mxu3 %vm1145_vm14, %v1138_v55 }
 0x178   : > { %1528 = vmatpush.bf16.msra.mxu3 %v1513_v56 }
 0x17c   : > { %1529 = vmatpush.bf16.msra.mxu3 %v1512_v59 }
 0x17e   : > { %1131 = vrot.lane.b32.xlu1 %v5566_v48, %s6948_s2  ;;  %1125 = vrot.lane.b32.xlu0 %v5572_v54, %s6948_s2 }
 0x17f   : > { %1053 = vrot.lane.b32.xlu2 %v5539_v4, %s6950_s5 }
 0x187   : > { %1063 = vrot.lane.b32.xlu2 %v976_v31, %s6952_s27 }
 0x18f   : > { %1057 = vrot.lane.b32.xlu2 %v977_v44, %s6950_s5 }
 0x197   : > { %1067 = vrot.lane.b32.xlu2 %v978_v45, %s6952_s27 }
 0x19f   : > { %1127 = vrot.lane.b32.xlu2 %v5568_v50, %s6948_s2 }
 0x1a0   : > { %v1070_v60 = vpop.permute.xlu2 %1069 }
 0x1a1   : > { %v1263_v26 = vunpack.c.l.b16 %v1070_v60 }
 0x1a7   : > { %1129 = vrot.lane.b32.xlu2 %v5563_v46, %s6948_s2  ;;  %s6988_s2 = sld [smem:[#allocation13_spill]] }
 0x1a9   : > { %v1102_v61 = vpop.permute.xlu2 %1101 }
 0x1aa   : > { %v1271_v8 = vunpack.c.l.b16 %v1102_v61 }
 0x1af   : > { %1113 = vrot.lane.b32.xlu2 %v5563_v46, %s6950_s5  ;;  %s5611_s5 = scalar_lea.vmem %s6988_s2, %s5605_s28  ;;  %s6989_s2 = smov 120  }
 0x1b0   : > { %v823_v58 = vld [vmem:[%s5611_s5] sm:$0xff] }
 0x1b1   : > { %v1086_v62 = vpop.permute.xlu2 %1085 }
 0x1b2   : > { %v1185_v17 = vunpack.c.l.b16 %v1086_v62 }
 0x1b8   : > { %v1098_v63 = vpop.permute.xlu0 %1097 }
 0x1b9   : > { %v1094_v2 = vpop.permute.xlu2 %1093  ;;  %v1269_v13 = vunpack.c.l.b16 %v1098_v63 }
 0x1ba   : > { %v1228_v23 = vunpack.c.l.b16 %v1094_v2 }
 0x1c0   : > { %v1082_v3 = vpop.permute.xlu0 %1081  ;;  %v1100_v6 = vpop.permute.xlu1 %1099 }
 0x1c1   : > { %v1104_v7 = vpop.permute.xlu2 %1103  ;;  %v1270_v11 = vunpack.c.l.b16 %v1100_v6  ;;  %v1183_v27 = vunpack.c.l.b16 %v1082_v3 }
 0x1c2   : > { %v1272_v9 = vunpack.c.l.b16 %v1104_v7  ;;  %v824_v7 = vld [vmem:[%s5611_s5 + $0x8] sm:$0xff] }
 0x1c3   : > { %v1273_v0 = vpack.c.b16 %v1270_v11, %v1269_v13 }
 0x1c4   : > { %v1274_v10 = vpack.c.b16 %v1272_v9, %v1271_v8 }
 0x1c5   : > { %v1282_v5 = vsel %vm1145_vm14, %v1273_v0, 0 }
 0x1c6   : > { %v1285_v12 = vsel %vm1145_vm14, %v1274_v10, 0 }
 0x1c7   : > { %1293 = vmatpush.bf16.xpose.msra.mxu2 %v1285_v12 }
 0x1c8   : > { %v1090_v14 = vpop.permute.xlu1 %1089  ;;  %v1072_v15 = vpop.permute.xlu0 %1071 }
 0x1c9   : > { %v1088_v16 = vpop.permute.xlu2 %1087  ;;  %v1264_v19 = vunpack.c.l.b16 %v1072_v15  ;;  %v1226_v35 = vunpack.c.l.b16 %v1090_v14  ;;  %v5622_v15 = vld [vmem:[%s5611_s5 + $0x10] sm:$0xff] }
 0x1ca   : > { %v1186_v18 = vunpack.c.l.b16 %v1088_v16 }
 0x1cb   : > { %v1267_v30 = vpack.c.b16 %v1264_v19, %v1263_v26 }
 0x1cc   : > { %v1188_v1 = vpack.c.b16 %v1186_v18, %v1185_v17 }
 0x1ce   : > { %v1199_v4 = vsel %vm1145_vm14, %v1188_v1, 0 }
 0x1cf   : > { %1207 = vmatpush.bf16.xpose.msrb.mxu0 %v1199_v4  ;;  %1294 = vmatpush.bf16.xpose.msra.mxu2 %v1282_v5  ;;  %v5630_v4 = vld [vmem:[%s5611_s5 + $0x18] sm:$0xff] }
 0x1d0   : > { %v1096_v21 = vpop.permute.xlu1 %1095  ;;  %v1092_v22 = vpop.permute.xlu0 %1091 }
 0x1d1   : > { %v1229_v24 = vunpack.c.l.b16 %v1096_v21  ;;  %v1084_v25 = vpop.permute.xlu2 %1083  ;;  %v1227_v32 = vunpack.c.l.b16 %v1092_v22 }
 0x1d2   : > { %v1184_v28 = vunpack.c.l.b16 %v1084_v25 }
 0x1d3   : > { %v1231_v29 = vpack.c.b16 %v1229_v24, %v1228_v23  ;;  %v1230_v40 = vpack.c.b16 %v1227_v32, %v1226_v35 }
 0x1d4   : > { %v1187_v31 = vpack.c.b16 %v1184_v28, %v1183_v27 }
 0x1d5   : > { %v1242_v33 = vsel %vm1145_vm14, %v1231_v29, 0  ;;  %v1239_v43 = vsel %vm1145_vm14, %v1230_v40, 0 }
 0x1d6   : > { %4668 = vmatmul.msk.bf16.vlgmr.msra.gmra.mxu2 %vm1145_vm14, %v1267_v30  ;;  %v1196_v34 = vsel %vm1145_vm14, %v1187_v31, 0  ;;  %1250 = vmatpush.bf16.xpose.msrb.mxu1 %v1242_v33 }
 0x1d7   : > { %1208 = vmatpush.bf16.xpose.msrb.mxu0 %v1196_v34 }
 0x1d8   : > { %v1056_v36 = vpop.permute.xlu1 %1055  ;;  %v1062_v37 = vpop.permute.xlu0 %1061 }
 0x1d9   : > { %v1054_v38 = vpop.permute.xlu2 %1053  ;;  %v1178_v39 = vunpack.c.l.b16 %v1056_v36  ;;  %v1220_v52 = vunpack.c.l.b16 %v1062_v37 }
 0x1da   : > { %v1177_v41 = vunpack.c.l.b16 %v1054_v38 }
 0x1dc   : > { %v1181_v42 = vpack.c.b16 %v1178_v39, %v1177_v41 }
 0x1de   : > { %4664 = vmatmul.msk.bf16.vlgmr.msrb.gmra.mxu0 %vm1145_vm14, %v1181_v42  ;;  %1251 = vmatpush.bf16.xpose.msrb.mxu1 %v1239_v43 }
 0x1e0   : > { %v1074_v44 = vpop.permute.xlu1 %1073  ;;  %v1076_v45 = vpop.permute.xlu0 %1075 }
 0x1e1   : > { %v1064_v47 = vpop.permute.xlu2 %1063  ;;  %v1265_v49 = vunpack.c.l.b16 %v1074_v44  ;;  %v1266_v51 = vunpack.c.l.b16 %v1076_v45 }
 0x1e2   : > { %v1221_v53 = vunpack.c.l.b16 %v1064_v47 }
 0x1e3   : > { %v1268_v55 = vpack.c.b16 %v1266_v51, %v1265_v49 }
 0x1e4   : > { %v1224_v56 = vpack.c.b16 %v1221_v53, %v1220_v52 }
 0x1e6   : > { %4666 = vmatmul.msk.bf16.vlgmr.msrb.gmra.mxu1 %vm1145_vm14, %v1224_v56  ;;  %4669 = vmatmul.msk.bf16.gmra.mxu2 %vm1145_vm14, %v1268_v55 }
 0x1e8   : > { %v1060_v57 = vpop.permute.xlu1 %1059  ;;  %v1066_v6 = vpop.permute.xlu0 %1065 }
 0x1e9   : > { %v1058_v59 = vpop.permute.xlu2 %1057  ;;  %v1180_v60 = vunpack.c.l.b16 %v1060_v57  ;;  %v1222_v9 = vunpack.c.l.b16 %v1066_v6 }
 0x1ea   : > { %v1179_v61 = vunpack.c.l.b16 %v1058_v59  ;;  %v1167_v62 = vpop.f32.mrf.mxu3 }
 0x1eb   : > { %v1168_v63 = vadd.f32 %v1167_v62, %v823_v58 }
 0x1ec   : > { %v1182_v2 = vpack.c.b16 %v1180_v60, %v1179_v61 }
 0x1ed   : > { %v1306_v3 = vsel %vm843_vm0, %v1168_v63, -inf }
 0x1ee   : > { %4665 = vmatmul.msk.bf16.gmra.mxu0 %vm1145_vm14, %v1182_v2  ;;  %1307 = vmax.xlane.f32.xlu1 %v1306_v3 }
 0x1f0   : > { %v1132_v1 = vpop.permute.xlu1 %1131  ;;  %v1126_v23 = vpop.permute.xlu0 %1125 }
 0x1f1   : > { %v1068_v8 = vpop.permute.xlu2 %1067  ;;  %v1640_v19 = vunpack.c.l.b16 %v1132_v1  ;;  %v1637_v28 = vunpack.c.l.b16 %v1126_v23 }
 0x1f2   : > { %v1223_v10 = vunpack.c.l.b16 %v1068_v8  ;;  %v1169_v11 = vpop.f32.mrf.mxu3 }
 0x1f3   : > { %v1170_v12 = vadd.f32 %v1169_v11, %v824_v7 }
 0x1f4   : > { %v1225_v13 = vpack.c.b16 %v1223_v10, %v1222_v9 }
 0x1f5   : > { %v1309_v14 = vsel %vm843_vm0, %v1170_v12, -inf }
 0x1f6   : > { %4667 = vmatmul.msk.bf16.gmra.mxu1 %vm1145_vm14, %v1225_v13  ;;  %1310 = vmax.xlane.f32.xlu0 %v1309_v14 }
 0x1f9   : > { %v1128_v16 = vpop.permute.xlu2 %1127 }
 0x1fa   : > { %v1172_v17 = vpop.f32.mrf.mxu3  ;;  %v1638_v25 = vunpack.c.l.b16 %v1128_v16 }
 0x1fb   : > { %v5625_v18 = vadd.f32 %v1172_v17, %v5622_v15 }
 0x1fc   : > { %v1641_v29 = vpack.c.b16 %v1638_v25, %v1637_v28 }
 0x1fd   : > { %v1312_v0 = vsel %vm843_vm0, %v5625_v18, -inf }
 0x1fe   : > { %1313 = vmax.xlane.f32.xlu2 %v1312_v0 }
 0x201   : > { %v1130_v5 = vpop.permute.xlu2 %1129 }
 0x202   : > { %v1639_v21 = vunpack.c.l.b16 %v1130_v5  ;;  %v1174_v22 = vpop.f32.mrf.mxu3 }
 0x203   : > { %v1175_v24 = vadd.f32 %v1174_v22, %v5630_v4 }
 0x204   : > { %v1642_v26 = vpack.c.b16 %v1640_v19, %v1639_v21 }
 0x205   : > { %v1315_v27 = vsel %vm843_vm0, %v1175_v24, -inf }
 0x206   : > { %1657 = vmatpush.bf16.msrb.mxu2 %v1642_v26  ;;  %1316 = vmax.xlane.f32.xlu1 %v1315_v27 }
 0x209   : > { %v5661_v60 = vpop.permute.xlu2 %1113 }
 0x20a   : > { %1658 = vmatpush.bf16.msrb.mxu2 %v1641_v29 }
 0x259   : > { %v1296_v30 = vpop.f32.mrf.mxu2 }
 0x25a   : > { %v5634_v31 = vadd.f32 %v1296_v30, %v823_v58 }
 0x25b   : > { %v1210_v32 = vpop.f32.mrf.mxu0 }
 0x25c   : > { %v5636_v33 = vadd.f32 %v1210_v32, %v823_v58  ;;  %v1342_v34 = vsel %vm843_vm0, %v5634_v31, -inf }
 0x25d   : > { %1343 = vmax.xlane.f32.xlu2 %v1342_v34 }
 0x25e   : > { %v1318_v35 = vsel %vm843_vm0, %v5636_v33, -inf }
 0x25f   : > { %1319 = vmax.xlane.f32.xlu0 %v1318_v35 }
 0x261   : > { %v1308_v36 = vpop.xlane.xlu1 %1307  ;;  %v1298_v44 = vpop.f32.mrf.mxu2 }
 0x262   : > { %v1354_v41 = vsub.f32 %v1168_v63, %v1308_v36  ;;  %v5650_v45 = vadd.f32 %v1298_v44, %v824_v7 }
 0x263   : > { %v1212_v37 = vpop.f32.mrf.mxu0  ;;  %v1253_v38 = vpop.f32.mrf.mxu1 }
 0x264   : > { %v5642_v39 = vadd.f32 %v1212_v37, %v824_v7  ;;  %v5644_v40 = vadd.f32 %v1253_v38, %v823_v58  ;;  %v1370_v47 = vmul.f32 1.442695, %v1354_v41  ;;  %v1345_v56 = vsel %vm843_vm0, %v5650_v45, -inf }
 0x266   : > { %v1321_v42 = vsel %vm843_vm0, %v5642_v39, -inf  ;;  %v1330_v43 = vsel %vm843_vm0, %v5644_v40, -inf  ;;  %4961 = vpow2.f32 %v1370_v47 }
 0x267   : > { %1322 = vmax.xlane.f32.xlu2 %v1321_v42  ;;  %1331 = vmax.xlane.f32.xlu1 %v1330_v43 }
 0x269   : > { %v1311_v49 = vpop.xlane.xlu0 %1310  ;;  %v1301_v2 = vpop.f32.mrf.mxu2 }
 0x26a   : > { %v1355_v53 = vsub.f32 %v1170_v12, %v1311_v49  ;;  %v5677_v11 = vadd.f32 %v1301_v2, %v5622_v15 }
 0x26b   : > { %v1255_v51 = vpop.f32.mrf.mxu1  ;;  %v1215_v57 = vpop.f32.mrf.mxu0 }
 0x26c   : > { %v5652_v52 = vadd.f32 %v1255_v51, %v824_v7  ;;  %v1372_v58 = vmul.f32 1.442695, %v1355_v53  ;;  %v5659_v59 = vadd.f32 %v1215_v57, %v5622_v15  ;;  %v5663_v62 = vpop.eup %4961 }
 0x26d   : > { %v1402_v7 = vsel %vm843_vm0, %v5663_v62, 0.0 }
 0x26e   : > { %v1333_v55 = vsel %vm843_vm0, %v5652_v52, -inf  ;;  %4963 = vpow2.f32 %v1372_v58  ;;  %v1324_v6 = vsel %vm843_vm0, %v5659_v59, -inf }
 0x26f   : > { %1334 = vmax.xlane.f32.xlu0 %v1333_v55  ;;  %1346 = vmax.xlane.f32.xlu1 %v1345_v56 }
 0x271   : > { %v1314_v12 = vpop.xlane.xlu2 %1313  ;;  %v1303_v5 = vpop.f32.mrf.mxu2 }
 0x272   : > { %v1356_v17 = vsub.f32 %v5625_v18, %v1314_v12  ;;  %v5690_v21 = vadd.f32 %v1303_v5, %v5630_v4 }
 0x273   : > { %v1258_v61 = vpop.f32.mrf.mxu1  ;;  %v1217_v19 = vpop.f32.mrf.mxu0 }
 0x274   : > { %v5666_v63 = vadd.f32 %v1258_v61, %v5622_v15  ;;  %v5674_v10 = vpop.eup %4963  ;;  %v1348_v15 = vsel %vm843_vm0, %v5677_v11, -inf  ;;  %v1374_v22 = vmul.f32 1.442695, %v1356_v17  ;;  %v5693_v18 = vadd.f32 %v1217_v19, %v5630_v4 }
 0x275   : > { %v1405_v0 = vsel %vm843_vm0, %v5674_v10, 0.0  ;;  %v1351_v25 = vsel %vm843_vm0, %v5690_v21, -inf }
 0x276   : > { %v1336_v3 = vsel %vm843_vm0, %v5666_v63, -inf  ;;  %v1327_v26 = vsel %vm843_vm0, %v5693_v18, -inf }
 0x277   : > { %1337 = vmax.xlane.f32.xlu2 %v1336_v3  ;;  %1325 = vmax.xlane.f32.xlu1 %v1324_v6 }
 0x278   : > { %1403 = vadd.xlane.f32.xlu0 %v1402_v7 }
 0x279   : > { %v1317_v8 = vpop.xlane.xlu1 %1316 }
 0x27a   : > { %v1357_v9 = vsub.f32 %v1175_v24, %v1317_v8 }
 0x27b   : > { %v1260_v13 = vpop.f32.mrf.mxu1 }
 0x27c   : > { %v5680_v14 = vadd.f32 %v1260_v13, %v5630_v4  ;;  %v1376_v16 = vmul.f32 1.442695, %v1357_v9 }
 0x27e   : > { %4965 = vpow2.f32 %v1376_v16  ;;  %v1339_v1 = vsel %vm843_vm0, %v5680_v14, -inf }
 0x27f   : > { %1406 = vadd.xlane.f32.xlu2 %v1405_v0  ;;  %1340 = vmax.xlane.f32.xlu1 %v1339_v1  ;;  %4967 = vpow2.f32 %v1374_v22 }
 0x280   : > { %1349 = vmax.xlane.f32.xlu0 %v1348_v15 }
 0x284   : > { %v5695_v23 = vpop.eup %4965 }
 0x285   : > { %v1411_v24 = vsel %vm843_vm0, %v5695_v23, 0.0  ;;  %v5703_v27 = vpop.eup %4967 }
 0x286   : > { %v1408_v4 = vsel %vm843_vm0, %v5703_v27, 0.0 }
 0x287   : > { %1352 = vmax.xlane.f32.xlu2 %v1351_v25  ;;  %1412 = vadd.xlane.f32.xlu1 %v1411_v24 }
 0x288   : > { %1328 = vmax.xlane.f32.xlu0 %v1327_v26 }
 0x290   : > { %1409 = vadd.xlane.f32.xlu0 %v1408_v4 }
 0x2d0   : > { %v1344_v28 = vpop.xlane.xlu2 %1343 }
 0x2d1   : > { %v1366_v43 = vsub.f32 %v5634_v31, %v1344_v28 }
 0x2d2   : > { %v1320_v29 = vpop.xlane.xlu0 %1319 }
 0x2d3   : > { %v1358_v30 = vsub.f32 %v5636_v33, %v1320_v29  ;;  %v1394_v33 = vmul.f32 1.442695, %v1366_v43 }
 0x2d5   : > { %v1378_v32 = vmul.f32 1.442695, %v1358_v30 }
 0x2d7   : > { %4969 = vpow2.f32 %v1378_v32 }
 0x2da   : > { %v1323_v34 = vpop.xlane.xlu2 %1322  ;;  %v1332_v35 = vpop.xlane.xlu1 %1331 }
 0x2db   : > { %v1359_v36 = vsub.f32 %v5642_v39, %v1323_v34  ;;  %v1362_v37 = vsub.f32 %v5644_v40, %v1332_v35 }
 0x2dd   : > { %v5710_v38 = vpop.eup %4969  ;;  %v1380_v41 = vmul.f32 1.442695, %v1359_v36  ;;  %v1386_v42 = vmul.f32 1.442695, %v1362_v37 }
 0x2de   : > { %v1414_v44 = vsel %vm843_vm0, %v5710_v38, 0.0 }
 0x2df   : > { %4971 = vpow2.f32 %v1380_v41  ;;  %1415 = vadd.xlane.f32.xlu0 %v1414_v44 }
 0x2e0   : > { %4973 = vpow2.f32 %v1386_v42 }
 0x2e1   : > { %4975 = vpow2.f32 %v1394_v33 }
 0x2e2   : > { %v1335_v47 = vpop.xlane.xlu0 %1334  ;;  %v1347_v49 = vpop.xlane.xlu1 %1346 }
 0x2e3   : > { %v1363_v51 = vsub.f32 %v5652_v52, %v1335_v47  ;;  %v1367_v39 = vsub.f32 %v5650_v45, %v1347_v49 }
 0x2e5   : > { %v5717_v40 = vpop.eup %4971  ;;  %v1388_v53 = vmul.f32 1.442695, %v1363_v51  ;;  %v1396_v55 = vmul.f32 1.442695, %v1367_v39 }
 0x2e6   : > { %v5719_v56 = vpop.eup %4973  ;;  %v1417_v31 = vsel %vm843_vm0, %v5717_v40, 0.0 }
 0x2e7   : > { %4977 = vpow2.f32 %v1388_v53  ;;  %1418 = vadd.xlane.f32.xlu0 %v1417_v31  ;;  %v1426_v57 = vsel %vm843_vm0, %v5719_v56, 0.0  ;;  %v5727_v61 = vpop.eup %4975 }
 0x2e8   : > { %4979 = vpow2.f32 %v1396_v55  ;;  %1427 = vadd.xlane.f32.xlu1 %v1426_v57  ;;  %v1438_v7 = vsel %vm843_vm0, %v5727_v61, 0.0 }
 0x2ea   : > { %v1338_v52 = vpop.xlane.xlu2 %1337  ;;  %v5725_v58 = vpop.xlane.xlu1 %1325 }
 0x2eb   : > { %v1404_v45 = vpop.xlane.xlu0 %1403  ;;  %v1364_v37 = vsub.f32 %v5666_v63, %v1338_v52 }
 0x2ec   : > { %4981 = vrcp.f32 %v1404_v45 }
 0x2ed   : > { %v5729_v2 = vpop.eup %4977  ;;  %v1390_v42 = vmul.f32 1.442695, %v1364_v37 }
 0x2ee   : > { %v5731_v3 = vpop.eup %4979  ;;  %v1429_v6 = vsel %vm843_vm0, %v5729_v2, 0.0 }
 0x2ef   : > { %1430 = vadd.xlane.f32.xlu2 %v1429_v6  ;;  %v1441_v8 = vsel %vm843_vm0, %v5731_v3, 0.0 }
 0x2f0   : > { %1439 = vadd.xlane.f32.xlu1 %v1438_v7  ;;  %1442 = vadd.xlane.f32.xlu0 %v1441_v8 }
 0x2f2   : > { %v1407_v9 = vpop.xlane.xlu2 %1406  ;;  %v1341_v12 = vpop.xlane.xlu1 %1340 }
 0x2f3   : > { %v4982_v13 = vpop.eup %4981  ;;  %4983 = vrcp.f32 %v1407_v9  ;;  %v1350_v16 = vpop.xlane.xlu0 %1349  ;;  %v1365_v63 = vsub.f32 %v5680_v14, %v1341_v12  ;;  %v1360_v14 = vsub.f32 %v5659_v59, %v5725_v58 }
 0x2f4   : > { %v1466_v17 = vmul.f32 %v4982_v13, %v5663_v62 }
 0x2f5   : > { %v1382_v53 = vmul.f32 1.442695, %v1360_v14 }
 0x2f6   : > { %v1482_v1 = vpack.c.bf16 %v1466_v17, %v1466_v17 }
 0x2f8   : > { %v1502_v24 = vunpack.c.l.b16 %v1482_v1 }
 0x2f9   : > { %v4984_v0 = vpop.eup %4983 }
 0x2fa   : > { %v1467_v5 = vmul.f32 %v4984_v0, %v5674_v10  ;;  %v1413_v19 = vpop.xlane.xlu1 %1412 }
 0x2fb   : > { %v1329_v15 = vpop.xlane.xlu0 %1328  ;;  %4985 = vrcp.f32 %v1413_v19 }
 0x2fc   : > { %v1483_v22 = vpack.c.bf16 %v1467_v5, %v1467_v5  ;;  %v1361_v43 = vsub.f32 %v5693_v18, %v1329_v15  ;;  %v1392_v18 = vmul.f32 1.442695, %v1365_v63  ;;  %v934_v15 = vld [vmem:[%s6990_s9] sm:$0xf] }
 0x2fe   : > { %v1503_v25 = vunpack.c.l.b16 %v1483_v22 }
 0x300   : > { %v1506_v26 = vpack.c.b16 %v1503_v25, %v1502_v24  ;;  %v1704_v24 = vsel %vm1702_vm15, %v934_v15, 0 }
 0x301   : > { %v4986_v28 = vpop.eup %4985  ;;  %1713 = vmatpush.bf16.msrb.mxu3 %v1704_v24 }
 0x302   : > { %4670 = vmatmul.msk.bf16.vlgmr.msra.gmra.mxu3 %vm843_vm0, %v1506_v26  ;;  %v1469_v62 = vmul.f32 %v4986_v28, %v5695_v23 }
 0x303   : > { %v1410_v4 = vpop.xlane.xlu0 %1409 }
 0x304   : > { %4987 = vrcp.f32 %v1410_v4  ;;  %1121 = vrot.lane.b32.xlu0 %v5563_v46, %s6952_s27  ;;  %v1485_v30 = vpack.c.bf16 %v1469_v62, %v1469_v62  ;;  %v1353_v46 = vpop.xlane.xlu2 %1352 }
 0x305   : > { %v1369_v23 = vsub.f32 %v5690_v21, %v1353_v46  ;;  %v1384_v21 = vmul.f32 1.442695, %v1361_v43 }
 0x306   : > { %v1505_v35 = vunpack.c.l.b16 %v1485_v30 }
 0x307   : > { %1123 = vrot.lane.b32.xlu2 %v5566_v48, %s6952_s27 }
 0x309   : > { %1115 = vrot.lane.b32.xlu1 %v5566_v48, %s6989_s2  ;;  %v1400_v48 = vmul.f32 1.442695, %v1369_v23 }
 0x30a   : > { %v4988_v10 = vpop.eup %4987 }
 0x30b   : > { %v1468_v29 = vmul.f32 %v4988_v10, %v5703_v27  ;;  %v1368_v27 = vsub.f32 %v5677_v11, %v1350_v16  ;;  %4989 = vpow2.f32 %v1400_v48 }
 0x30d   : > { %v1484_v32 = vpack.c.bf16 %v1468_v29, %v1468_v29  ;;  %v1398_v41 = vmul.f32 1.442695, %v1368_v27 }
 0x30f   : > { %1109 = vrot.lane.b32.xlu2 %v5572_v54, %s6989_s2  ;;  %v1504_v34 = vunpack.c.l.b16 %v1484_v32  ;;  %4991 = vpow2.f32 %v1398_v41  ;;  %v1553_v32 = vunpack.c.l.b16 %v5661_v60 }
 0x310   : > { %4993 = vpow2.f32 %v1390_v42 }
 0x311   : > { %v1507_v36 = vpack.c.b16 %v1505_v35, %v1504_v34  ;;  %v5763_v44 = vpop.eup %4989  ;;  %4995 = vpow2.f32 %v1384_v21 }
 0x312   : > { %4997 = vpow2.f32 %v1392_v18 }
 0x313   : > { %4671 = vmatmul.msk.bf16.gmra.mxu3 %vm843_vm0, %v1507_v36  ;;  %4999 = vpow2.f32 %v1382_v53 }
 0x315   : > { %v5767_v11 = vpop.eup %4991 }
 0x316   : > { %v5770_v33 = vpop.eup %4993 }
 0x317   : > { %1111 = vrot.lane.b32.xlu2 %v5568_v50, %s6989_s2  ;;  %v1432_v47 = vsel %vm843_vm0, %v5770_v33, 0.0  ;;  %v5776_v49 = vpop.eup %4995 }
 0x318   : > { %v1423_v51 = vsel %vm843_vm0, %v5776_v49, 0.0  ;;  %v5782_v39 = vpop.eup %4997 }
 0x319   : > { %v1435_v55 = vsel %vm843_vm0, %v5782_v39, 0.0  ;;  %v5786_v31 = vpop.eup %4999 }
 0x31a   : > { %v1420_v57 = vsel %vm843_vm0, %v5786_v31, 0.0 }
 0x31f   : > { %1117 = vrot.lane.b32.xlu2 %v5572_v54, %s6952_s27  ;;  %v1447_v54 = vsel %vm843_vm0, %v5763_v44, 0.0 }
 0x327   : > { %1119 = vrot.lane.b32.xlu2 %v5568_v50, %s6952_s27  ;;  %v1444_v50 = vsel %vm843_vm0, %v5767_v11, 0.0  ;;  %s5810_s27 = scalar_lea.vmem %s6992_s24, %s6991_s25 }
 0x32e   : > { %1448 = vadd.xlane.f32.xlu0 %v1447_v54 }
 0x333   : > { %1445 = vadd.xlane.f32.xlu1 %v1444_v50 }
 0x336   : > { %1433 = vadd.xlane.f32.xlu0 %v1432_v47 }
 0x33b   : > { %1424 = vadd.xlane.f32.xlu1 %v1423_v51 }
 0x343   : > { %1436 = vadd.xlane.f32.xlu1 %v1435_v55 }
 0x350   : > { %1421 = vadd.xlane.f32.xlu2 %v1420_v57 }
 0x352   : > { %v1416_v52 = vpop.xlane.xlu0 %1415 }
 0x35a   : > { %v1419_v45 = vpop.xlane.xlu0 %1418 }
 0x35b   : > { %v1428_v6 = vpop.xlane.xlu1 %1427 }
 0x362   : > { %v1431_v7 = vpop.xlane.xlu2 %1430 }
 0x363   : > { %v1443_v8 = vpop.xlane.xlu0 %1442  ;;  %v1440_v59 = vpop.xlane.xlu1 %1439 }
 0x364   : > { %5001 = vrcp.f32 %v1443_v8 }
 0x365   : > { %5003 = vrcp.f32 %v1440_v59 }
 0x366   : > { %5005 = vrcp.f32 %v1419_v45 }
 0x367   : > { %5007 = vrcp.f32 %v1416_v52 }
 0x368   : > { %5009 = vrcp.f32 %v1431_v7 }
 0x369   : > { %5011 = vrcp.f32 %v1428_v6 }
 0x36a   : > { %v5002_v58 = vpop.eup %5001  ;;  %v1124_v9 = vpop.permute.xlu2 %1123 }
 0x36b   : > { %v5004_v12 = vpop.eup %5003  ;;  %v1479_v13 = vmul.f32 %v5002_v58, %v5731_v3  ;;  %v1597_v25 = vunpack.c.l.b16 %v1124_v9 }
 0x36c   : > { %v1478_v16 = vmul.f32 %v5004_v12, %v5727_v61  ;;  %v5006_v3 = vpop.eup %5005 }
 0x36d   : > { %v1495_v17 = vpack.c.bf16 %v1479_v13, %v1479_v13  ;;  %v5008_v4 = vpop.eup %5007  ;;  %v1471_v28 = vmul.f32 %v5006_v3, %v5717_v40 }
 0x36e   : > { %v1494_v0 = vpack.c.bf16 %v1478_v16, %v1478_v16  ;;  %v1470_v29 = vmul.f32 %v5008_v4, %v5710_v38  ;;  %v5010_v27 = vpop.eup %5009 }
 0x36f   : > { %v1632_v1 = vunpack.c.l.b16 %v1495_v17  ;;  %v1487_v35 = vpack.c.bf16 %v1471_v28, %v1471_v28  ;;  %v5012_v42 = vpop.eup %5011  ;;  %v1475_v38 = vmul.f32 %v5010_v27, %v5729_v2 }
 0x370   : > { %v1631_v5 = vunpack.c.l.b16 %v1494_v0  ;;  %v1486_v23 = vpack.c.bf16 %v1470_v29, %v1470_v29  ;;  %v1474_v60 = vmul.f32 %v5012_v42, %v5719_v56  ;;  %v5814_v0 = vld [vmem:[%s5810_s27] sm:$0xff] }
 0x371   : > { %v1546_v37 = vunpack.c.l.b16 %v1487_v35  ;;  %v1491_v63 = vpack.c.bf16 %v1475_v38, %v1475_v38  ;;  %v2134_v15 = vmul.f32 %v5814_v0, %v5814_v0 }
 0x372   : > { %v1635_v19 = vpack.c.b16 %v1632_v1, %v1631_v5  ;;  %v1110_v22 = vpop.permute.xlu2 %1109  ;;  %v1545_v43 = vunpack.c.l.b16 %v1486_v23  ;;  %v1490_v50 = vpack.c.bf16 %v1474_v60, %v1474_v60  ;;  %v5817_v1 = vld [vmem:[%s5810_s27 + $0x8] sm:$0xff] }
 0x373   : > { %v1551_v48 = vunpack.c.l.b16 %v1110_v22  ;;  %v1589_v14 = vunpack.c.l.b16 %v1491_v63  ;;  %v2138_v24 = vsel %vm843_vm0, %v2134_v15, 0.0 }
 0x374   : > { %4676 = vmatmul.msk.bf16.vlgmr.msrb.gmra.mxu2 %vm843_vm0, %v1635_v19  ;;  %v1549_v21 = vpack.c.b16 %v1546_v37, %v1545_v43  ;;  %v1588_v52 = vunpack.c.l.b16 %v1490_v50  ;;  %v2135_v19 = vmul.f32 %v5817_v1, %v5817_v1  ;;  %2139 = vadd.xlane.f32.xlu0 %v2138_v24 }
 0x376   : > { %v1122_v61 = vpop.permute.xlu0 %1121  ;;  %v1592_v2 = vpack.c.b16 %v1589_v14, %v1588_v52  ;;  %v2141_v3 = vsel %vm843_vm0, %v2135_v19, 0.0  ;;  %v936_v52 = vld [vmem:[%s6990_s9 + $0x8] sm:$0xf] }
 0x377   : > { %v1596_v26 = vunpack.c.l.b16 %v1122_v61  ;;  %2142 = vadd.xlane.f32.xlu1 %v2141_v3 }
 0x379   : > { %v1599_v62 = vpack.c.b16 %v1597_v25, %v1596_v26 }
 0x37a   : > { %v1112_v10 = vpop.permute.xlu2 %1111 }
 0x37b   : > { %1614 = vmatpush.bf16.msra.mxu1 %v1599_v62  ;;  %v1116_v30 = vpop.permute.xlu1 %1115  ;;  %v1552_v36 = vunpack.c.l.b16 %v1112_v10 }
 0x37c   : > { %v1554_v34 = vunpack.c.l.b16 %v1116_v30 }
 0x37d   : > { %v1555_v40 = vpack.c.b16 %v1552_v36, %v1551_v48 }
 0x37e   : > { %v1556_v46 = vpack.c.b16 %v1554_v34, %v1553_v32  ;;  %v5828_v32 = vld [vmem:[%s5810_s27 + $0x10] sm:$0xff]  ;;  %v5831_v34 = vld [vmem:[%s5810_s27 + $0x18] sm:$0xff] }
 0x37f   : > { %v2136_v36 = vmul.f32 %v5828_v32, %v5828_v32 }
 0x380   : > { %1571 = vmatpush.bf16.msra.mxu0 %v1556_v46 }
 0x382   : > { %v1118_v41 = vpop.permute.xlu2 %1117 }
 0x383   : > { %v1594_v47 = vunpack.c.l.b16 %v1118_v41 }
 0x384   : > { %1572 = vmatpush.bf16.msra.mxu0 %v1555_v40 }
 0x385   : > { %v1531_v54 = vpop.f32.mrf.mxu3 }
 0x386   : > { %v1670_v53 = vpack.c.bf16 %v1531_v54, %v1531_v54 }
 0x387   : > { %4672 = vmatmul.msk.bf16.vlgmr.msra.gmra.mxu0 %vm843_vm0, %v1549_v21 }
 0x388   : > { %v1690_v6 = vunpack.c.l.b16 %v1670_v53  ;;  %v937_v53 = vld [vmem:[%s6990_s9 + $0xc] sm:$0xf] }
 0x38a   : > { %v1120_v18 = vpop.permute.xlu2 %1119 }
 0x38b   : > { %v1595_v51 = vunpack.c.l.b16 %v1120_v18 }
 0x38d   : > { %v1598_v55 = vpack.c.b16 %v1595_v51, %v1594_v47  ;;  %v1533_v57 = vpop.f32.mrf.mxu3 }
 0x38e   : > { %v1671_v45 = vpack.c.bf16 %v1533_v57, %v1533_v57 }
 0x38f   : > { %1615 = vmatpush.bf16.msra.mxu1 %v1598_v55  ;;  %v1818_v55 = vsel %vm1702_vm15, %v937_v53, 0 }
 0x390   : > { %v1691_v7 = vunpack.c.l.b16 %v1671_v45  ;;  %1827 = vmatpush.bf16.msra.mxu2 %v1818_v55  ;;  %v1780_v45 = vsel %vm1702_vm15, %v936_v52, 0 }
 0x392   : > { %v1694_v8 = vpack.c.b16 %v1691_v7, %v1690_v6  ;;  %4674 = vmatmul.msk.bf16.vlgmr.msra.gmra.mxu1 %vm843_vm0, %v1592_v2 }
 0x393   : > { %1789 = vmatpush.bf16.msrb.mxu1 %v1780_v45 }
 0x394   : > { %4678 = vmatmul.msk.bf16.vlgmr.msrb.gmra.mxu3 %vm1145_vm14, %v1694_v8 }
 0x396   : > { %v1536_v56 = vpop.f32.mrf.mxu3 }
 0x397   : > { %v1672_v59 = vpack.c.bf16 %v1536_v56, %v1536_v56 }
 0x399   : > { %v1692_v12 = vunpack.c.l.b16 %v1672_v59 }
 0x39e   : > { %v1538_v58 = vpop.f32.mrf.mxu3 }
 0x39f   : > { %v1673_v9 = vpack.c.bf16 %v1538_v58, %v1538_v58 }
 0x3a1   : > { %v1693_v13 = vunpack.c.l.b16 %v1673_v9  ;;  %v1449_v16 = vpop.xlane.xlu0 %1448 }
 0x3a2   : > { %5013 = vrcp.f32 %v1449_v16 }
 0x3a3   : > { %v1695_v17 = vpack.c.b16 %v1693_v13, %v1692_v12 }
 0x3a5   : > { %4679 = vmatmul.msk.bf16.gmra.mxu3 %vm1145_vm14, %v1695_v17 }
 0x3a6   : > { %v1446_v5 = vpop.xlane.xlu1 %1445 }
 0x3a7   : > { %5015 = vrcp.f32 %v1446_v5 }
 0x3a8   : > { %v5014_v22 = vpop.eup %5013 }
 0x3a9   : > { %v1481_v61 = vmul.f32 %v5014_v22, %v5763_v44  ;;  %v1434_v26 = vpop.xlane.xlu0 %1433  ;;  %v2137_v44 = vmul.f32 %v5831_v34, %v5831_v34 }
 0x3aa   : > { %5017 = vrcp.f32 %v1434_v26 }
 0x3ab   : > { %v1497_v62 = vpack.c.bf16 %v1481_v61, %v1481_v61  ;;  %v2147_v23 = vsel %vm843_vm0, %v2137_v44, 0.0 }
 0x3ac   : > { %2148 = vadd.xlane.f32.xlu1 %v2147_v23  ;;  %v4882_v23 = vld [vmem:[%s6924_s13] sm:$0xff] }
 0x3ad   : > { %v5016_v25 = vpop.eup %5015  ;;  %v1634_v30 = vunpack.c.l.b16 %v1497_v62 }
 0x3ae   : > { %v1425_v4 = vpop.xlane.xlu1 %1424  ;;  %v1480_v28 = vmul.f32 %v5016_v25, %v5767_v11  ;;  %v2144_v11 = vsel %vm843_vm0, %v2136_v36, 0.0 }
 0x3af   : > { %2145 = vadd.xlane.f32.xlu0 %v2144_v11 }
 0x3b0   : > { %v1496_v10 = vpack.c.bf16 %v1480_v28, %v1480_v28  ;;  %v5018_v48 = vpop.eup %5017 }
 0x3b1   : > { %v1476_v27 = vmul.f32 %v5018_v48, %v5770_v33 }
 0x3b2   : > { %v1633_v29 = vunpack.c.l.b16 %v1496_v10 }
 0x3b3   : > { %v1492_v41 = vpack.c.bf16 %v1476_v27, %v1476_v27 }
 0x3b4   : > { %v1636_v35 = vpack.c.b16 %v1634_v30, %v1633_v29 }
 0x3b5   : > { %v1590_v43 = vunpack.c.l.b16 %v1492_v41 }
 0x3b6   : > { %4677 = vmatmul.msk.bf16.gmra.mxu2 %vm843_vm0, %v1636_v35  ;;  %v1437_v46 = vpop.xlane.xlu1 %1436  ;;  %v4883_v35 = vld [vmem:[%s6924_s13 + $0x8] sm:$0xff] }
 0x3b7   : > { %5019 = vrcp.f32 %v1437_v46  ;;  %2284 = vmatpush.bf16.msrb.mxu2 %v4883_v35 }
 0x3b8   : > { %5021 = vrcp.f32 %v1425_v4 }
 0x3bb   : > { %2285 = vmatpush.bf16.msrb.mxu2 %v4882_v23 }
 0x3bd   : > { %v5020_v37 = vpop.eup %5019 }
 0x3be   : > { %v1477_v40 = vmul.f32 %v5020_v37, %v5782_v39  ;;  %v5022_v54 = vpop.eup %5021 }
 0x3bf   : > { %v1473_v63 = vmul.f32 %v5022_v54, %v5776_v49  ;;  %v935_v49 = vld [vmem:[%s6990_s9 + $0x4] sm:$0xf]  ;;  %s6995_s9 = smov 104  }
 0x3c0   : > { %v1493_v42 = vpack.c.bf16 %v1477_v40, %v1477_v40  ;;  %v4880_v54 = vld [vmem:[%s6993_s12] sm:$0xff] }
 0x3c1   : > { %v1489_v33 = vpack.c.bf16 %v1473_v63, %v1473_v63 }
 0x3c2   : > { %v1591_v38 = vunpack.c.l.b16 %v1493_v42 }
 0x3c3   : > { %v1422_v21 = vpop.xlane.xlu2 %1421  ;;  %v1548_v14 = vunpack.c.l.b16 %v1489_v33 }
 0x3c4   : > { %5023 = vrcp.f32 %v1422_v21  ;;  %v1593_v60 = vpack.c.b16 %v1591_v38, %v1590_v43  ;;  %v4881_v21 = vld [vmem:[%s6993_s12 + $0x8] sm:$0xff]  ;;  %s6996_s12 = smov 112  }
 0x3c5   : > { %2249 = vmatpush.bf16.msra.mxu1 %v4881_v21 }
 0x3c6   : > { %4675 = vmatmul.msk.bf16.gmra.mxu1 %vm843_vm0, %v1593_v60 }
 0x3c9   : > { %2250 = vmatpush.bf16.msra.mxu1 %v4880_v54 }
 0x3ca   : > { %v5024_v50 = vpop.eup %5023 }
 0x3cb   : > { %v1472_v18 = vmul.f32 %v5024_v50, %v5786_v31  ;;  %v1742_v31 = vsel %vm1702_vm15, %v935_v49, 0 }
 0x3cc   : > { %1751 = vmatpush.bf16.msrb.mxu0 %v1742_v31 }
 0x3cd   : > { %v1488_v47 = vpack.c.bf16 %v1472_v18, %v1472_v18 }
 0x3cf   : > { %v1547_v51 = vunpack.c.l.b16 %v1488_v47 }
 0x3d1   : > { %v1550_v39 = vpack.c.b16 %v1548_v14, %v1547_v51 }
 0x3d3   : > { %4673 = vmatmul.msk.bf16.gmra.mxu0 %vm843_vm0, %v1550_v39 }
 0x3e7   : > { %v2140_v26 = vpop.xlane.xlu0 %2139 }
 0x3e8   : > { %v2150_v28 = vmul.f32 %v2140_v26, %v5496_v20 }
 0x3ea   : > { %v2143_v4 = vpop.xlane.xlu1 %2142  ;;  %v2154_v10 = vadd.f32 1e-06, %v2150_v28 }
 0x3eb   : > { %v2151_v62 = vmul.f32 %v2143_v4, %v5496_v20 }
 0x3ec   : > { %5025 = vrsqrt.f32 %v2154_v10  ;;  %vm2164_vm1 = vweird.f32 %v2154_v10 }
 0x3ed   : > { %v2155_v29 = vadd.f32 1e-06, %v2151_v62 }
 0x3ef   : > { %5027 = vrsqrt.f32 %v2155_v29  ;;  %vm2174_vm3 = vweird.f32 %v2155_v29 }
 0x3f2   : > { %v5026_v36 = vpop.eup %5025 }
 0x3f3   : > { %v2159_v27 = vmul.f32 %v5026_v36, %v2154_v10  ;;  %vm2165_vm2 = vweird.f32 %v5026_v36 }
 0x3f4   : > { %vm2166_vm5 = vmor %vm2164_vm1, %vm2165_vm2 }
 0x3f5   : > { %v5028_v46 = vpop.eup %5027  ;;  %v2160_v43 = vmul.f32 %v5026_v36, %v2159_v27 }
 0x3f6   : > { %v2169_v37 = vmul.f32 %v5028_v46, %v2155_v29  ;;  %vm2175_vm4 = vweird.f32 %v5028_v46 }
 0x3f7   : > { %v1660_v57 = vpop.f32.mrf.mxu2  ;;  %v2161_v60 = vmul.f32 0.5, %v2160_v43  ;;  %vm2176_vm6 = vmor %vm2174_vm3, %vm2175_vm4 }
 0x3f8   : > { %v1682_v2 = vpack.c.bf16 %v1660_v57, %v1660_v57  ;;  %v2170_v38 = vmul.f32 %v5028_v46, %v2169_v37 }
 0x3f9   : > { %v2162_v33 = vsub.f32 1.5, %v2161_v60 }
 0x3fa   : > { %v1805_v8 = vunpack.c.l.b16 %v1682_v2  ;;  %v2171_v63 = vmul.f32 0.5, %v2170_v38 }
 0x3fb   : > { %v2163_v31 = vmul.f32 %v5026_v36, %v2162_v33 }
 0x3fc   : > { %v2172_v47 = vsub.f32 1.5, %v2171_v63 }
 0x3fe   : > { %v2173_v57 = vmul.f32 %v5028_v46, %v2172_v47  ;;  %v5202_v47 = vld [vmem:[%s5464_s7] sm:$0xff] }
 0x3ff   : > { %v1662_v6 = vpop.f32.mrf.mxu2 }
 0x400   : > { %v1683_v7 = vpack.c.bf16 %v1662_v6, %v1662_v6  ;;  %v2167_v6 = vsel %vm2166_vm5, %v5026_v36, %v2163_v31 }
 0x402   : > { %v1806_v56 = vunpack.c.l.b16 %v1683_v7  ;;  %v2177_v7 = vsel %vm2176_vm6, %v5028_v46, %v2173_v57 }
 0x404   : > { %v1809_v59 = vpack.c.b16 %v1806_v56, %v1805_v8  ;;  %v1574_v58 = vpop.f32.mrf.mxu0 }
 0x405   : > { %v1674_v9 = vpack.c.bf16 %v1574_v58, %v1574_v58 }
 0x406   : > { %4684 = vmatmul.msk.bf16.vlgmr.msra.gmra.mxu2 %vm1145_vm14, %v1809_v59 }
 0x407   : > { %v1729_v16 = vunpack.c.l.b16 %v1674_v9  ;;  %v5889_v9 = vld [vmem:[%s6987_s1] sm:$0xff] }
 0x40c   : > { %v1576_v12 = vpop.f32.mrf.mxu0 }
 0x40d   : > { %v1675_v13 = vpack.c.bf16 %v1576_v12, %v1576_v12  ;;  %v2202_v12 = vperm.slane %v5889_v9, 3 }
 0x40f   : > { %v1730_v17 = vunpack.c.l.b16 %v1675_v13  ;;  %v1617_v5 = vpop.f32.mrf.mxu1  ;;  %v2198_v13 = vmul.f32 %v2167_v6, %v5814_v0  ;;  %v5203_v6 = vld [vmem:[%s5464_s7 + $0x8] sm:$0xff] }
 0x410   : > { %v1678_v19 = vpack.c.bf16 %v1617_v5, %v1617_v5 }
 0x411   : > { %v1733_v15 = vpack.c.b16 %v1730_v17, %v1729_v16  ;;  %v2199_v16 = vmul.f32 %v2177_v7, %v5817_v1 }
 0x412   : > { %v1767_v3 = vunpack.c.l.b16 %v1678_v19 }
 0x413   : > { %4680 = vmatmul.msk.bf16.vlgmr.msrb.gmra.mxu0 %vm1145_vm14, %v1733_v15 }
 0x417   : > { %v1619_v22 = vpop.f32.mrf.mxu1 }
 0x418   : > { %v1679_v24 = vpack.c.bf16 %v1619_v22, %v1619_v22 }
 0x41a   : > { %v1768_v61 = vunpack.c.l.b16 %v1679_v24  ;;  %v2203_v24 = vmul.f32 %v2202_v12, %v2198_v13  ;;  %v4878_v13 = vld [vmem:[%s6994_s11 + $0x10] sm:$0xff] }
 0x41c   : > { %v1771_v25 = vpack.c.b16 %v1768_v61, %v1767_v3  ;;  %v2204_v3 = vmul.f32 %v2202_v12, %v2199_v16 }
 0x41e   : > { %4682 = vmatmul.msk.bf16.vlgmr.msrb.gmra.mxu1 %vm1145_vm14, %v1771_v25  ;;  %v5897_v0 = vpack.c.bf16 %v2204_v3, %v2203_v24 }
 0x41f   : > { %v2149_v44 = vpop.xlane.xlu1 %2148 }
 0x420   : > { %v2153_v48 = vmul.f32 %v2149_v44, %v5496_v20 }
 0x422   : > { %v2146_v30 = vpop.xlane.xlu0 %2145  ;;  %v5873_v41 = vadd.f32 1e-06, %v2153_v48 }
 0x423   : > { %v2152_v11 = vmul.f32 %v2146_v30, %v5496_v20 }
 0x424   : > { %vm2194_vm9 = vweird.f32 %v5873_v41 }
 0x425   : > { %v5871_v40 = vadd.f32 1e-06, %v2152_v11 }
 0x427   : > { %5029 = vrsqrt.f32 %v5871_v40  ;;  %vm2184_vm7 = vweird.f32 %v5871_v40 }
 0x428   : > { %5031 = vrsqrt.f32 %v5873_v41 }
 0x42d   : > { %v5030_v18 = vpop.eup %5029 }
 0x42e   : > { %v5032_v14 = vpop.eup %5031  ;;  %v2179_v52 = vmul.f32 %v5030_v18, %v5871_v40  ;;  %vm2185_vm8 = vweird.f32 %v5030_v18  ;;  %v1715_v40 = vpop.f32.mrf.mxu3 }
 0x42f   : > { %v2189_v45 = vmul.f32 %v5032_v14, %v5873_v41  ;;  %vm2195_vm10 = vweird.f32 %v5032_v14  ;;  %vm2186_vm11 = vmor %vm2184_vm7, %vm2185_vm8 }
 0x430   : > { %v2180_v8 = vmul.f32 %v5030_v18, %v2179_v52  ;;  %vm2196_vm12 = vmor %vm2194_vm9, %vm2195_vm10 }
 0x431   : > { %v2190_v56 = vmul.f32 %v5032_v14, %v2189_v45 }
 0x432   : > { %v2181_v5 = vmul.f32 0.5, %v2180_v8 }
 0x433   : > { %v2191_v15 = vmul.f32 0.5, %v2190_v56 }
 0x434   : > { %v2182_v26 = vsub.f32 1.5, %v2181_v5 }
 0x435   : > { %v2192_v4 = vsub.f32 1.5, %v2191_v15 }
 0x436   : > { %v2183_v1 = vmul.f32 %v5030_v18, %v2182_v26 }
 0x437   : > { %v2193_v28 = vmul.f32 %v5032_v14, %v2192_v4 }
 0x438   : > { %v2187_v35 = vsel %vm2186_vm11, %v5030_v18, %v2183_v1 }
 0x439   : > { %v1665_v42 = vpop.f32.mrf.mxu2  ;;  %v2197_v29 = vsel %vm2196_vm12, %v5032_v14, %v2193_v28  ;;  %v2200_v46 = vmul.f32 %v2187_v35, %v5828_v32  ;;  %v5204_v35 = vld [vmem:[%s5464_s7 + $0x10] sm:$0xff]  ;;  %vm2025_vm12 = vcmask 523264  }
 0x43a   : > { %v1684_v50 = vpack.c.bf16 %v1665_v42, %v1665_v42  ;;  %v2201_v11 = vmul.f32 %v2197_v29, %v5831_v34  ;;  %v1839_v42 = vsel %vm843_vm0, %v1715_v40, 0.0 }
 0x43b   : > { %v2205_v48 = vmul.f32 %v2202_v12, %v2200_v46 }
 0x43c   : > { %v1807_v55 = vunpack.c.l.b16 %v1684_v50  ;;  %v2206_v27 = vmul.f32 %v2202_v12, %v2201_v11  ;;  %v1717_v50 = vpop.f32.mrf.mxu3 }
 0x43d   : > { %v1846_v14 = vsel %vm843_vm0, %v1717_v50, 0.0 }
 0x43e   : > { %v5906_v37 = vpack.c.bf16 %v2206_v27, %v2205_v48 }
 0x441   : > { %v1667_v51 = vpop.f32.mrf.mxu2 }
 0x442   : > { %v1685_v39 = vpack.c.bf16 %v1667_v51, %v1667_v51 }
 0x443   : > { %v1622_v53 = vpop.f32.mrf.mxu1 }
 0x444   : > { %v1808_v49 = vunpack.c.l.b16 %v1685_v39  ;;  %v1680_v59 = vpack.c.bf16 %v1622_v53, %v1622_v53  ;;  %v1720_v15 = vpop.f32.mrf.mxu3 }
 0x445   : > { %v1853_v3 = vsel %vm843_vm0, %v1720_v15, 0.0 }
 0x446   : > { %v1810_v2 = vpack.c.b16 %v1808_v49, %v1807_v55  ;;  %v1769_v19 = vunpack.c.l.b16 %v1680_v59 }
 0x448   : > { %4685 = vmatmul.msk.bf16.gmra.mxu2 %vm1145_vm14, %v1810_v2 }
 0x44b   : > { %v1624_v58 = vpop.f32.mrf.mxu1 }
 0x44c   : > { %v1681_v17 = vpack.c.bf16 %v1624_v58, %v1624_v58  ;;  %v4879_v58 = vld [vmem:[%s6994_s11 + $0x18] sm:$0xff] }
 0x44d   : > { %2036 = vmatpush.bf16.msra.mxu0 %v4879_v58 }
 0x44e   : > { %v1770_v22 = vunpack.c.l.b16 %v1681_v17  ;;  %v4877_v17 = vld [vmem:[%s6994_s11 + $0x8] sm:$0xff] }
 0x450   : > { %v1579_v61 = vpop.f32.mrf.mxu0  ;;  %v1772_v25 = vpack.c.b16 %v1770_v22, %v1769_v19  ;;  %v4876_v19 = vld [vmem:[%s6994_s11] sm:$0xff] }
 0x451   : > { %v1676_v62 = vpack.c.bf16 %v1579_v61, %v1579_v61  ;;  %2037 = vmatpush.bf16.msra.mxu0 %v4878_v13 }
 0x452   : > { %4683 = vmatmul.msk.bf16.gmra.mxu1 %vm1145_vm14, %v1772_v25 }
 0x453   : > { %v1731_v36 = vunpack.c.l.b16 %v1676_v62  ;;  %v1722_v62 = vpop.f32.mrf.mxu3 }
 0x455   : > { %2038 = vmatpush.bf16.msra.mxu0 %v4877_v17 }
 0x458   : > { %4732 = vmatmul.msk.bf16.vlgmr.msrb.gmra.mxu2 %vm843_vm0, %v5897_v0  ;;  %v1581_v10 = vpop.f32.mrf.mxu0 }
 0x459   : > { %v1677_v30 = vpack.c.bf16 %v1581_v10, %v1581_v10  ;;  %2039 = vmatpush.bf16.msra.mxu0 %v4876_v19 }
 0x45b   : > { %v1732_v44 = vunpack.c.l.b16 %v1677_v30 }
 0x45d   : > { %v1734_v23 = vpack.c.b16 %v1732_v44, %v1731_v36  ;;  %v1860_v44 = vsel %vm843_vm0, %v1722_v62, 0.0 }
 0x45f   : > { %4681 = vmatmul.msk.bf16.gmra.mxu0 %vm1145_vm14, %v1734_v23 }
 0x462   : > { %4722 = vmatmul.msk.bf16.vlgmr.msra.gmra.mxu1 %vm843_vm0, %v5897_v0 }
 0x468   : > { %4733 = vmatmul.msk.bf16.gmra.mxu2 %vm843_vm0, %v5906_v37 }
 0x472   : > { %4723 = vmatmul.msk.bf16.gmra.mxu1 %vm843_vm0, %v5906_v37 }
 0x489   : > { %v1829_v41 = vpop.f32.mrf.mxu2 }
 0x48a   : > { %v1844_v63 = vsel %vm843_vm0, %v1829_v41, 0.0 }
 0x490   : > { %v1753_v32 = vpop.f32.mrf.mxu0 }
 0x491   : > { %v1840_v34 = vsel %vm843_vm0, %v1753_v32, 0.0  ;;  %v1831_v39 = vpop.f32.mrf.mxu2 }
 0x492   : > { %v1841_v43 = vadd.f32 %v1840_v34, %v1839_v42  ;;  %v1851_v45 = vsel %vm843_vm0, %v1831_v39, 0.0 }
 0x498   : > { %v1755_v54 = vpop.f32.mrf.mxu0 }
 0x499   : > { %v1847_v33 = vsel %vm843_vm0, %v1755_v54, 0.0 }
 0x49a   : > { %v1848_v53 = vadd.f32 %v1847_v33, %v1846_v14 }
 0x49b   : > { %v1791_v38 = vpop.f32.mrf.mxu1 }
 0x49c   : > { %v1842_v21 = vsel %vm843_vm0, %v1791_v38, 0.0  ;;  %v5205_v38 = vld [vmem:[%s5464_s7 + $0x18] sm:$0xff]  ;;  %s6546_s7 = scalar_lea.vmem %s6999_s4, %s5605_s28  ;;  %s7000_s4 = sld [smem:[#allocation24_spill]] }
 0x49d   : > { %v1843_v60 = vadd.f32 %v1842_v21, %v1841_v43 }
 0x49f   : > { %v1845_v18 = vadd.f32 %v1844_v63, %v1843_v60 }
 0x4a1   : > { %v5918_v51 = vadd.f32 %v5202_v47, %v1845_v18 }
 0x4a3   : > { %v1793_v55 = vpop.f32.mrf.mxu1  ;;  %v1871_v49 = vmul.f32 %v5918_v51, %v5918_v51 }
 0x4a4   : > { %v1849_v31 = vsel %vm843_vm0, %v1793_v55, 0.0 }
 0x4a5   : > { %v1850_v57 = vadd.f32 %v1849_v31, %v1848_v53  ;;  %v1875_v52 = vsel %vm843_vm0, %v1871_v49, 0.0 }
 0x4a6   : > { %1876 = vadd.xlane.f32.xlu0 %v1875_v52 }
 0x4a7   : > { %v1852_v2 = vadd.f32 %v1851_v45, %v1850_v57 }
 0x4a9   : > { %v5927_v7 = vadd.f32 %v5203_v6, %v1852_v2 }
 0x4ab   : > { %v1872_v8 = vmul.f32 %v5927_v7, %v5927_v7 }
 0x4ad   : > { %v1878_v56 = vsel %vm843_vm0, %v1872_v8, 0.0  ;;  %v4875_v8 = vld [vmem:[%s6997_s10 + $0x8] sm:$0xff] }
 0x4ae   : > { %1879 = vadd.xlane.f32.xlu1 %v1878_v56  ;;  %1974 = vmatpush.bf16.msra.mxu3 %v4875_v8 }
 0x4cb   : > { %v1834_v59 = vpop.f32.mrf.mxu2 }
 0x4cc   : > { %v1858_v28 = vsel %vm843_vm0, %v1834_v59, 0.0 }
 0x4cf   : > { %v1796_v12 = vpop.f32.mrf.mxu1 }
 0x4d0   : > { %v1856_v26 = vsel %vm843_vm0, %v1796_v12, 0.0  ;;  %v4874_v12 = vld [vmem:[%s6997_s10] sm:$0xff] }
 0x4d1   : > { %1975 = vmatpush.bf16.msra.mxu3 %v4874_v12 }
 0x4d3   : > { %v1836_v16 = vpop.f32.mrf.mxu2 }
 0x4d4   : > { %v1865_v41 = vsel %vm843_vm0, %v1836_v16, 0.0 }
 0x4d7   : > { %v1798_v5 = vpop.f32.mrf.mxu1 }
 0x4d8   : > { %v1863_v48 = vsel %vm843_vm0, %v1798_v5, 0.0 }
 0x4db   : > { %v2287_v22 = vpop.f32.mrf.mxu2 }
 0x4dc   : > { %v1758_v24 = vpop.f32.mrf.mxu0  ;;  %v2297_v60 = vpack.c.bf16 %v2287_v22, %v2287_v22 }
 0x4dd   : > { %v1854_v61 = vsel %vm843_vm0, %v1758_v24, 0.0 }
 0x4de   : > { %v1855_v25 = vadd.f32 %v1854_v61, %v1853_v3  ;;  %v2426_v49 = vunpack.c.l.b16 %v2297_v60 }
 0x4df   : > { %v2252_v4 = vpop.f32.mrf.mxu1 }
 0x4e0   : > { %v1857_v1 = vadd.f32 %v1856_v26, %v1855_v25  ;;  %v5975_v45 = vpack.c.bf16 %v2252_v4, %v2252_v4 }
 0x4e2   : > { %v1859_v10 = vadd.f32 %v1858_v28, %v1857_v1 }
 0x4e3   : > { %v2289_v29 = vpop.f32.mrf.mxu2 }
 0x4e4   : > { %v1760_v30 = vpop.f32.mrf.mxu0  ;;  %v5949_v36 = vadd.f32 %v5204_v35, %v1859_v10  ;;  %v2298_v14 = vpack.c.bf16 %v2289_v29, %v2289_v29 }
 0x4e5   : > { %v1861_v46 = vsel %vm843_vm0, %v1760_v30, 0.0  ;;  %v1939_v30 = vperm.slane %v5889_v9, 1 }
 0x4e6   : > { %v1862_v11 = vadd.f32 %v1861_v46, %v1860_v44  ;;  %v1873_v23 = vmul.f32 %v5949_v36, %v5949_v36  ;;  %v2427_v31 = vunpack.c.l.b16 %v2298_v14 }
 0x4e7   : > { %v2254_v27 = vpop.f32.mrf.mxu1 }
 0x4e8   : > { %v1864_v32 = vadd.f32 %v1863_v48, %v1862_v11  ;;  %v5956_v40 = vpack.c.bf16 %v2254_v27, %v2254_v27  ;;  %v1881_v34 = vsel %vm843_vm0, %v1873_v23, 0.0  ;;  %v2430_v57 = vpack.c.b16 %v2427_v31, %v2426_v49 }
 0x4e9   : > { %1882 = vadd.xlane.f32.xlu0 %v1881_v34  ;;  %v4885_v34 = vld [vmem:[%s6925_s14 + $0x8] sm:$0xff] }
 0x4ea   : > { %v1866_v42 = vadd.f32 %v1865_v41, %v1864_v32  ;;  %2358 = vrot.lane.b32.xlu1 %v5956_v40, %s6995_s9  ;;  %v2439_v52 = vsel %vm1145_vm14, %v2430_v57, 0  ;;  %2319 = vmatpush.bf16.msrb.mxu3 %v4885_v34 }
 0x4eb   : > { %v2292_v43 = vpop.f32.mrf.mxu2 }
 0x4ec   : > { %v5963_v21 = vadd.f32 %v5205_v38, %v1866_v42  ;;  %v2299_v63 = vpack.c.bf16 %v2292_v43, %v2292_v43 }
 0x4ee   : > { %v1874_v54 = vmul.f32 %v5963_v21, %v5963_v21  ;;  %v2428_v47 = vunpack.c.l.b16 %v2299_v63 }
 0x4ef   : > { %v2257_v2 = vpop.f32.mrf.mxu1 }
 0x4f0   : > { %v1884_v50 = vsel %vm843_vm0, %v1874_v54, 0.0  ;;  %v6000_v16 = vpack.c.bf16 %v2257_v2, %v2257_v2 }
 0x4f1   : > { %1885 = vadd.xlane.f32.xlu2 %v1884_v50 }
 0x4f2   : > { %2376 = vrot.lane.b32.xlu1 %v2297_v60, %s6996_s12 }
 0x4f3   : > { %v2294_v18 = vpop.f32.mrf.mxu2 }
 0x4f4   : > { %v2300_v33 = vpack.c.bf16 %v2294_v18, %v2294_v18 }
 0x4f6   : > { %v2429_v39 = vunpack.c.l.b16 %v2300_v33 }
 0x4f7   : > { %v2259_v6 = vpop.f32.mrf.mxu1 }
 0x4f8   : > { %v2431_v53 = vpack.c.b16 %v2429_v39, %v2428_v47  ;;  %v5990_v56 = vpack.c.bf16 %v2259_v6, %v2259_v6  ;;  %v4884_v47 = vld [vmem:[%s6925_s14] sm:$0xff] }
 0x4f9   : > { %2320 = vmatpush.bf16.msrb.mxu3 %v4884_v47 }
 0x4fa   : > { %2386 = vrot.lane.b32.xlu1 %v2298_v14, %s6995_s9  ;;  %v2442_v55 = vsel %vm1145_vm14, %v2431_v53, 0 }
 0x4fb   : > { %2450 = vmatpush.bf16.xpose.msrb.mxu0 %v2442_v55 }
 0x4fd   : > { %2350 = vrot.lane.b32.xlu0 %v5956_v40, %s6996_s12 }
 0x502   : > { %2380 = vrot.lane.b32.xlu1 %v2299_v63, %s6996_s12 }
 0x503   : > { %2451 = vmatpush.bf16.xpose.msrb.mxu0 %v2439_v52 }
 0x505   : > { %2356 = vrot.lane.b32.xlu0 %v5975_v45, %s6995_s9 }
 0x509   : > { %2348 = vrot.lane.b32.xlu2 %v5975_v45, %s6996_s12 }
 0x50a   : > { %2372 = vrot.lane.b32.xlu1 %v2299_v63, %s6989_s2 }
 0x50d   : > { %2384 = vrot.lane.b32.xlu0 %v2297_v60, %s6995_s9 }
 0x511   : > { %2378 = vrot.lane.b32.xlu2 %v2298_v14, %s6996_s12 }
 0x512   : > { %2340 = vrot.lane.b32.xlu1 %v5975_v45, %s6989_s2 }
 0x515   : > { %2382 = vrot.lane.b32.xlu0 %v2300_v33, %s6996_s12 }
 0x519   : > { %v1877_v59 = vpop.xlane.xlu0 %1876  ;;  %2388 = vrot.lane.b32.xlu2 %v2299_v63, %s6995_s9 }
 0x51a   : > { %v1887_v58 = vmul.f32 %v1877_v59, %v5496_v20  ;;  %2354 = vrot.lane.b32.xlu1 %v5990_v56, %s6996_s12 }
 0x51c   : > { %v1891_v13 = vadd.f32 1e-06, %v1887_v58 }
 0x51d   : > { %2390 = vrot.lane.b32.xlu0 %v2300_v33, %s6995_s9 }
 0x51e   : > { %5033 = vrsqrt.f32 %v1891_v13  ;;  %vm1901_vm1 = vweird.f32 %v1891_v13 }
 0x521   : > { %2374 = vrot.lane.b32.xlu2 %v2300_v33, %s6989_s2  ;;  %v1880_v17 = vpop.xlane.xlu1 %1879 }
 0x522   : > { %2344 = vrot.lane.b32.xlu1 %v6000_v16, %s6989_s2  ;;  %v1888_v5 = vmul.f32 %v1880_v17, %v5496_v20 }
 0x524   : > { %v5034_v15 = vpop.eup %5033  ;;  %v1892_v19 = vadd.f32 1e-06, %v1888_v5 }
 0x525   : > { %v1896_v22 = vmul.f32 %v5034_v15, %v1891_v13  ;;  %2370 = vrot.lane.b32.xlu0 %v2298_v14, %s6989_s2  ;;  %vm1902_vm13 = vweird.f32 %v5034_v15 }
 0x526   : > { %5035 = vrsqrt.f32 %v1892_v19  ;;  %vm1903_vm2 = vmor %vm1901_vm1, %vm1902_vm13  ;;  %vm1911_vm4 = vweird.f32 %v1892_v19 }
 0x527   : > { %v1897_v24 = vmul.f32 %v5034_v15, %v1896_v22 }
 0x529   : > { %v1898_v3 = vmul.f32 0.5, %v1897_v24  ;;  %2368 = vrot.lane.b32.xlu2 %v2297_v60, %s6989_s2 }
 0x52b   : > { %v1899_v61 = vsub.f32 1.5, %v1898_v3 }
 0x52c   : > { %v5036_v25 = vpop.eup %5035 }
 0x52d   : > { %v1906_v26 = vmul.f32 %v5036_v25, %v1892_v19  ;;  %2352 = vrot.lane.b32.xlu0 %v6000_v16, %s6996_s12  ;;  %v1900_v4 = vmul.f32 %v5034_v15, %v1899_v61  ;;  %vm1912_vm3 = vweird.f32 %v5036_v25 }
 0x52e   : > { %vm1913_vm5 = vmor %vm1911_vm4, %vm1912_vm3 }
 0x52f   : > { %v1907_v1 = vmul.f32 %v5036_v25, %v1906_v26  ;;  %v1904_v62 = vsel %vm1903_vm2, %v5034_v15, %v1900_v4 }
 0x530   : > { %v1935_v35 = vmul.f32 %v1904_v62, %v5918_v51 }
 0x531   : > { %v1908_v28 = vmul.f32 0.5, %v1907_v1  ;;  %2342 = vrot.lane.b32.xlu2 %v5956_v40, %s6989_s2 }
 0x532   : > { %v1940_v11 = vmul.f32 %v1939_v30, %v1935_v35 }
 0x533   : > { %v1909_v10 = vsub.f32 1.5, %v1908_v28 }
 0x535   : > { %v1910_v29 = vmul.f32 %v5036_v25, %v1909_v10  ;;  %2362 = vrot.lane.b32.xlu0 %v5990_v56, %s6995_s9 }
 0x537   : > { %v1914_v44 = vsel %vm1913_vm5, %v5036_v25, %v1910_v29 }
 0x538   : > { %v1936_v46 = vmul.f32 %v1914_v44, %v5927_v7 }
 0x539   : > { %2360 = vrot.lane.b32.xlu2 %v6000_v16, %s6995_s9 }
 0x53a   : > { %v1941_v23 = vmul.f32 %v1939_v30, %v1936_v46 }
 0x53c   : > { %v1944_v48 = vpack.c.bf16 %v1941_v23, %v1940_v11 }
 0x53e   : > { %4694 = vmatmul.msk.bf16.vlgmr.msra.gmra.mxu3 %vm843_vm0, %v1944_v48 }
 0x541   : > { %2346 = vrot.lane.b32.xlu2 %v5990_v56, %s6989_s2 }
 0x55c   : > { %v6022_v27 = vpop.permute.xlu1 %2358  ;;  %v1883_v9 = vpop.xlane.xlu0 %1882 }
 0x55d   : > { %v1889_v32 = vmul.f32 %v1883_v9, %v5496_v20 }
 0x55f   : > { %v1893_v41 = vadd.f32 1e-06, %v1889_v32 }
 0x561   : > { %5037 = vrsqrt.f32 %v1893_v41  ;;  %vm1921_vm7 = vweird.f32 %v1893_v41 }
 0x564   : > { %v2377_v42 = vpop.permute.xlu1 %2376  ;;  %v1886_v43 = vpop.xlane.xlu2 %1885 }
 0x565   : > { %v1890_v38 = vmul.f32 %v1886_v43, %v5496_v20  ;;  %v2512_v11 = vunpack.c.l.b16 %v2377_v42 }
 0x567   : > { %v5038_v54 = vpop.eup %5037  ;;  %v1894_v60 = vadd.f32 1e-06, %v1890_v38 }
 0x568   : > { %v1916_v63 = vmul.f32 %v5038_v54, %v1893_v41  ;;  %vm1922_vm6 = vweird.f32 %v5038_v54 }
 0x569   : > { %5039 = vrsqrt.f32 %v1894_v60  ;;  %vm1923_vm8 = vmor %vm1921_vm7, %vm1922_vm6  ;;  %vm1931_vm10 = vweird.f32 %v1894_v60 }
 0x56a   : > { %v1917_v50 = vmul.f32 %v5038_v54, %v1916_v63 }
 0x56c   : > { %v1918_v18 = vmul.f32 0.5, %v1917_v50  ;;  %v6029_v33 = vpop.permute.xlu2 %2348  ;;  %v6034_v39 = vpop.permute.xlu1 %2386 }
 0x56d   : > { %v2506_v50 = vunpack.c.l.b16 %v6029_v33 }
 0x56e   : > { %v1919_v14 = vsub.f32 1.5, %v1918_v18 }
 0x56f   : > { %v5040_v53 = vpop.eup %5039  ;;  %v6036_v55 = vpop.permute.xlu0 %2350 }
 0x570   : > { %v1926_v49 = vmul.f32 %v5040_v53, %v1894_v60  ;;  %v1920_v31 = vmul.f32 %v5038_v54, %v1919_v14  ;;  %vm1932_vm9 = vweird.f32 %v5040_v53  ;;  %v2507_v60 = vunpack.c.l.b16 %v6036_v55 }
 0x571   : > { %vm1933_vm11 = vmor %vm1931_vm10, %vm1932_vm9 }
 0x572   : > { %v1927_v57 = vmul.f32 %v5040_v53, %v1926_v49  ;;  %v1924_v8 = vsel %vm1923_vm8, %v5038_v54, %v1920_v31  ;;  %v2556_v54 = vunpack.c.l.b16 %v6034_v39 }
 0x573   : > { %v1937_v13 = vmul.f32 %v1924_v8, %v5949_v36 }
 0x574   : > { %v1928_v52 = vmul.f32 0.5, %v1927_v57  ;;  %v2379_v2 = vpop.permute.xlu2 %2378  ;;  %v2381_v12 = vpop.permute.xlu1 %2380 }
 0x575   : > { %v1942_v19 = vmul.f32 %v1939_v30, %v1937_v13  ;;  %v2514_v62 = vunpack.c.l.b16 %v2381_v12  ;;  %v2513_v44 = vunpack.c.l.b16 %v2379_v2 }
 0x576   : > { %v1929_v6 = vsub.f32 1.5, %v1928_v52 }
 0x577   : > { %v6038_v59 = vpop.permute.xlu0 %2356  ;;  %v2516_v48 = vpack.c.b16 %v2513_v44, %v2512_v11  ;;  %v2421_v11 = vunpack.c.l.b16 %v5956_v40 }
 0x578   : > { %v1930_v58 = vmul.f32 %v5040_v53, %v1929_v6  ;;  %v2549_v13 = vunpack.c.l.b16 %v6038_v59 }
 0x579   : > { %v2525_v43 = vsel %vm1145_vm14, %v2516_v48, 0  ;;  %v2420_v48 = vunpack.c.l.b16 %v5975_v45 }
 0x57a   : > { %v1934_v17 = vsel %vm1933_vm11, %v5040_v53, %v1930_v58  ;;  %v2510_v53 = vpack.c.b16 %v2507_v60, %v2506_v50 }
 0x57b   : > { %v1938_v5 = vmul.f32 %v1934_v17, %v5963_v21 }
 0x57c   : > { %v2389_v15 = vpop.permute.xlu2 %2388  ;;  %v2373_v61 = vpop.permute.xlu1 %2372 }
 0x57d   : > { %v1943_v22 = vmul.f32 %v1939_v30, %v1938_v5  ;;  %v2471_v26 = vunpack.c.l.b16 %v2373_v61  ;;  %v2557_v9 = vunpack.c.l.b16 %v2389_v15  ;;  %v2550_v5 = vunpack.c.l.b16 %v6022_v27 }
 0x57f   : > { %v2385_v24 = vpop.permute.xlu0 %2384  ;;  %v1945_v3 = vpack.c.bf16 %v1943_v22, %v1942_v19  ;;  %v2553_v22 = vpack.c.b16 %v2550_v5, %v2549_v13  ;;  %v6137_v5 = vld [vmem:[%s6080_s8 + $0x18] sm:$0xff] }
 0x580   : > { %v2555_v41 = vunpack.c.l.b16 %v2385_v24 }
 0x581   : > { %4695 = vmatmul.msk.bf16.gmra.mxu3 %vm843_vm0, %v1945_v3 }
 0x582   : > { %v2559_v14 = vpack.c.b16 %v2556_v54, %v2555_v41 }
 0x584   : > { %v2375_v25 = vpop.permute.xlu2 %2374  ;;  %v2568_v57 = vsel %vm1145_vm14, %v2559_v14, 0 }
 0x585   : > { %v2472_v4 = vunpack.c.l.b16 %v2375_v25 }
 0x587   : > { %v2474_v1 = vpack.c.b16 %v2472_v4, %v2471_v26  ;;  %v2383_v28 = vpop.permute.xlu0 %2382 }
 0x588   : > { %v2515_v10 = vunpack.c.l.b16 %v2383_v28 }
 0x589   : > { %v2485_v29 = vsel %vm1145_vm14, %v2474_v1, 0 }
 0x58a   : > { %v2517_v35 = vpack.c.b16 %v2515_v10, %v2514_v62  ;;  %2493 = vmatpush.bf16.xpose.msrb.mxu1 %v2485_v29 }
 0x58c   : > { %v2528_v46 = vsel %vm1145_vm14, %v2517_v35, 0  ;;  %v2369_v30 = vpop.permute.xlu2 %2368 }
 0x58d   : > { %2536 = vmatpush.bf16.xpose.msra.mxu2 %v2528_v46  ;;  %v2469_v18 = vunpack.c.l.b16 %v2369_v30 }
 0x58f   : > { %v2391_v23 = vpop.permute.xlu0 %2390 }
 0x590   : > { %v2558_v32 = vunpack.c.l.b16 %v2391_v23 }
 0x591   : > { %4742 = vmatmul.msk.bf16.vlgmr.msrb.gmra.mxu3 %vm843_vm0, %v5897_v0  ;;  %v2341_v0 = vpop.permute.xlu1 %2340 }
 0x592   : > { %v2560_v34 = vpack.c.b16 %v2558_v32, %v2557_v9  ;;  %v2463_v55 = vunpack.c.l.b16 %v2341_v0  ;;  %v2424_v32 = vpack.c.b16 %v2421_v11, %v2420_v48 }
 0x594   : > { %v2571_v38 = vsel %vm1145_vm14, %v2560_v34, 0  ;;  %v2343_v42 = vpop.permute.xlu2 %2342  ;;  %v6085_v34 = vld [vmem:[%s6080_s8] sm:$0xff] }
 0x595   : > { %2537 = vmatpush.bf16.xpose.msra.mxu2 %v2525_v43  ;;  %2579 = vmatpush.bf16.xpose.msra.mxu3 %v2571_v38  ;;  %v2464_v39 = vunpack.c.l.b16 %v2343_v42  ;;  %v2422_v42 = vunpack.c.l.b16 %v6000_v16 }
 0x597   : > { %v2371_v63 = vpop.permute.xlu0 %2370  ;;  %v2467_v33 = vpack.c.b16 %v2464_v39, %v2463_v55  ;;  %v6110_v39 = vld [vmem:[%s6080_s8 + $0x8] sm:$0xff] }
 0x598   : > { %v2470_v47 = vunpack.c.l.b16 %v2371_v63  ;;  %v2423_v63 = vunpack.c.l.b16 %v5990_v56 }
 0x599   : > { %v2355_v2 = vpop.permute.xlu1 %2354 }
 0x59a   : > { %v2473_v49 = vpack.c.b16 %v2470_v47, %v2469_v18  ;;  %v2509_v58 = vunpack.c.l.b16 %v2355_v2  ;;  %v2425_v0 = vpack.c.b16 %v2423_v63, %v2422_v42 }
 0x59c   : > { %4748 = vmatmul.msk.bf16.vlgmr.msra.gmra.mxu2 %vm1145_vm14, %v2510_v53  ;;  %v2482_v31 = vsel %vm1145_vm14, %v2473_v49, 0  ;;  %v2361_v52 = vpop.permute.xlu2 %2360 }
 0x59d   : > { %2494 = vmatpush.bf16.xpose.msrb.mxu1 %v2482_v31  ;;  %2580 = vmatpush.bf16.xpose.msra.mxu3 %v2568_v57  ;;  %v2551_v25 = vunpack.c.l.b16 %v2361_v52 }
 0x59f   : > { %v2353_v6 = vpop.permute.xlu0 %2352 }
 0x5a0   : > { %v2508_v8 = vunpack.c.l.b16 %v2353_v6  ;;  %v6120_v6 = vld [vmem:[%s6080_s8 + $0x10] sm:$0xff]  ;;  %s4900_s8 = sshll.u32 %s5428_s6, 5 }
 0x5a1   : > { %4743 = vmatmul.msk.bf16.gmra.mxu3 %vm843_vm0, %v5906_v37  ;;  %v2345_v15 = vpop.permute.xlu1 %2344 }
 0x5a2   : > { %v2511_v12 = vpack.c.b16 %v2509_v58, %v2508_v8  ;;  %v2465_v24 = vunpack.c.l.b16 %v2345_v15 }
 0x5a4   : > { %4746 = vmatmul.msk.bf16.vlgmr.msrb.gmra.mxu1 %vm1145_vm14, %v2467_v33  ;;  %v2347_v17 = vpop.permute.xlu2 %2346 }
 0x5a5   : > { %v2466_v19 = vunpack.c.l.b16 %v2347_v17 }
 0x5a7   : > { %v2468_v37 = vpack.c.b16 %v2466_v19, %v2465_v24  ;;  %v2363_v3 = vpop.permute.xlu0 %2362 }
 0x5a8   : > { %v2552_v61 = vunpack.c.l.b16 %v2363_v3 }
 0x5aa   : > { %v2554_v26 = vpack.c.b16 %v2552_v61, %v2551_v25 }
 0x5ac   : > { %4749 = vmatmul.msk.bf16.gmra.mxu2 %vm1145_vm14, %v2511_v12 }
 0x5b1   : > { %4750 = vmatmul.msk.bf16.vlgmr.msra.gmra.mxu3 %vm1145_vm14, %v2553_v22 }
 0x5b4   : > { %4747 = vmatmul.msk.bf16.gmra.mxu1 %vm1145_vm14, %v2468_v37 }
 0x5c1   : > { %v1977_v4 = vpop.f32.mrf.mxu3  ;;  %4751 = vmatmul.msk.bf16.gmra.mxu3 %vm1145_vm14, %v2554_v26 }
 0x5c2   : > { %v1987_v1 = vmax.f32 %v1977_v4, 0.0 }
 0x5c9   : > { %v1979_v59 = vpop.f32.mrf.mxu3 }
 0x5ca   : > { %v1988_v28 = vmax.f32 %v1979_v59, 0.0 }
 0x5cc   : > { %v1991_v27 = vpack.c.bf16 %v1988_v28, %v1987_v1 }
 0x5ce   : > { %4712 = vmatmul.msk.bf16.vlgmr.msra.gmra.mxu0 %vm2025_vm12, %v1991_v27 }
 0x604   : > { %v1982_v62 = vpop.f32.mrf.mxu3 }
 0x605   : > { %v1989_v29 = vmax.f32 %v1982_v62, 0.0 }
 0x60c   : > { %v1984_v10 = vpop.f32.mrf.mxu3 }
 0x60d   : > { %v1990_v35 = vmax.f32 %v1984_v10, 0.0 }
 0x60f   : > { %v1992_v44 = vpack.c.bf16 %v1990_v35, %v1989_v29 }
 0x611   : > { %4713 = vmatmul.msk.bf16.gmra.mxu0 %vm2025_vm12, %v1992_v44 }
 0x614   : > { %v2322_v46 = vpop.f32.mrf.mxu3 }
 0x615   : > { %v6066_v30 = vpack.c.bf16 %v2322_v46, %v2322_v46 }
 0x617   : > { %2412 = vrot.lane.b32.xlu1 %v6066_v30, %s6995_s9  ;;  %2404 = vrot.lane.b32.xlu2 %v6066_v30, %s6996_s12  ;;  %v2794_v56 = vunpack.c.l.b16 %v6066_v30 }
 0x61c   : > { %v2324_v23 = vpop.f32.mrf.mxu3 }
 0x61d   : > { %v6074_v9 = vpack.c.bf16 %v2324_v23, %v2324_v23 }
 0x61f   : > { %2414 = vrot.lane.b32.xlu2 %v6074_v9, %s6995_s9  ;;  %v2539_v38 = vpop.f32.mrf.mxu2  ;;  %v2795_v16 = vunpack.c.l.b16 %v6074_v9 }
 0x620   : > { %v6094_v54 = vadd.f32 %v2539_v38, %v6085_v34 }
 0x621   : > { %4744 = vmatmul.msk.bf16.vlgmr.msrb.gmra.mxu0 %vm1145_vm14, %v2424_v32  ;;  %v2496_v40 = vpop.f32.mrf.mxu1  ;;  %v2798_v31 = vpack.c.b16 %v2795_v16, %v2794_v56 }
 0x622   : > { %v6089_v41 = vadd.f32 %v2496_v40, %v6085_v34  ;;  %v2616_v18 = vsel %vm843_vm0, %v6094_v54, -inf }
 0x624   : > { %v2327_v45 = vpop.f32.mrf.mxu3  ;;  %v2604_v43 = vsel %vm843_vm0, %v6089_v41, -inf }
 0x625   : > { %2605 = vmax.xlane.f32.xlu0 %v2604_v43  ;;  %v6096_v60 = vpack.c.bf16 %v2327_v45, %v2327_v45 }
 0x627   : > { %v2796_v14 = vunpack.c.l.b16 %v6096_v60  ;;  %v2541_v2 = vpop.f32.mrf.mxu2 }
 0x628   : > { %v6126_v58 = vadd.f32 %v2541_v2, %v6110_v39 }
 0x629   : > { %v2498_v57 = vpop.f32.mrf.mxu1 }
 0x62a   : > { %v6113_v55 = vadd.f32 %v2498_v57, %v6110_v39  ;;  %v2619_v13 = vsel %vm843_vm0, %v6126_v58, -inf }
 0x62c   : > { %v2329_v50 = vpop.f32.mrf.mxu3  ;;  %v2607_v33 = vsel %vm843_vm0, %v6113_v55, -inf }
 0x62d   : > { %v6102_v47 = vpack.c.bf16 %v2329_v50, %v2329_v50  ;;  %2617 = vmax.xlane.f32.xlu0 %v2616_v18 }
 0x62f   : > { %v2797_v53 = vunpack.c.l.b16 %v6102_v47  ;;  %v2544_v37 = vpop.f32.mrf.mxu2 }
 0x630   : > { %v6147_v3 = vadd.f32 %v2544_v37, %v6120_v6 }
 0x631   : > { %4745 = vmatmul.msk.bf16.gmra.mxu0 %vm1145_vm14, %v2425_v0  ;;  %v2799_v49 = vpack.c.b16 %v2797_v53, %v2796_v14  ;;  %v2501_v52 = vpop.f32.mrf.mxu1 }
 0x632   : > { %v6123_v8 = vadd.f32 %v2501_v52, %v6120_v6  ;;  %v2622_v4 = vsel %vm843_vm0, %v6147_v3, -inf }
 0x633   : > { %2814 = vmatpush.bf16.msra.mxu0 %v2799_v49 }
 0x634   : > { %v2610_v12 = vsel %vm843_vm0, %v6123_v8, -inf  ;;  %v2582_v22 = vpop.f32.mrf.mxu3 }
 0x635   : > { %v6161_v1 = vadd.f32 %v2582_v22, %v6085_v34 }
 0x637   : > { %2815 = vmatpush.bf16.msra.mxu0 %v2798_v31  ;;  %v2628_v28 = vsel %vm843_vm0, %v6161_v1, -inf  ;;  %v2546_v32 = vpop.f32.mrf.mxu2 }
 0x638   : > { %v6180_v45 = vadd.f32 %v2546_v32, %v6137_v5 }
 0x639   : > { %v2503_v17 = vpop.f32.mrf.mxu1 }
 0x63a   : > { %v6140_v15 = vadd.f32 %v2503_v17, %v6137_v5  ;;  %v2625_v50 = vsel %vm843_vm0, %v6180_v45, -inf }
 0x63c   : > { %v2613_v19 = vsel %vm843_vm0, %v6140_v15, -inf  ;;  %v2584_v24 = vpop.f32.mrf.mxu3 }
 0x63d   : > { %v6193_v14 = vadd.f32 %v2584_v24, %v6110_v39 }
 0x641   : > { %2608 = vmax.xlane.f32.xlu1 %v2607_v33  ;;  %2406 = vrot.lane.b32.xlu0 %v6074_v9, %s6996_s12 }
 0x644   : > { %v2587_v61 = vpop.f32.mrf.mxu3 }
 0x645   : > { %v6150_v25 = vadd.f32 %v2587_v61, %v6120_v6 }
 0x647   : > { %v2634_v59 = vsel %vm843_vm0, %v6150_v25, -inf }
 0x648   : > { %2611 = vmax.xlane.f32.xlu2 %v2610_v12 }
 0x649   : > { %2620 = vmax.xlane.f32.xlu1 %v2619_v13 }
 0x64b   : > { %v6152_v26 = vpop.f32.mrf.mxu0 }
 0x64c   : > { %v2589_v27 = vpop.f32.mrf.mxu3 }
 0x64d   : > { %v6168_v10 = vadd.f32 %v2589_v27, %v6137_v5 }
 0x64f   : > { %v2637_v35 = vsel %vm843_vm0, %v6168_v10, -inf }
 0x653   : > { %v6165_v62 = vpop.f32.mrf.mxu0 }
 0x660   : > { %2408 = vrot.lane.b32.xlu2 %v6096_v60, %s6996_s12 }
 0x662   : > { %2416 = vrot.lane.b32.xlu1 %v6096_v60, %s6995_s9 }
 0x66b   : > { %2614 = vmax.xlane.f32.xlu0 %v2613_v19 }
 0x671   : > { %v2405_v24 = vpop.permute.xlu2 %2404 }
 0x679   : > { %v2415_v37 = vpop.permute.xlu2 %2414 }
 0x67f   : > { %2410 = vrot.lane.b32.xlu0 %v6102_v47, %s6996_s12 }
 0x687   : > { %2418 = vrot.lane.b32.xlu0 %v6102_v47, %s6995_s9 }
 0x689   : > { %2623 = vmax.xlane.f32.xlu2 %v2622_v4  ;;  %v6182_v43 = vpop.permute.xlu1 %2412 }
 0x68c   : > { %2635 = vmax.xlane.f32.xlu1 %v2634_v59 }
 0x68e   : > { %v6172_v44 = vpop.f32.mrf.mxu0 }
 0x691   : > { %2629 = vmax.xlane.f32.xlu2 %v2628_v28 }
 0x696   : > { %v6175_v23 = vpop.f32.mrf.mxu0 }
 0x698   : > { %v2606_v29 = vpop.xlane.xlu0 %2605 }
 0x699   : > { %2638 = vmax.xlane.f32.xlu2 %v2637_v35  ;;  %v2644_v63 = vsub.f32 %v6089_v41, %v2606_v29 }
 0x69b   : > { %v2664_v18 = vmul.f32 1.442695, %v2644_v63 }
 0x69e   : > { %v2453_v42 = vpop.f32.mrf.mxu0 }
 0x6a0   : > { %v2618_v46 = vpop.xlane.xlu0 %2617 }
 0x6a1   : > { %v2648_v11 = vsub.f32 %v6094_v54, %v2618_v46  ;;  %v6188_v54 = vadd.f32 %v2453_v42, %v6085_v34  ;;  %v2631_v34 = vsel %vm843_vm0, %v6193_v14, -inf }
 0x6a3   : > { %v2672_v48 = vmul.f32 1.442695, %v2648_v11  ;;  %v2592_v53 = vsel %vm843_vm0, %v6188_v54, -inf }
 0x6a5   : > { %5041 = vpow2.f32 %v2672_v48  ;;  %v2880_v48 = vunpack.c.l.b16 %v2405_v24 }
 0x6a6   : > { %5043 = vpow2.f32 %v2664_v18  ;;  %v2455_v41 = vpop.f32.mrf.mxu0  ;;  %v2923_v18 = vunpack.c.l.b16 %v6182_v43 }
 0x6a7   : > { %v6219_v22 = vadd.f32 %v2455_v41, %v6110_v39 }
 0x6ab   : > { %v6177_v40 = vpop.eup %5041 }
 0x6ac   : > { %v2712_v38 = vsel %vm843_vm0, %v6177_v40, 0.0  ;;  %v6200_v31 = vpop.eup %5043 }
 0x6ad   : > { %2713 = vadd.xlane.f32.xlu1 %v2712_v38 }
 0x6ae   : > { %v2458_v12 = vpop.f32.mrf.mxu0 }
 0x6af   : > { %v6210_v13 = vadd.f32 %v2458_v12, %v6120_v6  ;;  %v2595_v6 = vsel %vm843_vm0, %v6219_v22, -inf }
 0x6b1   : > { %2626 = vmax.xlane.f32.xlu0 %v2625_v50 }
 0x6b3   : > { %v2407_v61 = vpop.permute.xlu0 %2406 }
 0x6b4   : > { %v2609_v0 = vpop.xlane.xlu1 %2608  ;;  %v2881_v46 = vunpack.c.l.b16 %v2407_v61 }
 0x6b5   : > { %v2645_v49 = vsub.f32 %v6113_v55, %v2609_v0  ;;  %2593 = vmax.xlane.f32.xlu1 %v2592_v53  ;;  %v2700_v55 = vsel %vm843_vm0, %v6200_v31, 0.0 }
 0x6b6   : > { %v2460_v39 = vpop.f32.mrf.mxu0  ;;  %v2884_v38 = vpack.c.b16 %v2881_v46, %v2880_v48 }
 0x6b7   : > { %v2666_v16 = vmul.f32 1.442695, %v2645_v49  ;;  %v2924_v49 = vunpack.c.l.b16 %v2415_v37 }
 0x6b9   : > { %5045 = vpow2.f32 %v2666_v16  ;;  %2632 = vmax.xlane.f32.xlu0 %v2631_v34  ;;  %v2927_v16 = vpack.c.b16 %v2924_v49, %v2923_v18 }
 0x6bb   : > { %v6227_v4 = vpop.xlane.xlu2 %2611 }
 0x6bc   : > { %v2621_v56 = vpop.xlane.xlu1 %2620 }
 0x6bd   : > { %v2649_v57 = vsub.f32 %v6126_v58, %v2621_v56  ;;  %v2598_v58 = vsel %vm843_vm0, %v6210_v13, -inf }
 0x6bf   : > { %v6203_v52 = vpop.eup %5045  ;;  %v2674_v33 = vmul.f32 1.442695, %v2649_v57 }
 0x6c0   : > { %v2703_v2 = vsel %vm843_vm0, %v6203_v52, 0.0 }
 0x6c1   : > { %5047 = vpow2.f32 %v2674_v33  ;;  %2701 = vadd.xlane.f32.xlu0 %v2700_v55  ;;  %2704 = vadd.xlane.f32.xlu2 %v2703_v2 }
 0x6c3   : > { %v2409_v28 = vpop.permute.xlu2 %2408 }
 0x6c4   : > { %v2882_v29 = vunpack.c.l.b16 %v2409_v28 }
 0x6c7   : > { %v6212_v17 = vpop.eup %5047 }
 0x6c8   : > { %v2715_v19 = vsel %vm843_vm0, %v6212_v17, 0.0 }
 0x6c9   : > { %2599 = vmax.xlane.f32.xlu0 %v2598_v58  ;;  %2716 = vadd.xlane.f32.xlu2 %v2715_v19 }
 0x6ce   : > { %2402 = vrot.lane.b32.xlu1 %v6102_v47, %s6989_s2  ;;  %v6232_v47 = vadd.f32 %v2460_v39, %v6137_v5 }
 0x6d1   : > { %2596 = vmax.xlane.f32.xlu2 %v2595_v6 }
 0x6d4   : > { %v2417_v32 = vpop.permute.xlu1 %2416 }
 0x6d5   : > { %v2925_v63 = vunpack.c.l.b16 %v2417_v32 }
 0x6dd   : > { %2400 = vrot.lane.b32.xlu0 %v6096_v60, %s6989_s2  ;;  %v2601_v60 = vsel %vm843_vm0, %v6232_v47, -inf }
 0x6de   : > { %v6229_v59 = vpop.xlane.xlu0 %2614 }
 0x6f1   : > { %v2411_v27 = vpop.permute.xlu0 %2410 }
 0x6f2   : > { %v2883_v35 = vunpack.c.l.b16 %v2411_v27 }
 0x6f4   : > { %v2885_v11 = vpack.c.b16 %v2883_v35, %v2882_v29 }
 0x6f6   : > { %2900 = vmatpush.bf16.msrb.mxu2 %v2885_v11 }
 0x6f8   : > { %2602 = vmax.xlane.f32.xlu1 %v2601_v60 }
 0x6f9   : > { %v2419_v42 = vpop.permute.xlu0 %2418 }
 0x6fa   : > { %v2926_v50 = vunpack.c.l.b16 %v2419_v42  ;;  %2901 = vmatpush.bf16.msrb.mxu2 %v2884_v38 }
 0x6fc   : > { %v2928_v0 = vpack.c.b16 %v2926_v50, %v2925_v63  ;;  %v2624_v53 = vpop.xlane.xlu2 %2623 }
 0x6fd   : > { %v2650_v5 = vsub.f32 %v6147_v3, %v2624_v53 }
 0x6fe   : > { %2943 = vmatpush.bf16.msrb.mxu3 %v2928_v0 }
 0x6ff   : > { %v2676_v41 = vmul.f32 1.442695, %v2650_v5  ;;  %v2636_v19 = vpop.xlane.xlu1 %2635 }
 0x700   : > { %v2654_v29 = vsub.f32 %v6150_v25, %v2636_v19 }
 0x701   : > { %5049 = vpow2.f32 %v2676_v41 }
 0x702   : > { %2944 = vmatpush.bf16.msrb.mxu3 %v2927_v16  ;;  %v2684_v32 = vmul.f32 1.442695, %v2654_v29 }
 0x704   : > { %v2630_v34 = vpop.xlane.xlu2 %2629 }
 0x705   : > { %v2652_v56 = vsub.f32 %v6161_v1, %v2630_v34 }
 0x707   : > { %v6239_v57 = vpop.eup %5049  ;;  %v2680_v33 = vmul.f32 1.442695, %v2652_v56 }
 0x708   : > { %v2718_v55 = vsel %vm843_vm0, %v6239_v57, 0.0 }
 0x709   : > { %5051 = vpow2.f32 %v2680_v33  ;;  %2719 = vadd.xlane.f32.xlu0 %v2718_v55 }
 0x70c   : > { %v2639_v43 = vpop.xlane.xlu2 %2638 }
 0x70d   : > { %v2655_v3 = vsub.f32 %v6168_v10, %v2639_v43 }
 0x70f   : > { %v6244_v2 = vpop.eup %5051  ;;  %v2686_v12 = vmul.f32 1.442695, %v2655_v3 }
 0x710   : > { %v2724_v58 = vsel %vm843_vm0, %v6244_v2, 0.0 }
 0x711   : > { %5053 = vpow2.f32 %v2686_v12  ;;  %2725 = vadd.xlane.f32.xlu0 %v2724_v58 }
 0x717   : > { %v6248_v1 = vpop.eup %5053 }
 0x718   : > { %v2733_v6 = vsel %vm843_vm0, %v6248_v1, 0.0 }
 0x719   : > { %2734 = vadd.xlane.f32.xlu0 %v2733_v6 }
 0x720   : > { %v2714_v24 = vpop.xlane.xlu1 %2713 }
 0x724   : > { %v2627_v37 = vpop.xlane.xlu0 %2626 }
 0x725   : > { %v2651_v61 = vsub.f32 %v6180_v45, %v2627_v37 }
 0x727   : > { %v2678_v10 = vmul.f32 1.442695, %v2651_v61 }
 0x728   : > { %v2594_v28 = vpop.xlane.xlu1 %2593 }
 0x729   : > { %5055 = vpow2.f32 %v2678_v10  ;;  %v2640_v39 = vsub.f32 %v6188_v54, %v2594_v28 }
 0x72b   : > { %v2656_v27 = vmul.f32 1.442695, %v2640_v39 }
 0x72c   : > { %v2633_v35 = vpop.xlane.xlu0 %2632 }
 0x72d   : > { %v2653_v46 = vsub.f32 %v6193_v14, %v2633_v35  ;;  %5057 = vpow2.f32 %v2656_v27 }
 0x72f   : > { %v6256_v11 = vpop.eup %5055  ;;  %v2682_v48 = vmul.f32 1.442695, %v2653_v46 }
 0x730   : > { %v2721_v60 = vsel %vm843_vm0, %v6256_v11, 0.0 }
 0x731   : > { %5059 = vpow2.f32 %v2682_v48  ;;  %2722 = vadd.xlane.f32.xlu2 %v2721_v60 }
 0x732   : > { %5061 = vpow2.f32 %v2684_v32  ;;  %v2647_v32 = vsub.f32 %v6140_v15, %v6229_v59 }
 0x733   : > { %v6260_v54 = vpop.eup %5057 }
 0x734   : > { %v2702_v45 = vpop.xlane.xlu0 %2701  ;;  %v2705_v38 = vpop.xlane.xlu2 %2704  ;;  %v2688_v42 = vsel %vm843_vm0, %v6260_v54, 0.0  ;;  %v2670_v60 = vmul.f32 1.442695, %v2647_v32 }
 0x735   : > { %5063 = vrcp.f32 %v2702_v45 }
 0x736   : > { %5065 = vrcp.f32 %v2705_v38 }
 0x737   : > { %v6262_v25 = vpop.eup %5059  ;;  %5067 = vrcp.f32 %v2714_v24 }
 0x738   : > { %v2727_v14 = vsel %vm843_vm0, %v6262_v25, 0.0  ;;  %v6268_v63 = vpop.eup %5061 }
 0x739   : > { %2728 = vadd.xlane.f32.xlu1 %v2727_v14  ;;  %2689 = vadd.xlane.f32.xlu2 %v2688_v42  ;;  %v2730_v3 = vsel %vm843_vm0, %v6268_v63, 0.0  ;;  %v2646_v14 = vsub.f32 %v6123_v8, %v6227_v4  ;;  %v6314_v8 = vadd.f32 %v6165_v62, %v5927_v7  ;;  %v6333_v62 = vadd.f32 %v6175_v23, %v5963_v21 }
 0x73b   : > { %v5064_v50 = vpop.eup %5063 }
 0x73c   : > { %v5066_v18 = vpop.eup %5065  ;;  %v2756_v0 = vmul.f32 %v5064_v50, %v6200_v31  ;;  %v2600_v53 = vpop.xlane.xlu0 %2599  ;;  %v2668_v50 = vmul.f32 1.442695, %v2646_v14 }
 0x73d   : > { %v2717_v5 = vpop.xlane.xlu2 %2716  ;;  %v5068_v49 = vpop.eup %5067  ;;  %v2757_v41 = vmul.f32 %v5066_v18, %v6203_v52  ;;  %v2642_v16 = vsub.f32 %v6210_v13, %v2600_v53 }
 0x73e   : > { %5069 = vrcp.f32 %v2717_v5  ;;  %v2772_v34 = vpack.c.bf16 %v2756_v0, %v2756_v0  ;;  %v2760_v55 = vmul.f32 %v5068_v49, %v6177_v40  ;;  %v6322_v0 = vadd.f32 %v6172_v44, %v5949_v36 }
 0x73f   : > { %v2773_v56 = vpack.c.bf16 %v2757_v41, %v2757_v41  ;;  %v2660_v33 = vmul.f32 1.442695, %v2642_v16  ;;  %v6327_v5 = vadd.f32 %v6152_v26, %v5918_v51  ;;  %v2058_v41 = vmul.f32 %v6333_v62, %v6333_v62 }
 0x740   : > { %v6274_v43 = vunpack.c.l.b16 %v2772_v34  ;;  %v2776_v13 = vpack.c.bf16 %v2760_v55, %v2760_v55  ;;  %v2403_v27 = vpop.permute.xlu1 %2402  ;;  %v2057_v7 = vmul.f32 %v6322_v0, %v6322_v0 }
 0x741   : > { %v6278_v12 = vunpack.c.l.b16 %v2773_v56  ;;  %5071 = vpow2.f32 %v2660_v33  ;;  %2731 = vadd.xlane.f32.xlu1 %v2730_v3  ;;  %v2840_v35 = vunpack.c.l.b16 %v2403_v27  ;;  %v2055_v36 = vmul.f32 %v6327_v5, %v6327_v5 }
 0x742   : > { %v2874_v61 = vunpack.c.l.b16 %v2776_v13  ;;  %v2065_v49 = vsel %vm843_vm0, %v2057_v7, 0.0  ;;  %v2068_v51 = vsel %vm843_vm0, %v2058_v41, 0.0 }
 0x743   : > { %v2835_v52 = vpack.c.b16 %v6278_v12, %v6274_v43  ;;  %v2059_v44 = vsel %vm843_vm0, %v2055_v36, 0.0 }
 0x744   : > { %v5070_v31 = vpop.eup %5069 }
 0x745   : > { %v2761_v58 = vmul.f32 %v5070_v31, %v6212_v17  ;;  %v2597_v19 = vpop.xlane.xlu2 %2596 }
 0x746   : > { %v2641_v6 = vsub.f32 %v6219_v22, %v2597_v19 }
 0x747   : > { %v2777_v40 = vpack.c.bf16 %v2761_v58, %v2761_v58  ;;  %v6284_v24 = vpop.eup %5071 }
 0x748   : > { %v2658_v37 = vmul.f32 1.442695, %v2641_v6  ;;  %v2694_v28 = vsel %vm843_vm0, %v6284_v24, 0.0 }
 0x749   : > { %v2875_v10 = vunpack.c.l.b16 %v2777_v40  ;;  %2695 = vadd.xlane.f32.xlu0 %v2694_v28 }
 0x74a   : > { %5073 = vpow2.f32 %v2658_v37 }
 0x74b   : > { %v2878_v39 = vpack.c.b16 %v2875_v10, %v2874_v61  ;;  %5075 = vpow2.f32 %v2670_v60 }
 0x74d   : > { %4756 = vmatmul.msk.bf16.vlgmr.msrb.gmra.mxu2 %vm843_vm0, %v2878_v39 }
 0x74f   : > { %v2401_v17 = vpop.permute.xlu0 %2400 }
 0x750   : > { %v6289_v29 = vpop.eup %5073  ;;  %v2839_v22 = vunpack.c.l.b16 %v2401_v17 }
 0x751   : > { %v2691_v46 = vsel %vm843_vm0, %v6289_v29, 0.0  ;;  %2396 = vrot.lane.b32.xlu2 %v6066_v30, %s6989_s2  ;;  %v6302_v30 = vpop.eup %5075 }
 0x752   : > { %2692 = vadd.xlane.f32.xlu1 %v2691_v46  ;;  %v2842_v48 = vpack.c.b16 %v2840_v35, %v2839_v22  ;;  %v2223_v35 = vld [vmem:[%s6926_s15 + $0x8] sm:$0xf] }
 0x753   : > { %v3065_v46 = vsel %vm1702_vm15, %v2223_v35, 0 }
 0x754   : > { %2857 = vmatpush.bf16.msra.mxu1 %v2842_v48  ;;  %3074 = vmatpush.bf16.msra.mxu2 %v3065_v46 }
 0x76b   : > { %2398 = vrot.lane.b32.xlu1 %v6074_v9, %s6989_s2  ;;  %v2603_v45 = vpop.xlane.xlu1 %2602  ;;  %v2709_v9 = vsel %vm843_vm0, %v6302_v30, 0.0 }
 0x76c   : > { %v2643_v38 = vsub.f32 %v6232_v47, %v2603_v45  ;;  %v2056_v47 = vmul.f32 %v6314_v8, %v6314_v8 }
 0x76e   : > { %v2662_v42 = vmul.f32 1.442695, %v2643_v38  ;;  %v2062_v53 = vsel %vm843_vm0, %v2056_v47, 0.0 }
 0x770   : > { %5077 = vpow2.f32 %v2662_v42 }
 0x771   : > { %5079 = vpow2.f32 %v2668_v50 }
 0x776   : > { %v6304_v18 = vpop.eup %5077 }
 0x777   : > { %v2697_v15 = vsel %vm843_vm0, %v6304_v18, 0.0  ;;  %v6310_v59 = vpop.eup %5079 }
 0x778   : > { %2698 = vadd.xlane.f32.xlu0 %v2697_v15  ;;  %v2706_v4 = vsel %vm843_vm0, %v6310_v59, 0.0 }
 0x77a   : > { %2710 = vadd.xlane.f32.xlu2 %v2709_v9 }
 0x77c   : > { %v2720_v26 = vpop.xlane.xlu0 %2719 }
 0x77d   : > { %5081 = vrcp.f32 %v2720_v26 }
 0x780   : > { %2707 = vadd.xlane.f32.xlu0 %v2706_v4 }
 0x783   : > { %v5082_v21 = vpop.eup %5081 }
 0x784   : > { %v2726_v23 = vpop.xlane.xlu0 %2725  ;;  %v2762_v34 = vmul.f32 %v5082_v21, %v6239_v57 }
 0x786   : > { %v2778_v33 = vpack.c.bf16 %v2762_v34, %v2762_v34 }
 0x788   : > { %2063 = vadd.xlane.f32.xlu0 %v2062_v53  ;;  %v2876_v58 = vunpack.c.l.b16 %v2778_v33 }
 0x78c   : > { %v2735_v57 = vpop.xlane.xlu0 %2734 }
 0x790   : > { %2066 = vadd.xlane.f32.xlu0 %v2065_v49 }
 0x795   : > { %2060 = vadd.xlane.f32.xlu1 %v2059_v44 }
 0x798   : > { %2069 = vadd.xlane.f32.xlu0 %v2068_v51 }
 0x7a4   : > { %v2723_v16 = vpop.xlane.xlu2 %2722 }
 0x7a5   : > { %5083 = vrcp.f32 %v2723_v16 }
 0x7a6   : > { %5085 = vrcp.f32 %v2726_v23 }
 0x7ab   : > { %v5084_v56 = vpop.eup %5083 }
 0x7ac   : > { %v2763_v55 = vmul.f32 %v5084_v56, %v6256_v11  ;;  %v2729_v3 = vpop.xlane.xlu1 %2728  ;;  %v5086_v31 = vpop.eup %5085 }
 0x7ad   : > { %5087 = vrcp.f32 %v2729_v3  ;;  %v2764_v6 = vmul.f32 %v5086_v31, %v6244_v2  ;;  %v2690_v22 = vpop.xlane.xlu2 %2689 }
 0x7ae   : > { %v2779_v13 = vpack.c.bf16 %v2763_v55, %v2763_v55 }
 0x7af   : > { %v2780_v10 = vpack.c.bf16 %v2764_v6, %v2764_v6 }
 0x7b0   : > { %v2877_v19 = vunpack.c.l.b16 %v2779_v13 }
 0x7b1   : > { %v2917_v11 = vunpack.c.l.b16 %v2780_v10 }
 0x7b2   : > { %v2879_v40 = vpack.c.b16 %v2877_v19, %v2876_v58 }
 0x7b3   : > { %v5088_v37 = vpop.eup %5087 }
 0x7b4   : > { %4757 = vmatmul.msk.bf16.gmra.mxu2 %vm843_vm0, %v2879_v40  ;;  %v2732_v61 = vpop.xlane.xlu1 %2731  ;;  %v2765_v28 = vmul.f32 %v5088_v37, %v6262_v25 }
 0x7b5   : > { %5089 = vrcp.f32 %v2732_v61  ;;  %v2397_v26 = vpop.permute.xlu2 %2396 }
 0x7b6   : > { %v2781_v39 = vpack.c.bf16 %v2765_v28, %v2765_v28  ;;  %5091 = vrcp.f32 %v2735_v57  ;;  %v2837_v34 = vunpack.c.l.b16 %v2397_v26 }
 0x7b7   : > { %5093 = vrcp.f32 %v2690_v22 }
 0x7b8   : > { %v2918_v27 = vunpack.c.l.b16 %v2781_v39 }
 0x7ba   : > { %v2921_v17 = vpack.c.b16 %v2918_v27, %v2917_v11 }
 0x7bb   : > { %v5090_v2 = vpop.eup %5089 }
 0x7bc   : > { %4758 = vmatmul.msk.bf16.vlgmr.msrb.gmra.mxu3 %vm843_vm0, %v2921_v17  ;;  %v5092_v48 = vpop.eup %5091  ;;  %v2766_v25 = vmul.f32 %v5090_v2, %v6268_v63  ;;  %v2696_v33 = vpop.xlane.xlu0 %2695 }
 0x7bd   : > { %v2767_v32 = vmul.f32 %v5092_v48, %v6248_v1  ;;  %v5094_v38 = vpop.eup %5093 }
 0x7be   : > { %v2782_v60 = vpack.c.bf16 %v2766_v25, %v2766_v25  ;;  %v2752_v50 = vmul.f32 %v5094_v38, %v6260_v54  ;;  %v4890_v38 = vld [vmem:[%s6929_s18] sm:$0xff] }
 0x7bf   : > { %v2783_v14 = vpack.c.bf16 %v2767_v32, %v2767_v32  ;;  %v4891_v32 = vld [vmem:[%s6929_s18 + $0x8] sm:$0xff] }
 0x7c0   : > { %v2919_v42 = vunpack.c.l.b16 %v2782_v60  ;;  %v2768_v47 = vpack.c.bf16 %v2752_v50, %v2752_v50  ;;  %3347 = vmatpush.bf16.msrb.mxu2 %v4891_v32 }
 0x7c1   : > { %v2920_v15 = vunpack.c.l.b16 %v2783_v14 }
 0x7c2   : > { %v2788_v49 = vunpack.c.l.b16 %v2768_v47 }
 0x7c3   : > { %v2922_v4 = vpack.c.b16 %v2920_v15, %v2919_v42 }
 0x7c4   : > { %3348 = vmatpush.bf16.msrb.mxu2 %v4890_v38 }
 0x7c5   : > { %v2693_v45 = vpop.xlane.xlu1 %2692 }
 0x7c6   : > { %5095 = vrcp.f32 %v2693_v45 }
 0x7c7   : > { %5097 = vrcp.f32 %v2696_v33 }
 0x7cc   : > { %v5096_v9 = vpop.eup %5095  ;;  %4759 = vmatmul.msk.bf16.gmra.mxu3 %vm843_vm0, %v2922_v4 }
 0x7cd   : > { %v2753_v53 = vmul.f32 %v5096_v9, %v6289_v29  ;;  %v5098_v3 = vpop.eup %5097 }
 0x7ce   : > { %v2754_v13 = vmul.f32 %v5098_v3, %v6284_v24 }
 0x7cf   : > { %v2769_v7 = vpack.c.bf16 %v2753_v53, %v2753_v53 }
 0x7d0   : > { %v2903_v63 = vpop.f32.mrf.mxu2  ;;  %v2770_v19 = vpack.c.bf16 %v2754_v13, %v2754_v13 }
 0x7d1   : > { %v2789_v1 = vunpack.c.l.b16 %v2769_v7  ;;  %v2964_v44 = vpack.c.bf16 %v2903_v63, %v2903_v63 }
 0x7d2   : > { %v2790_v10 = vunpack.c.l.b16 %v2770_v19 }
 0x7d3   : > { %v2792_v36 = vpack.c.b16 %v2789_v1, %v2788_v49  ;;  %v3052_v54 = vunpack.c.l.b16 %v2964_v44  ;;  %v2221_v1 = vld [vmem:[%s6926_s15] sm:$0xf] }
 0x7d4   : > { %v2989_v44 = vsel %vm1702_vm15, %v2221_v1, 0 }
 0x7d5   : > { %4752 = vmatmul.msk.bf16.vlgmr.msra.gmra.mxu0 %vm843_vm0, %v2792_v36 }
 0x7d6   : > { %2998 = vmatpush.bf16.msrb.mxu0 %v2989_v44 }
 0x7d8   : > { %v2905_v41 = vpop.f32.mrf.mxu2 }
 0x7d9   : > { %v2965_v51 = vpack.c.bf16 %v2905_v41, %v2905_v41  ;;  %v2222_v41 = vld [vmem:[%s6926_s15 + $0x4] sm:$0xf] }
 0x7db   : > { %v3053_v16 = vunpack.c.l.b16 %v2965_v51 }
 0x7dd   : > { %v3056_v21 = vpack.c.b16 %v3053_v16, %v3052_v54  ;;  %v2399_v23 = vpop.permute.xlu1 %2398  ;;  %v3027_v54 = vsel %vm1702_vm15, %v2222_v41, 0 }
 0x7de   : > { %v2838_v56 = vunpack.c.l.b16 %v2399_v23 }
 0x7df   : > { %4764 = vmatmul.msk.bf16.vlgmr.msra.gmra.mxu2 %vm1145_vm14, %v3056_v21 }
 0x7e0   : > { %v2841_v29 = vpack.c.b16 %v2838_v56, %v2837_v34 }
 0x7e2   : > { %2858 = vmatpush.bf16.msra.mxu1 %v2841_v29 }
 0x7e5   : > { %4754 = vmatmul.msk.bf16.vlgmr.msra.gmra.mxu1 %vm843_vm0, %v2835_v52 }
 0x7e6   : > { %3036 = vmatpush.bf16.msrb.mxu1 %v3027_v54 }
 0x7eb   : > { %v2699_v55 = vpop.xlane.xlu0 %2698 }
 0x7ec   : > { %5099 = vrcp.f32 %v2699_v55 }
 0x7ed   : > { %v2711_v31 = vpop.xlane.xlu2 %2710 }
 0x7ee   : > { %5101 = vrcp.f32 %v2711_v31 }
 0x7f2   : > { %v5100_v58 = vpop.eup %5099 }
 0x7f3   : > { %v2755_v6 = vmul.f32 %v5100_v58, %v6304_v18  ;;  %v2708_v40 = vpop.xlane.xlu0 %2707 }
 0x7f4   : > { %v5102_v37 = vpop.eup %5101  ;;  %5103 = vrcp.f32 %v2708_v40 }
 0x7f5   : > { %v2771_v61 = vpack.c.bf16 %v2755_v6, %v2755_v6  ;;  %v2759_v12 = vmul.f32 %v5102_v37, %v6302_v30 }
 0x7f7   : > { %v2791_v43 = vunpack.c.l.b16 %v2771_v61  ;;  %v2775_v28 = vpack.c.bf16 %v2759_v12, %v2759_v12 }
 0x7f9   : > { %v2793_v52 = vpack.c.b16 %v2791_v43, %v2790_v10  ;;  %v2834_v11 = vunpack.c.l.b16 %v2775_v28 }
 0x7fa   : > { %v5104_v57 = vpop.eup %5103 }
 0x7fb   : > { %v2758_v39 = vmul.f32 %v5104_v57, %v6310_v59  ;;  %4753 = vmatmul.msk.bf16.gmra.mxu0 %vm843_vm0, %v2793_v52  ;;  %v2064_v18 = vpop.xlane.xlu0 %2063  ;;  %v2224_v59 = vld [vmem:[%s6926_s15 + $0xc] sm:$0xf] }
 0x7fc   : > { %v2072_v22 = vmul.f32 %v2064_v18, %v5496_v20  ;;  %v3103_v25 = vsel %vm1702_vm15, %v2224_v59, 0 }
 0x7fd   : > { %v2774_v24 = vpack.c.bf16 %v2758_v39, %v2758_v39  ;;  %3112 = vmatpush.bf16.msra.mxu3 %v3103_v25 }
 0x7fe   : > { %v2076_v48 = vadd.f32 1e-06, %v2072_v22 }
 0x7ff   : > { %v2833_v27 = vunpack.c.l.b16 %v2774_v24 }
 0x800   : > { %vm2095_vm4 = vweird.f32 %v2076_v48 }
 0x801   : > { %v2836_v17 = vpack.c.b16 %v2834_v11, %v2833_v27  ;;  %v6404_v11 = vld [vmem:[%s6987_s1] sm:$0xff] }
 0x802   : > { %v2123_v27 = vperm.slane %v6404_v11, 2 }
 0x803   : > { %4755 = vmatmul.msk.bf16.gmra.mxu1 %vm843_vm0, %v2836_v17  ;;  %v2067_v30 = vpop.xlane.xlu0 %2066 }
 0x804   : > { %v2073_v15 = vmul.f32 %v2067_v30, %v5496_v20 }
 0x806   : > { %v6385_v7 = vadd.f32 1e-06, %v2073_v15 }
 0x808   : > { %v2061_v35 = vpop.xlane.xlu1 %2060  ;;  %vm2105_vm10 = vweird.f32 %v6385_v7 }
 0x809   : > { %v2071_v2 = vmul.f32 %v2061_v35, %v5496_v20 }
 0x80b   : > { %v2075_v46 = vadd.f32 1e-06, %v2071_v2  ;;  %v2070_v60 = vpop.xlane.xlu0 %2069 }
 0x80c   : > { %v2074_v42 = vmul.f32 %v2070_v60, %v5496_v20 }
 0x80d   : > { %5105 = vrsqrt.f32 %v2075_v46  ;;  %vm2085_vm2 = vweird.f32 %v2075_v46 }
 0x80e   : > { %5107 = vrsqrt.f32 %v2076_v48  ;;  %v6383_v47 = vadd.f32 1e-06, %v2074_v42 }
 0x810   : > { %5109 = vrsqrt.f32 %v6383_v47  ;;  %vm2115_vm8 = vweird.f32 %v6383_v47 }
 0x811   : > { %5111 = vrsqrt.f32 %v6385_v7 }
 0x813   : > { %v5106_v45 = vpop.eup %5105 }
 0x814   : > { %v5108_v14 = vpop.eup %5107  ;;  %v2080_v50 = vmul.f32 %v5106_v45, %v2075_v46  ;;  %vm2086_vm13 = vweird.f32 %v5106_v45 }
 0x815   : > { %v2090_v9 = vmul.f32 %v5108_v14, %v2076_v48  ;;  %vm2096_vm1 = vweird.f32 %v5108_v14  ;;  %vm2087_vm3 = vmor %vm2085_vm2, %vm2086_vm13 }
 0x816   : > { %v2081_v53 = vmul.f32 %v5106_v45, %v2080_v50  ;;  %v5110_v34 = vpop.eup %5109  ;;  %vm2097_vm5 = vmor %vm2095_vm4, %vm2096_vm1 }
 0x817   : > { %v2091_v63 = vmul.f32 %v5108_v14, %v2090_v9  ;;  %v5112_v55 = vpop.eup %5111  ;;  %v2110_v13 = vmul.f32 %v5110_v34, %v6383_v47  ;;  %vm2116_vm6 = vweird.f32 %v5110_v34 }
 0x818   : > { %v2082_v49 = vmul.f32 0.5, %v2081_v53  ;;  %v2100_v19 = vmul.f32 %v5112_v55, %v6385_v7  ;;  %vm2106_vm7 = vweird.f32 %v5112_v55  ;;  %vm2117_vm9 = vmor %vm2115_vm8, %vm2116_vm6 }
 0x819   : > { %v2092_v51 = vmul.f32 0.5, %v2091_v63  ;;  %v2111_v61 = vmul.f32 %v5110_v34, %v2110_v13  ;;  %vm2107_vm11 = vmor %vm2105_vm10, %vm2106_vm7 }
 0x81a   : > { %v2083_v23 = vsub.f32 1.5, %v2082_v49  ;;  %v2101_v12 = vmul.f32 %v5112_v55, %v2100_v19 }
 0x81b   : > { %v2093_v33 = vsub.f32 1.5, %v2092_v51  ;;  %v2112_v39 = vmul.f32 0.5, %v2111_v61 }
 0x81c   : > { %v2084_v31 = vmul.f32 %v5106_v45, %v2083_v23  ;;  %v2102_v18 = vmul.f32 0.5, %v2101_v12  ;;  %v4888_v23 = vld [vmem:[%s6928_s17] sm:$0xff] }
 0x81d   : > { %v2094_v58 = vmul.f32 %v5108_v14, %v2093_v33  ;;  %v2113_v22 = vsub.f32 1.5, %v2112_v39 }
 0x81e   : > { %v2088_v37 = vsel %vm2087_vm3, %v5106_v45, %v2084_v31 }
 0x81f   : > { %v2098_v43 = vsel %vm2097_vm5, %v5108_v14, %v2094_v58  ;;  %v2119_v28 = vmul.f32 %v2088_v37, %v6327_v5  ;;  %v2103_v5 = vsub.f32 1.5, %v2102_v18  ;;  %v2114_v59 = vmul.f32 %v5110_v34, %v2113_v22  ;;  %v5207_v22 = vld [vmem:[%s5810_s27] sm:$0xff] }
 0x820   : > { %v2120_v17 = vmul.f32 %v2098_v43, %v6314_v8 }
 0x821   : > { %v2124_v35 = vmul.f32 %v2123_v27, %v2119_v28  ;;  %v2104_v25 = vmul.f32 %v5112_v55, %v2103_v5  ;;  %v2118_v45 = vsel %vm2117_vm9, %v5110_v34, %v2114_v59 }
 0x822   : > { %v2125_v46 = vmul.f32 %v2123_v27, %v2120_v17 }
 0x823   : > { %v2108_v50 = vsel %vm2107_vm11, %v5112_v55, %v2104_v25 }
 0x824   : > { %v2128_v48 = vpack.c.bf16 %v2125_v46, %v2124_v35  ;;  %v2121_v47 = vmul.f32 %v2108_v50, %v6322_v0  ;;  %v4889_v0 = vld [vmem:[%s6928_s17 + $0x8] sm:$0xff] }
 0x825   : > { %3312 = vmatpush.bf16.msra.mxu1 %v4889_v0 }
 0x826   : > { %v2126_v44 = vmul.f32 %v2123_v27, %v2121_v47 }
 0x829   : > { %3313 = vmatpush.bf16.msra.mxu1 %v4888_v23 }
 0x837   : > { %v2908_v4 = vpop.f32.mrf.mxu2 }
 0x838   : > { %v2966_v36 = vpack.c.bf16 %v2908_v4, %v2908_v4  ;;  %v2122_v4 = vmul.f32 %v2118_v45, %v6333_v62 }
 0x83a   : > { %v3054_v56 = vunpack.c.l.b16 %v2966_v36  ;;  %v2127_v7 = vmul.f32 %v2123_v27, %v2122_v4 }
 0x83c   : > { %v2129_v41 = vpack.c.bf16 %v2127_v7, %v2126_v44 }
 0x83f   : > { %v2910_v26 = vpop.f32.mrf.mxu2  ;;  %v2946_v21 = vpop.f32.mrf.mxu3 }
 0x840   : > { %v2967_v16 = vpack.c.bf16 %v2910_v26, %v2910_v26  ;;  %v2968_v6 = vpack.c.bf16 %v2946_v21, %v2946_v21 }
 0x842   : > { %v3055_v29 = vunpack.c.l.b16 %v2967_v16  ;;  %v3090_v52 = vunpack.c.l.b16 %v2968_v6 }
 0x844   : > { %v3057_v3 = vpack.c.b16 %v3055_v29, %v3054_v56 }
 0x846   : > { %4765 = vmatmul.msk.bf16.gmra.mxu2 %vm1145_vm14, %v3057_v3 }
 0x847   : > { %v2948_v40 = vpop.f32.mrf.mxu3 }
 0x848   : > { %v2969_v10 = vpack.c.bf16 %v2948_v40, %v2948_v40 }
 0x84a   : > { %v3091_v57 = vunpack.c.l.b16 %v2969_v10 }
 0x84c   : > { %v3094_v24 = vpack.c.b16 %v3091_v57, %v3090_v52 }
 0x84e   : > { %4766 = vmatmul.msk.bf16.vlgmr.msra.gmra.mxu3 %vm1145_vm14, %v3094_v24 }
 0x84f   : > { %v2951_v2 = vpop.f32.mrf.mxu3 }
 0x850   : > { %v2970_v32 = vpack.c.bf16 %v2951_v2, %v2951_v2 }
 0x852   : > { %v2817_v30 = vpop.f32.mrf.mxu0  ;;  %v3092_v15 = vunpack.c.l.b16 %v2970_v32 }
 0x853   : > { %v2956_v8 = vpack.c.bf16 %v2817_v30, %v2817_v30 }
 0x855   : > { %v2976_v53 = vunpack.c.l.b16 %v2956_v8 }
 0x856   : > { %4796 = vmatmul.msk.bf16.vlgmr.msrb.gmra.mxu2 %vm843_vm0, %v2128_v48 }
 0x857   : > { %v2953_v60 = vpop.f32.mrf.mxu3 }
 0x858   : > { %v2971_v38 = vpack.c.bf16 %v2953_v60, %v2953_v60 }
 0x85a   : > { %v2819_v14 = vpop.f32.mrf.mxu0  ;;  %v3093_v9 = vunpack.c.l.b16 %v2971_v38 }
 0x85b   : > { %v2957_v42 = vpack.c.bf16 %v2819_v14, %v2819_v14 }
 0x85c   : > { %v3095_v49 = vpack.c.b16 %v3093_v9, %v3092_v15 }
 0x85d   : > { %v2977_v63 = vunpack.c.l.b16 %v2957_v42  ;;  %v5208_v42 = vld [vmem:[%s5810_s27 + $0x8] sm:$0xff] }
 0x85e   : > { %4767 = vmatmul.msk.bf16.gmra.mxu3 %vm1145_vm14, %v3095_v49 }
 0x85f   : > { %v2980_v1 = vpack.c.b16 %v2977_v63, %v2976_v53 }
 0x861   : > { %4760 = vmatmul.msk.bf16.vlgmr.msrb.gmra.mxu0 %vm1145_vm14, %v2980_v1 }
 0x862   : > { %v2860_v36 = vpop.f32.mrf.mxu1  ;;  %v3076_v43 = vpop.f32.mrf.mxu2 }
 0x863   : > { %v2960_v51 = vpack.c.bf16 %v2860_v36, %v2860_v36  ;;  %v3127_v24 = vsel %vm843_vm0, %v3076_v43, 0.0 }
 0x865   : > { %v3014_v62 = vunpack.c.l.b16 %v2960_v51 }
 0x866   : > { %4797 = vmatmul.msk.bf16.gmra.mxu2 %vm843_vm0, %v2129_v41 }
 0x86a   : > { %v2862_v26 = vpop.f32.mrf.mxu1  ;;  %v3078_v2 = vpop.f32.mrf.mxu2 }
 0x86b   : > { %v2961_v54 = vpack.c.bf16 %v2862_v26, %v2862_v26  ;;  %v3134_v8 = vsel %vm843_vm0, %v3078_v2, 0.0 }
 0x86d   : > { %v3015_v16 = vunpack.c.l.b16 %v2961_v54 }
 0x86f   : > { %v3018_v21 = vpack.c.b16 %v3015_v16, %v3014_v62  ;;  %v5209_v62 = vld [vmem:[%s5810_s27 + $0x10] sm:$0xff] }
 0x871   : > { %4762 = vmatmul.msk.bf16.vlgmr.msrb.gmra.mxu1 %vm1145_vm14, %v3018_v21 }
 0x878   : > { %v2822_v34 = vpop.f32.mrf.mxu0 }
 0x879   : > { %v2958_v56 = vpack.c.bf16 %v2822_v34, %v2822_v34 }
 0x87b   : > { %v2978_v3 = vunpack.c.l.b16 %v2958_v56 }
 0x880   : > { %v2824_v29 = vpop.f32.mrf.mxu0  ;;  %v2865_v33 = vpop.f32.mrf.mxu1 }
 0x881   : > { %v2959_v55 = vpack.c.bf16 %v2824_v29, %v2824_v29  ;;  %v2962_v58 = vpack.c.bf16 %v2865_v33, %v2865_v33 }
 0x883   : > { %v2979_v31 = vunpack.c.l.b16 %v2959_v55  ;;  %v3016_v40 = vunpack.c.l.b16 %v2962_v58 }
 0x885   : > { %v2981_v13 = vpack.c.b16 %v2979_v31, %v2978_v3 }
 0x887   : > { %4761 = vmatmul.msk.bf16.gmra.mxu0 %vm1145_vm14, %v2981_v13 }
 0x888   : > { %v2867_v19 = vpop.f32.mrf.mxu1 }
 0x889   : > { %v2963_v6 = vpack.c.bf16 %v2867_v19, %v2867_v19  ;;  %v5210_v19 = vld [vmem:[%s5810_s27 + $0x18] sm:$0xff] }
 0x88b   : > { %v3017_v37 = vunpack.c.l.b16 %v2963_v6 }
 0x88d   : > { %v3019_v61 = vpack.c.b16 %v3017_v37, %v3016_v40 }
 0x88f   : > { %4763 = vmatmul.msk.bf16.gmra.mxu1 %vm1145_vm14, %v3019_v61 }
 0x89f   : > { %4786 = vmatmul.msk.bf16.vlgmr.msra.gmra.mxu1 %vm843_vm0, %v2128_v48 }
 0x8af   : > { %4787 = vmatmul.msk.bf16.gmra.mxu1 %vm843_vm0, %v2129_v41 }
 0x8c9   : > { %v3081_v4 = vpop.f32.mrf.mxu2 }
 0x8ca   : > { %v3141_v36 = vsel %vm843_vm0, %v3081_v4, 0.0  ;;  %v4887_v4 = vld [vmem:[%s6927_s16 + $0x8] sm:$0xff] }
 0x8cb   : > { %3271 = vmatpush.bf16.msra.mxu0 %v4887_v4 }
 0x8d1   : > { %v3114_v12 = vpop.f32.mrf.mxu3  ;;  %v3083_v44 = vpop.f32.mrf.mxu2 }
 0x8d2   : > { %v3129_v17 = vsel %vm843_vm0, %v3114_v12, 0.0  ;;  %v3148_v33 = vsel %vm843_vm0, %v3083_v44, 0.0 }
 0x8d9   : > { %v3116_v59 = vpop.f32.mrf.mxu3  ;;  %v3350_v13 = vpop.f32.mrf.mxu2 }
 0x8da   : > { %v3136_v38 = vsel %vm843_vm0, %v3116_v59, 0.0 }
 0x8de   : > { %v3000_v10 = vpop.f32.mrf.mxu0 }
 0x8df   : > { %v3124_v57 = vsel %vm843_vm0, %v3000_v10, 0.0 }
 0x8e1   : > { %v3119_v63 = vpop.f32.mrf.mxu3  ;;  %v3352_v10 = vpop.f32.mrf.mxu2 }
 0x8e2   : > { %v3143_v51 = vsel %vm843_vm0, %v3119_v63, 0.0 }
 0x8e6   : > { %v3002_v18 = vpop.f32.mrf.mxu0 }
 0x8e7   : > { %v3131_v5 = vsel %vm843_vm0, %v3002_v18, 0.0 }
 0x8e9   : > { %v3121_v34 = vpop.f32.mrf.mxu3 }
 0x8ea   : > { %v3150_v31 = vsel %vm843_vm0, %v3121_v34, 0.0 }
 0x8ee   : > { %v3038_v52 = vpop.f32.mrf.mxu1 }
 0x8ef   : > { %v3125_v28 = vsel %vm843_vm0, %v3038_v52, 0.0 }
 0x8f0   : > { %v3126_v39 = vadd.f32 %v3125_v28, %v3124_v57  ;;  %v3355_v57 = vpop.f32.mrf.mxu2 }
 0x8f2   : > { %v3128_v27 = vadd.f32 %v3127_v24, %v3126_v39 }
 0x8f4   : > { %v3130_v35 = vadd.f32 %v3129_v17, %v3128_v27 }
 0x8f6   : > { %v6433_v30 = vadd.f32 %v5207_v22, %v3130_v35  ;;  %v3040_v46 = vpop.f32.mrf.mxu1 }
 0x8f7   : > { %v3132_v48 = vsel %vm843_vm0, %v3040_v46, 0.0 }
 0x8f8   : > { %v3133_v25 = vadd.f32 %v3132_v48, %v3131_v5  ;;  %v3156_v32 = vmul.f32 %v6433_v30, %v6433_v30  ;;  %v3357_v35 = vpop.f32.mrf.mxu2  ;;  %v6475_v48 = vpack.c.bf16 %v3355_v57, %v3355_v57 }
 0x8f9   : > { %v6472_v22 = vpack.c.bf16 %v3357_v35, %v3357_v35 }
 0x8fa   : > { %v3135_v60 = vadd.f32 %v3134_v8, %v3133_v25  ;;  %v3160_v45 = vsel %vm843_vm0, %v3156_v32, 0.0  ;;  %v6478_v25 = vpack.c.bf16 %v3352_v10, %v3352_v10 }
 0x8fb   : > { %3161 = vadd.xlane.f32.xlu0 %v3160_v45  ;;  %v3825_v32 = vunpack.c.l.b16 %v6472_v22  ;;  %v3824_v45 = vunpack.c.l.b16 %v6475_v48 }
 0x8fc   : > { %v3137_v14 = vadd.f32 %v3136_v38, %v3135_v60  ;;  %v6483_v60 = vpack.c.bf16 %v3350_v13, %v3350_v13 }
 0x8fe   : > { %v6443_v50 = vadd.f32 %v5208_v42, %v3137_v14  ;;  %v3827_v14 = vpack.c.b16 %v3825_v32, %v3824_v45  ;;  %v3823_v42 = vunpack.c.l.b16 %v6478_v25 }
 0x900   : > { %v3157_v15 = vmul.f32 %v6443_v50, %v6443_v50 }
 0x902   : > { %v3163_v9 = vsel %vm843_vm0, %v3157_v15, 0.0  ;;  %v3822_v15 = vunpack.c.l.b16 %v6483_v60 }
 0x903   : > { %3164 = vadd.xlane.f32.xlu0 %v3163_v9 }
 0x904   : > { %v3005_v53 = vpop.f32.mrf.mxu0  ;;  %v3826_v9 = vpack.c.b16 %v3823_v42, %v3822_v15 }
 0x905   : > { %v3138_v47 = vsel %vm843_vm0, %v3005_v53, 0.0 }
 0x90c   : > { %v3043_v49 = vpop.f32.mrf.mxu1  ;;  %v3007_v26 = vpop.f32.mrf.mxu0 }
 0x90d   : > { %v3139_v1 = vsel %vm843_vm0, %v3043_v49, 0.0  ;;  %v3145_v0 = vsel %vm843_vm0, %v3007_v26, 0.0  ;;  %v4886_v49 = vld [vmem:[%s6927_s16] sm:$0xff] }
 0x90e   : > { %v3140_v7 = vadd.f32 %v3139_v1, %v3138_v47  ;;  %3272 = vmatpush.bf16.msra.mxu0 %v4886_v49 }
 0x910   : > { %v3142_v41 = vadd.f32 %v3141_v36, %v3140_v7 }
 0x912   : > { %v3144_v54 = vadd.f32 %v3143_v51, %v3142_v41 }
 0x914   : > { %v6453_v16 = vadd.f32 %v5209_v62, %v3144_v54  ;;  %v3045_v21 = vpop.f32.mrf.mxu1 }
 0x915   : > { %v3146_v23 = vsel %vm843_vm0, %v3045_v21, 0.0 }
 0x916   : > { %v3147_v56 = vadd.f32 %v3146_v23, %v3145_v0  ;;  %v3158_v29 = vmul.f32 %v6453_v16, %v6453_v16 }
 0x918   : > { %v3149_v55 = vadd.f32 %v3148_v33, %v3147_v56  ;;  %v3166_v3 = vsel %vm843_vm0, %v3158_v29, 0.0 }
 0x919   : > { %3167 = vadd.xlane.f32.xlu2 %v3166_v3 }
 0x91a   : > { %v3151_v58 = vadd.f32 %v3150_v31, %v3149_v55  ;;  %v3224_v55 = vperm.slane %v6404_v11, 4 }
 0x91c   : > { %v6463_v6 = vadd.f32 %v5210_v19, %v3151_v58  ;;  %v3315_v40 = vpop.f32.mrf.mxu1 }
 0x91d   : > { %v3325_v28 = vpack.c.bf16 %v3315_v40, %v3315_v40 }
 0x91e   : > { %v3159_v37 = vmul.f32 %v6463_v6, %v6463_v6 }
 0x91f   : > { %v3454_v59 = vunpack.c.l.b16 %v3325_v28 }
 0x920   : > { %v3169_v61 = vsel %vm843_vm0, %v3159_v37, 0.0 }
 0x921   : > { %3170 = vadd.xlane.f32.xlu0 %v3169_v61 }
 0x924   : > { %v3317_v43 = vpop.f32.mrf.mxu1 }
 0x925   : > { %v3326_v24 = vpack.c.bf16 %v3317_v43, %v3317_v43 }
 0x927   : > { %v3455_v5 = vunpack.c.l.b16 %v3326_v24 }
 0x929   : > { %v3458_v8 = vpack.c.b16 %v3455_v5, %v3454_v59 }
 0x92b   : > { %v3467_v38 = vsel %vm1145_vm14, %v3458_v8, 0 }
 0x92c   : > { %v3320_v12 = vpop.f32.mrf.mxu1 }
 0x92d   : > { %v3327_v52 = vpack.c.bf16 %v3320_v12, %v3320_v12 }
 0x92f   : > { %3416 = vrot.lane.b32.xlu1 %v3327_v52, %s6995_s9  ;;  %v3456_v17 = vunpack.c.l.b16 %v3327_v52 }
 0x934   : > { %v3322_v39 = vpop.f32.mrf.mxu1 }
 0x935   : > { %v3328_v27 = vpack.c.bf16 %v3322_v39, %v3322_v39  ;;  %3412 = vrot.lane.b32.xlu0 %v3325_v28, %s6995_s9 }
 0x937   : > { %3414 = vrot.lane.b32.xlu1 %v3326_v24, %s6995_s9  ;;  %3418 = vrot.lane.b32.xlu2 %v3328_v27, %s6995_s9  ;;  %v3457_v18 = vunpack.c.l.b16 %v3328_v27 }
 0x939   : > { %v3459_v2 = vpack.c.b16 %v3457_v18, %v3456_v17 }
 0x93b   : > { %v3470_v46 = vsel %vm1145_vm14, %v3459_v2, 0 }
 0x93c   : > { %3478 = vmatpush.bf16.xpose.msrb.mxu3 %v3470_v46 }
 0x93d   : > { %3402 = vrot.lane.b32.xlu0 %v3328_v27, %s6989_s2 }
 0x93f   : > { %3410 = vrot.lane.b32.xlu1 %v3328_v27, %s6996_s12  ;;  %3400 = vrot.lane.b32.xlu2 %v3327_v52, %s6989_s2 }
 0x944   : > { %3479 = vmatpush.bf16.xpose.msrb.mxu3 %v3467_v38 }
 0x945   : > { %3408 = vrot.lane.b32.xlu0 %v3327_v52, %s6996_s12 }
 0x947   : > { %3404 = vrot.lane.b32.xlu1 %v3325_v28, %s6996_s12  ;;  %3396 = vrot.lane.b32.xlu2 %v3325_v28, %s6989_s2 }
 0x94c   : > { %3842 = vmatpush.bf16.msra.mxu3 %v3827_v14 }
 0x94d   : > { %3398 = vrot.lane.b32.xlu0 %v3326_v24, %s6989_s2 }
 0x94f   : > { %3406 = vrot.lane.b32.xlu2 %v3326_v24, %s6996_s12 }
 0x950   : > { %3843 = vmatpush.bf16.msra.mxu3 %v3826_v9 }
 0x96e   : > { %v3162_v53 = vpop.xlane.xlu0 %3161 }
 0x96f   : > { %v3172_v63 = vmul.f32 %v3162_v53, %v5496_v20 }
 0x971   : > { %v3176_v47 = vadd.f32 1e-06, %v3172_v63 }
 0x973   : > { %5113 = vrsqrt.f32 %v3176_v47  ;;  %vm3186_vm1 = vweird.f32 %v3176_v47 }
 0x976   : > { %v3165_v1 = vpop.xlane.xlu0 %3164 }
 0x977   : > { %v3173_v7 = vmul.f32 %v3165_v1, %v5496_v20 }
 0x979   : > { %v5114_v36 = vpop.eup %5113  ;;  %v3177_v44 = vadd.f32 1e-06, %v3173_v7 }
 0x97a   : > { %v3181_v41 = vmul.f32 %v5114_v36, %v3176_v47  ;;  %vm3187_vm13 = vweird.f32 %v5114_v36 }
 0x97b   : > { %5115 = vrsqrt.f32 %v3177_v44  ;;  %vm3188_vm2 = vmor %vm3186_vm1, %vm3187_vm13  ;;  %vm3196_vm4 = vweird.f32 %v3177_v44 }
 0x97c   : > { %v3182_v51 = vmul.f32 %v5114_v36, %v3181_v41 }
 0x97e   : > { %v3183_v26 = vmul.f32 0.5, %v3182_v51 }
 0x980   : > { %v3184_v54 = vsub.f32 1.5, %v3183_v26 }
 0x981   : > { %v5116_v62 = vpop.eup %5115 }
 0x982   : > { %v3191_v21 = vmul.f32 %v5116_v62, %v3177_v44  ;;  %v3185_v0 = vmul.f32 %v5114_v36, %v3184_v54  ;;  %vm3197_vm3 = vweird.f32 %v5116_v62 }
 0x983   : > { %vm3198_vm5 = vmor %vm3196_vm4, %vm3197_vm3 }
 0x984   : > { %v3192_v23 = vmul.f32 %v5116_v62, %v3191_v21  ;;  %v3189_v56 = vsel %vm3188_vm2, %v5114_v36, %v3185_v0 }
 0x985   : > { %v3220_v3 = vmul.f32 %v3189_v56, %v6433_v30 }
 0x986   : > { %v3193_v34 = vmul.f32 0.5, %v3192_v23 }
 0x987   : > { %v3225_v40 = vmul.f32 %v3224_v55, %v3220_v3 }
 0x988   : > { %v3194_v29 = vsub.f32 1.5, %v3193_v34 }
 0x98a   : > { %v3195_v33 = vmul.f32 %v5116_v62, %v3194_v29 }
 0x98c   : > { %v3199_v31 = vsel %vm3198_vm5, %v5116_v62, %v3195_v33  ;;  %v3168_v58 = vpop.xlane.xlu2 %3167 }
 0x98d   : > { %v3221_v13 = vmul.f32 %v3199_v31, %v6443_v50  ;;  %v3174_v19 = vmul.f32 %v3168_v58, %v5496_v20 }
 0x98f   : > { %v3226_v37 = vmul.f32 %v3224_v55, %v3221_v13  ;;  %v3178_v61 = vadd.f32 1e-06, %v3174_v19 }
 0x991   : > { %v3229_v10 = vpack.c.bf16 %v3226_v37, %v3225_v40  ;;  %5117 = vrsqrt.f32 %v3178_v61  ;;  %vm3206_vm7 = vweird.f32 %v3178_v61 }
 0x993   : > { %4776 = vmatmul.msk.bf16.vlgmr.msra.gmra.mxu0 %vm843_vm0, %v3229_v10 }
 0x994   : > { %v3171_v43 = vpop.xlane.xlu0 %3170  ;;  %v3419_v24 = vpop.permute.xlu2 %3418 }
 0x995   : > { %v3175_v12 = vmul.f32 %v3171_v43, %v5496_v20  ;;  %v3586_v35 = vunpack.c.l.b16 %v3419_v24 }
 0x997   : > { %v5118_v11 = vpop.eup %5117  ;;  %v3179_v52 = vadd.f32 1e-06, %v3175_v12 }
 0x998   : > { %v3201_v57 = vmul.f32 %v5118_v11, %v3178_v61  ;;  %vm3207_vm6 = vweird.f32 %v5118_v11 }
 0x999   : > { %5119 = vrsqrt.f32 %v3179_v52  ;;  %vm3208_vm8 = vmor %vm3206_vm7, %vm3207_vm6  ;;  %vm3216_vm10 = vweird.f32 %v3179_v52 }
 0x99a   : > { %v3202_v28 = vmul.f32 %v5118_v11, %v3201_v57 }
 0x99c   : > { %v3203_v39 = vmul.f32 0.5, %v3202_v28  ;;  %v3401_v42 = vpop.permute.xlu2 %3400 }
 0x99d   : > { %v3499_v54 = vunpack.c.l.b16 %v3401_v42 }
 0x99e   : > { %v3204_v27 = vsub.f32 1.5, %v3203_v39 }
 0x99f   : > { %v5120_v17 = vpop.eup %5119 }
 0x9a0   : > { %v3211_v18 = vmul.f32 %v5120_v17, %v3179_v52  ;;  %v3205_v46 = vmul.f32 %v5118_v11, %v3204_v27  ;;  %vm3217_vm9 = vweird.f32 %v5120_v17 }
 0x9a1   : > { %v3417_v2 = vpop.permute.xlu1 %3416  ;;  %vm3218_vm11 = vmor %vm3216_vm10, %vm3217_vm9 }
 0x9a2   : > { %v3212_v5 = vmul.f32 %v5120_v17, %v3211_v18  ;;  %v3585_v59 = vunpack.c.l.b16 %v3417_v2  ;;  %v3209_v45 = vsel %vm3208_vm8, %v5118_v11, %v3205_v46 }
 0x9a3   : > { %v3222_v4 = vmul.f32 %v3209_v45, %v6453_v16 }
 0x9a4   : > { %v3213_v32 = vmul.f32 0.5, %v3212_v5  ;;  %v3588_v8 = vpack.c.b16 %v3586_v35, %v3585_v59  ;;  %v3397_v21 = vpop.permute.xlu2 %3396 }
 0x9a5   : > { %v3227_v36 = vmul.f32 %v3224_v55, %v3222_v4  ;;  %v3497_v37 = vunpack.c.l.b16 %v3397_v21 }
 0x9a6   : > { %v3214_v38 = vsub.f32 1.5, %v3213_v32  ;;  %v3599_v14 = vsel %vm1145_vm14, %v3588_v8, 0 }
 0x9a7   : > { %v3413_v15 = vpop.permute.xlu0 %3412  ;;  %3607 = vmatpush.bf16.xpose.msra.mxu2 %v3599_v14 }
 0x9a8   : > { %v3215_v9 = vmul.f32 %v5120_v17, %v3214_v38  ;;  %v3583_v49 = vunpack.c.l.b16 %v3413_v15 }
 0x9a9   : > { %v3415_v53 = vpop.permute.xlu1 %3414 }
 0x9aa   : > { %v3219_v63 = vsel %vm3218_vm11, %v5120_v17, %v3215_v9  ;;  %v3584_v47 = vunpack.c.l.b16 %v3415_v53 }
 0x9ab   : > { %v3223_v1 = vmul.f32 %v3219_v63, %v6463_v6 }
 0x9ac   : > { %v3587_v7 = vpack.c.b16 %v3584_v47, %v3583_v49  ;;  %v3407_v31 = vpop.permute.xlu2 %3406 }
 0x9ad   : > { %v3228_v44 = vmul.f32 %v3224_v55, %v3223_v1  ;;  %v3541_v19 = vunpack.c.l.b16 %v3407_v31 }
 0x9ae   : > { %v3596_v41 = vsel %vm1145_vm14, %v3587_v7, 0 }
 0x9af   : > { %v3403_v51 = vpop.permute.xlu0 %3402  ;;  %3608 = vmatpush.bf16.xpose.msra.mxu2 %v3596_v41  ;;  %v3230_v26 = vpack.c.bf16 %v3228_v44, %v3227_v36  ;;  %v831_v41 = vld [vmem:[%s6546_s7] sm:$0xff] }
 0x9b0   : > { %v3500_v62 = vunpack.c.l.b16 %v3403_v51 }
 0x9b1   : > { %4777 = vmatmul.msk.bf16.gmra.mxu0 %vm843_vm0, %v3230_v26  ;;  %v3411_v0 = vpop.permute.xlu1 %3410 }
 0x9b2   : > { %v3502_v23 = vpack.c.b16 %v3500_v62, %v3499_v54  ;;  %v3543_v29 = vunpack.c.l.b16 %v3411_v0 }
 0x9b4   : > { %v3513_v34 = vsel %vm1145_vm14, %v3502_v23, 0 }
 0x9b5   : > { %3521 = vmatpush.bf16.xpose.msrb.mxu0 %v3513_v34 }
 0x9b7   : > { %v3409_v56 = vpop.permute.xlu0 %3408 }
 0x9b8   : > { %v3542_v33 = vunpack.c.l.b16 %v3409_v56  ;;  %v832_v56 = vld [vmem:[%s6546_s7 + $0x8] sm:$0xff] }
 0x9b9   : > { %v3405_v3 = vpop.permute.xlu1 %3404 }
 0x9ba   : > { %v3545_v55 = vpack.c.b16 %v3543_v29, %v3542_v33  ;;  %v3540_v13 = vunpack.c.l.b16 %v3405_v3 }
 0x9bc   : > { %v3556_v58 = vsel %vm1145_vm14, %v3545_v55, 0  ;;  %v3544_v61 = vpack.c.b16 %v3541_v19, %v3540_v13 }
 0x9bd   : > { %3564 = vmatpush.bf16.xpose.msrb.mxu1 %v3556_v58 }
 0x9be   : > { %v3553_v11 = vsel %vm1145_vm14, %v3544_v61, 0 }
 0x9bf   : > { %v3399_v40 = vpop.permute.xlu0 %3398 }
 0x9c0   : > { %v3498_v10 = vunpack.c.l.b16 %v3399_v40 }
 0x9c2   : > { %v3501_v43 = vpack.c.b16 %v3498_v10, %v3497_v37 }
 0x9c4   : > { %v3510_v12 = vsel %vm1145_vm14, %v3501_v43, 0 }
 0x9c5   : > { %3522 = vmatpush.bf16.xpose.msrb.mxu0 %v3510_v12  ;;  %3565 = vmatpush.bf16.xpose.msrb.mxu1 %v3553_v11 }
 0xa10   : > { %v3274_v52 = vpop.f32.mrf.mxu0 }
 0xa11   : > { %v3284_v57 = vpack.c.bf16 %v3274_v52, %v3274_v52 }
 0xa13   : > { %3384 = vrot.lane.b32.xlu1 %v3284_v57, %s6995_s9  ;;  %3368 = vrot.lane.b32.xlu0 %v3284_v57, %s6989_s2  ;;  %v3448_v24 = vunpack.c.l.b16 %v3284_v57 }
 0xa14   : > { %3376 = vrot.lane.b32.xlu2 %v3284_v57, %s6996_s12 }
 0xa18   : > { %v3276_v28 = vpop.f32.mrf.mxu0 }
 0xa19   : > { %v3285_v39 = vpack.c.bf16 %v3276_v28, %v3276_v28 }
 0xa1b   : > { %v3449_v27 = vunpack.c.l.b16 %v3285_v39  ;;  %3370 = vrot.lane.b32.xlu1 %v3285_v39, %s6989_s2  ;;  %3378 = vrot.lane.b32.xlu0 %v3285_v39, %s6996_s12 }
 0xa1c   : > { %3386 = vrot.lane.b32.xlu2 %v3285_v39, %s6995_s9 }
 0xa1d   : > { %v3452_v17 = vpack.c.b16 %v3449_v27, %v3448_v24 }
 0xa1f   : > { %4798 = vmatmul.msk.bf16.vlgmr.msrb.gmra.mxu3 %vm1145_vm14, %v3452_v17 }
 0xa2e   : > { %v3279_v18 = vpop.f32.mrf.mxu0 }
 0xa2f   : > { %v3286_v35 = vpack.c.bf16 %v3279_v18, %v3279_v18  ;;  %v833_v18 = vld [vmem:[%s6546_s7 + $0x10] sm:$0xff] }
 0xa31   : > { %3388 = vrot.lane.b32.xlu1 %v3286_v35, %s6995_s9  ;;  %3372 = vrot.lane.b32.xlu0 %v3286_v35, %s6989_s2  ;;  %v3450_v5 = vunpack.c.l.b16 %v3286_v35 }
 0xa36   : > { %v3281_v2 = vpop.f32.mrf.mxu0 }
 0xa37   : > { %v3287_v46 = vpack.c.bf16 %v3281_v2, %v3281_v2 }
 0xa39   : > { %v3451_v59 = vunpack.c.l.b16 %v3287_v46  ;;  %3374 = vrot.lane.b32.xlu1 %v3287_v46, %s6989_s2  ;;  %3382 = vrot.lane.b32.xlu0 %v3287_v46, %s6996_s12 }
 0xa3a   : > { %3390 = vrot.lane.b32.xlu2 %v3287_v46, %s6995_s9 }
 0xa3b   : > { %v3453_v32 = vpack.c.b16 %v3451_v59, %v3450_v5  ;;  %v6567_v5 = vld [vmem:[%s6546_s7 + $0x18] sm:$0xff]  ;;  %s4503_s7 = scalar_lea.hbm %s7000_s4, %s4900_s8 }
 0xa3d   : > { %4799 = vmatmul.msk.bf16.gmra.mxu3 %vm1145_vm14, %v3453_v32 }
 0xa41   : > { %3446 = vrot.lane.b32.xlu1 %v6472_v22, %s6995_s9  ;;  %3444 = vrot.lane.b32.xlu0 %v6475_v48, %s6995_s9 }
 0xa42   : > { %3380 = vrot.lane.b32.xlu2 %v3286_v35, %s6996_s12 }
 0xa49   : > { %3440 = vrot.lane.b32.xlu0 %v6483_v60, %s6995_s9 }
 0xa4a   : > { %3442 = vrot.lane.b32.xlu2 %v6478_v25, %s6995_s9  ;;  %s5232_s9 = scalar_lea.hbm %s7000_s4, 64 }
 0xa6e   : > { %v3377_v8 = vpop.permute.xlu2 %3376 }
 0xa6f   : > { %v3534_v63 = vunpack.c.l.b16 %v3377_v8 }
 0xa76   : > { %v3387_v45 = vpop.permute.xlu2 %3386 }
 0xa77   : > { %v3578_v42 = vunpack.c.l.b16 %v3387_v45 }
 0xa85   : > { %v3385_v38 = vpop.permute.xlu1 %3384  ;;  %v3369_v14 = vpop.permute.xlu0 %3368 }
 0xa86   : > { %v3577_v15 = vunpack.c.l.b16 %v3385_v38  ;;  %v3491_v49 = vunpack.c.l.b16 %v3369_v14 }
 0xa88   : > { %v3581_v9 = vpack.c.b16 %v3578_v42, %v3577_v15 }
 0xa8a   : > { %4804 = vmatmul.msk.bf16.vlgmr.msra.gmra.mxu2 %vm1145_vm14, %v3581_v9 }
 0xa8d   : > { %v3371_v4 = vpop.permute.xlu1 %3370  ;;  %v3379_v53 = vpop.permute.xlu0 %3378 }
 0xa8e   : > { %v3492_v47 = vunpack.c.l.b16 %v3371_v4  ;;  %v3535_v1 = vunpack.c.l.b16 %v3379_v53 }
 0xa90   : > { %v3495_v7 = vpack.c.b16 %v3492_v47, %v3491_v49  ;;  %v3538_v36 = vpack.c.b16 %v3535_v1, %v3534_v63 }
 0xa92   : > { %4800 = vmatmul.msk.bf16.vlgmr.msrb.gmra.mxu0 %vm1145_vm14, %v3495_v7  ;;  %4802 = vmatmul.msk.bf16.vlgmr.msrb.gmra.mxu1 %vm1145_vm14, %v3538_v36 }
 0xa94   : > { %v3391_v44 = vpop.permute.xlu2 %3390 }
 0xa95   : > { %v3580_v21 = vunpack.c.l.b16 %v3391_v44 }
 0xa9c   : > { %v3381_v29 = vpop.permute.xlu2 %3380 }
 0xa9d   : > { %v3536_v55 = vunpack.c.l.b16 %v3381_v29 }
 0xaa2   : > { %v3481_v51 = vpop.f32.mrf.mxu3 }
 0xaa3   : > { %v6549_v26 = vadd.f32 %v3481_v51, %v831_v41  ;;  %v3389_v54 = vpop.permute.xlu1 %3388  ;;  %v3373_v62 = vpop.permute.xlu0 %3372 }
 0xaa4   : > { %v3579_v0 = vunpack.c.l.b16 %v3389_v54  ;;  %v3493_v58 = vunpack.c.l.b16 %v3373_v62  ;;  %v3443_v28 = vpop.permute.xlu2 %3442 }
 0xaa5   : > { %v3620_v23 = vsel %vm843_vm0, %v6549_v26, -inf  ;;  %v3952_v24 = vunpack.c.l.b16 %v3443_v28 }
 0xaa6   : > { %3621 = vmax.xlane.f32.xlu1 %v3620_v23  ;;  %v3582_v34 = vpack.c.b16 %v3580_v21, %v3579_v0 }
 0xaa8   : > { %4805 = vmatmul.msk.bf16.gmra.mxu2 %vm1145_vm14, %v3582_v34 }
 0xaaa   : > { %v3483_v33 = vpop.f32.mrf.mxu3 }
 0xaab   : > { %v6555_v3 = vadd.f32 %v3483_v33, %v832_v56  ;;  %v3375_v31 = vpop.permute.xlu1 %3374  ;;  %v3383_v13 = vpop.permute.xlu0 %3382 }
 0xaac   : > { %v3494_v19 = vunpack.c.l.b16 %v3375_v31  ;;  %v3537_v40 = vunpack.c.l.b16 %v3383_v13 }
 0xaad   : > { %v3623_v37 = vsel %vm843_vm0, %v6555_v3, -inf }
 0xaae   : > { %3624 = vmax.xlane.f32.xlu2 %v3623_v37  ;;  %v3496_v61 = vpack.c.b16 %v3494_v19, %v3493_v58  ;;  %v3539_v10 = vpack.c.b16 %v3537_v40, %v3536_v55 }
 0xab0   : > { %4801 = vmatmul.msk.bf16.gmra.mxu0 %vm1145_vm14, %v3496_v61  ;;  %4803 = vmatmul.msk.bf16.gmra.mxu1 %vm1145_vm14, %v3539_v10 }
 0xab3   : > { %v3447_v43 = vpop.permute.xlu1 %3446  ;;  %v3445_v12 = vpop.permute.xlu0 %3444 }
 0xab4   : > { %v3954_v11 = vunpack.c.l.b16 %v3447_v43  ;;  %v3953_v52 = vunpack.c.l.b16 %v3445_v12 }
 0xab6   : > { %v3956_v57 = vpack.c.b16 %v3954_v11, %v3953_v52 }
 0xab8   : > { %3971 = vmatpush.bf16.msrb.mxu2 %v3956_v57 }
 0xabb   : > { %v3441_v39 = vpop.permute.xlu0 %3440 }
 0xabc   : > { %v3951_v27 = vunpack.c.l.b16 %v3441_v39 }
 0xabe   : > { %v3955_v17 = vpack.c.b16 %v3952_v24, %v3951_v27 }
 0xac0   : > { %v3486_v35 = vpop.f32.mrf.mxu3  ;;  %3972 = vmatpush.bf16.msrb.mxu2 %v3955_v17 }
 0xac1   : > { %v6562_v2 = vadd.f32 %v3486_v35, %v833_v18 }
 0xac3   : > { %v3626_v46 = vsel %vm843_vm0, %v6562_v2, -inf }
 0xac4   : > { %3627 = vmax.xlane.f32.xlu0 %v3626_v46 }
 0xac8   : > { %v3488_v59 = vpop.f32.mrf.mxu3 }
 0xac9   : > { %v6570_v32 = vadd.f32 %v3488_v59, %v6567_v5 }
 0xacb   : > { %v3629_v8 = vsel %vm843_vm0, %v6570_v32, -inf }
 0xacc   : > { %3630 = vmax.xlane.f32.xlu1 %v3629_v8 }
 0xb0d   : > { %v3610_v45 = vpop.f32.mrf.mxu2 }
 0xb0e   : > { %v6574_v38 = vadd.f32 %v3610_v45, %v831_v41 }
 0xb0f   : > { %v3524_v14 = vpop.f32.mrf.mxu0  ;;  %v3567_v42 = vpop.f32.mrf.mxu1 }
 0xb10   : > { %v6576_v15 = vadd.f32 %v3524_v14, %v831_v41  ;;  %v6578_v9 = vadd.f32 %v3567_v42, %v831_v41  ;;  %v3656_v4 = vsel %vm843_vm0, %v6574_v38, -inf }
 0xb11   : > { %3657 = vmax.xlane.f32.xlu0 %v3656_v4 }
 0xb12   : > { %v3632_v53 = vsel %vm843_vm0, %v6576_v15, -inf  ;;  %v3644_v63 = vsel %vm843_vm0, %v6578_v9, -inf }
 0xb13   : > { %3633 = vmax.xlane.f32.xlu2 %v3632_v53  ;;  %3645 = vmax.xlane.f32.xlu1 %v3644_v63 }
 0xb15   : > { %v3612_v49 = vpop.f32.mrf.mxu2 }
 0xb16   : > { %v6586_v47 = vadd.f32 %v3612_v49, %v832_v56 }
 0xb17   : > { %v3526_v1 = vpop.f32.mrf.mxu0  ;;  %v3569_v7 = vpop.f32.mrf.mxu1 }
 0xb18   : > { %v6588_v36 = vadd.f32 %v3526_v1, %v832_v56  ;;  %v6590_v44 = vadd.f32 %v3569_v7, %v832_v56  ;;  %v3659_v21 = vsel %vm843_vm0, %v6586_v47, -inf }
 0xb19   : > { %v3622_v41 = vpop.xlane.xlu1 %3621 }
 0xb1a   : > { %v3668_v51 = vsub.f32 %v6549_v26, %v3622_v41  ;;  %v3635_v54 = vsel %vm843_vm0, %v6588_v36, -inf  ;;  %v3647_v62 = vsel %vm843_vm0, %v6590_v44, -inf }
 0xb1b   : > { %3636 = vmax.xlane.f32.xlu0 %v3635_v54  ;;  %3648 = vmax.xlane.f32.xlu2 %v3647_v62 }
 0xb1c   : > { %v3684_v0 = vmul.f32 1.442695, %v3668_v51  ;;  %3660 = vmax.xlane.f32.xlu1 %v3659_v21 }
 0xb1e   : > { %5121 = vpow2.f32 %v3684_v0 }
 0xb21   : > { %v3625_v11 = vpop.xlane.xlu2 %3624 }
 0xb22   : > { %v3669_v52 = vsub.f32 %v6555_v3, %v3625_v11 }
 0xb24   : > { %v6599_v23 = vpop.eup %5121  ;;  %v3686_v57 = vmul.f32 1.442695, %v3669_v52 }
 0xb25   : > { %v3716_v34 = vsel %vm843_vm0, %v6599_v23, 0.0 }
 0xb26   : > { %3717 = vadd.xlane.f32.xlu2 %v3716_v34  ;;  %5123 = vpow2.f32 %v3686_v57 }
 0xb2b   : > { %v3615_v26 = vpop.f32.mrf.mxu2 }
 0xb2c   : > { %v6603_v56 = vadd.f32 %v3615_v26, %v833_v18  ;;  %v6633_v24 = vpop.eup %5123 }
 0xb2d   : > { %v3529_v29 = vpop.f32.mrf.mxu0  ;;  %v3572_v33 = vpop.f32.mrf.mxu1  ;;  %v3719_v17 = vsel %vm843_vm0, %v6633_v24, 0.0 }
 0xb2e   : > { %v6605_v55 = vadd.f32 %v3529_v29, %v833_v18  ;;  %v6607_v31 = vadd.f32 %v3572_v33, %v833_v18  ;;  %v3662_v13 = vsel %vm843_vm0, %v6603_v56, -inf }
 0xb2f   : > { %3663 = vmax.xlane.f32.xlu2 %v3662_v13 }
 0xb30   : > { %v3650_v58 = vsel %vm843_vm0, %v6607_v31, -inf  ;;  %v3638_v19 = vsel %vm843_vm0, %v6605_v55, -inf }
 0xb31   : > { %3651 = vmax.xlane.f32.xlu0 %v3650_v58  ;;  %3639 = vmax.xlane.f32.xlu1 %v3638_v19 }
 0xb33   : > { %v3617_v18 = vpop.f32.mrf.mxu2 }
 0xb34   : > { %v6638_v35 = vadd.f32 %v3617_v18, %v6567_v5 }
 0xb35   : > { %v3531_v40 = vpop.f32.mrf.mxu0  ;;  %v3574_v37 = vpop.f32.mrf.mxu1 }
 0xb36   : > { %v6616_v61 = vadd.f32 %v3531_v40, %v6567_v5  ;;  %v6619_v10 = vadd.f32 %v3574_v37, %v6567_v5  ;;  %v3665_v3 = vsel %vm843_vm0, %v6638_v35, -inf }
 0xb37   : > { %v3628_v28 = vpop.xlane.xlu0 %3627 }
 0xb38   : > { %v3653_v43 = vsel %vm843_vm0, %v6619_v10, -inf  ;;  %v3641_v12 = vsel %vm843_vm0, %v6616_v61, -inf  ;;  %v3670_v39 = vsub.f32 %v6562_v2, %v3628_v28 }
 0xb39   : > { %3654 = vmax.xlane.f32.xlu1 %v3653_v43  ;;  %3642 = vmax.xlane.f32.xlu2 %v3641_v12 }
 0xb3a   : > { %v3688_v27 = vmul.f32 1.442695, %v3670_v39 }
 0xb3c   : > { %5125 = vpow2.f32 %v3688_v27 }
 0xb3f   : > { %v3631_v46 = vpop.xlane.xlu1 %3630 }
 0xb40   : > { %v3671_v13 = vsub.f32 %v6570_v32, %v3631_v46 }
 0xb42   : > { %v3690_v43 = vmul.f32 1.442695, %v3671_v13 }
 0xb45   : > { %3430 = vrot.lane.b32.xlu0 %v6472_v22, %s6989_s2 }
 0xb51   : > { %3436 = vrot.lane.b32.xlu2 %v6475_v48, %s6996_s12 }
 0xb52   : > { %3428 = vrot.lane.b32.xlu1 %v6475_v48, %s6989_s2  ;;  %v6640_v48 = vpop.eup %5125 }
 0xb53   : > { %v3722_v2 = vsel %vm843_vm0, %v6640_v48, 0.0 }
 0xb6f   : > { %3720 = vadd.xlane.f32.xlu0 %v3719_v17 }
 0xb77   : > { %3666 = vmax.xlane.f32.xlu0 %v3665_v3 }
 0xb7a   : > { %3723 = vadd.xlane.f32.xlu2 %v3722_v2 }
 0xb84   : > { %v3658_v59 = vpop.xlane.xlu0 %3657 }
 0xb85   : > { %v3680_v8 = vsub.f32 %v6574_v38, %v3658_v59 }
 0xb86   : > { %v3634_v45 = vpop.xlane.xlu2 %3633  ;;  %v3646_v14 = vpop.xlane.xlu1 %3645 }
 0xb87   : > { %v3708_v42 = vmul.f32 1.442695, %v3680_v8  ;;  %v3672_v5 = vsub.f32 %v6576_v15, %v3634_v45  ;;  %v3676_v11 = vsub.f32 %v6578_v9, %v3646_v14 }
 0xb89   : > { %5127 = vpow2.f32 %v3708_v42  ;;  %v3692_v4 = vmul.f32 1.442695, %v3672_v5 }
 0xb8b   : > { %5129 = vpow2.f32 %v3692_v4  ;;  %3438 = vrot.lane.b32.xlu0 %v6472_v22, %s6996_s12 }
 0xb8e   : > { %v3637_v53 = vpop.xlane.xlu0 %3636  ;;  %v3649_v63 = vpop.xlane.xlu2 %3648 }
 0xb8f   : > { %v6650_v49 = vpop.eup %5127  ;;  %v3673_v1 = vsub.f32 %v6588_v36, %v3637_v53  ;;  %v3677_v7 = vsub.f32 %v6590_v44, %v3649_v63  ;;  %v3661_v38 = vpop.xlane.xlu1 %3660 }
 0xb90   : > { %v3752_v41 = vsel %vm843_vm0, %v6650_v49, 0.0  ;;  %v3681_v62 = vsub.f32 %v6586_v47, %v3661_v38 }
 0xb91   : > { %v6656_v51 = vpop.eup %5129  ;;  %v3694_v15 = vmul.f32 1.442695, %v3673_v1  ;;  %v3702_v54 = vmul.f32 1.442695, %v3677_v7  ;;  %3753 = vadd.xlane.f32.xlu1 %v3752_v41 }
 0xb92   : > { %v3728_v22 = vsel %vm843_vm0, %v6656_v51, 0.0  ;;  %v3710_v36 = vmul.f32 1.442695, %v3681_v62 }
 0xb93   : > { %5131 = vpow2.f32 %v3694_v15  ;;  %3729 = vadd.xlane.f32.xlu2 %v3728_v22 }
 0xb94   : > { %5133 = vpow2.f32 %v3702_v54 }
 0xb95   : > { %5135 = vpow2.f32 %v3710_v36 }
 0xb99   : > { %v6661_v21 = vpop.eup %5131  ;;  %v3718_v34 = vpop.xlane.xlu2 %3717 }
 0xb9a   : > { %v6663_v44 = vpop.eup %5133  ;;  %v3731_v0 = vsel %vm843_vm0, %v6661_v21, 0.0 }
 0xb9b   : > { %v3743_v47 = vsel %vm843_vm0, %v6663_v44, 0.0  ;;  %3732 = vadd.xlane.f32.xlu2 %v3731_v0  ;;  %v6669_v26 = vpop.eup %5135 }
 0xb9c   : > { %3744 = vadd.xlane.f32.xlu1 %v3743_v47  ;;  %v3755_v29 = vsel %vm843_vm0, %v6669_v26, 0.0 }
 0xba2   : > { %v3664_v33 = vpop.xlane.xlu2 %3663 }
 0xba3   : > { %3756 = vadd.xlane.f32.xlu2 %v3755_v29  ;;  %v3682_v58 = vsub.f32 %v6603_v56, %v3664_v33  ;;  %v3700_v56 = vmul.f32 1.442695, %v3676_v11 }
 0xba4   : > { %v3640_v19 = vpop.xlane.xlu1 %3639  ;;  %v3652_v18 = vpop.xlane.xlu0 %3651 }
 0xba5   : > { %v3712_v40 = vmul.f32 1.442695, %v3682_v58  ;;  %v3674_v37 = vsub.f32 %v6605_v55, %v3640_v19  ;;  %v3678_v62 = vsub.f32 %v6607_v31, %v3652_v18 }
 0xba7   : > { %5137 = vpow2.f32 %v3712_v40  ;;  %v3696_v12 = vmul.f32 1.442695, %v3674_v37 }
 0xba8   : > { %5139 = vpow2.f32 %v3690_v43 }
 0xba9   : > { %5141 = vpow2.f32 %v3696_v12 }
 0xbaa   : > { %5143 = vpow2.f32 %v3700_v56 }
 0xbac   : > { %v3655_v52 = vpop.xlane.xlu1 %3654  ;;  %v3643_v63 = vpop.xlane.xlu2 %3642 }
 0xbad   : > { %v6677_v57 = vpop.eup %5137  ;;  %v3679_v28 = vsub.f32 %v6619_v10, %v3655_v52  ;;  %v3675_v7 = vsub.f32 %v6616_v61, %v3643_v63 }
 0xbae   : > { %v3758_v32 = vsel %vm843_vm0, %v6677_v57, 0.0  ;;  %v6682_v39 = vpop.eup %5139 }
 0xbaf   : > { %3759 = vadd.xlane.f32.xlu1 %v3758_v32  ;;  %v3706_v55 = vmul.f32 1.442695, %v3679_v28  ;;  %v6684_v27 = vpop.eup %5141  ;;  %v3725_v9 = vsel %vm843_vm0, %v6682_v39, 0.0 }
 0xbb0   : > { %v3734_v17 = vsel %vm843_vm0, %v6684_v27, 0.0  ;;  %v6690_v10 = vpop.eup %5143 }
 0xbb1   : > { %5145 = vpow2.f32 %v3706_v55  ;;  %v3740_v2 = vsel %vm843_vm0, %v6690_v10, 0.0 }
 0xbb2   : > { %5147 = vrcp.f32 %v3718_v34 }
 0xbb5   : > { %3726 = vadd.xlane.f32.xlu0 %v3725_v9 }
 0xbb7   : > { %3735 = vadd.xlane.f32.xlu1 %v3734_v17  ;;  %v6694_v3 = vpop.eup %5145  ;;  %v3431_v59 = vpop.permute.xlu0 %3430 }
 0xbb8   : > { %v3749_v46 = vsel %vm843_vm0, %v6694_v3, 0.0  ;;  %v3868_v45 = vunpack.c.l.b16 %v3431_v59  ;;  %v5148_v4 = vpop.eup %5147 }
 0xbb9   : > { %v3780_v53 = vmul.f32 %v5148_v4, %v6599_v23  ;;  %v3704_v23 = vmul.f32 1.442695, %v3678_v62 }
 0xbbb   : > { %3424 = vrot.lane.b32.xlu2 %v6483_v60, %s6989_s2  ;;  %v3796_v38 = vpack.c.bf16 %v3780_v53, %v3780_v53 }
 0xbbd   : > { %3741 = vadd.xlane.f32.xlu0 %v3740_v2  ;;  %v3816_v36 = vunpack.c.l.b16 %v3796_v38 }
 0xbbf   : > { %3750 = vadd.xlane.f32.xlu1 %v3749_v46 }
 0xbc3   : > { %3426 = vrot.lane.b32.xlu2 %v6478_v25, %s6989_s2  ;;  %s4506_s2 = sshll.u32 %s4503_s7, 4  ;;  %s4507_s2 = int_to_ptr.hbm [resolvable:$true] %s4506_s2 }
 0xbc4   : > { %v3429_v8 = vpop.permute.xlu1 %3428  ;;  %s5226_s27 = sshra.s32 %s4507_s2, 4  ;;  %s5227_s27 = int_to_ptr.hbm [resolvable:$true] %s5226_s27 }
 0xbc5   : > { %v3867_v14 = vunpack.c.l.b16 %v3429_v8  ;;  %s5228_s24 = scalar_lea.hbm %s5227_s27, 32  ;;  %p5233_p1 = scmp.lt.s32.totalorder %s5227_s27, %s7000_s4 }
 0xbc6   : > { %p5229_p12 = scmp.ne.s32.totalorder %s5227_s27, %s5228_s24  ;;  %p5234_p2 = scmp.lt.s32.totalorder %s5232_s9, %s5228_s24 }
 0xbc7   : > { %v3870_v42 = vpack.c.b16 %v3868_v45, %v3867_v14 }
 0xbc8   : > { %p5230_p13 = pnand %p5229_p12, %p5445_p5  ;;  %p5235_p3 = por %p5234_p2, %p5233_p1 }
 0xbc9   : > { %3885 = vmatpush.bf16.msra.mxu0 %v3870_v42 }
 0xbca   : > { %p5231_p0 = pneg %p5230_p13 }
 0xbcb   : > { %3432 = vrot.lane.b32.xlu2 %v6483_v60, %s6996_s12 }
 0xbcc   : > { %p5236_p4 = pnand %p5235_p3, %p5231_p0 }
 0xbd3   : > { %3434 = vrot.lane.b32.xlu2 %v6478_v25, %s6996_s12  ;;  %v3698_v25 = vmul.f32 1.442695, %v3675_v7  ;;  %s790_s12 = sand.u32 1, %s5266_s26  }
 0xbd4   : > { %s4621_s5 = sshll.u32 %s790_s12, 5 }
 0xbd5   : > { %s792_s0 = scalar_lea.vmem [#allocation2], %s4621_s5  ;;  %s4492_s5 = scalar_lea.sflag [#allocation3], %s790_s12 }
 0xbd6   : > { %s4504_s28 = sshll.u32 %s792_s0, 4  ;;  %s4505_s28 = int_to_ptr.vmem [resolvable:$true] %s4504_s28 }
 0xbe2   : > { %v3721_v5 = vpop.xlane.xlu0 %3720 }
 0xbe3   : > { %5149 = vrcp.f32 %v3721_v5 }
 0xbe9   : > { %v5150_v1 = vpop.eup %5149 }
 0xbea   : > { %v3781_v41 = vmul.f32 %v5150_v1, %v6633_v24  ;;  %v3667_v15 = vpop.xlane.xlu0 %3666  ;;  %v3437_v24 = vpop.permute.xlu2 %3436 }
 0xbeb   : > { %v3683_v54 = vsub.f32 %v6638_v35, %v3667_v15  ;;  %v3910_v58 = vunpack.c.l.b16 %v3437_v24 }
 0xbec   : > { %v3797_v60 = vpack.c.bf16 %v3781_v41, %v3781_v41 }
 0xbed   : > { %v3714_v22 = vmul.f32 1.442695, %v3683_v54 }
 0xbee   : > { %v3817_v0 = vunpack.c.l.b16 %v3797_v60 }
 0xbef   : > { %5151 = vpow2.f32 %v3714_v22 }
 0xbf0   : > { %v3820_v34 = vpack.c.b16 %v3817_v0, %v3816_v36  ;;  %5153 = vpow2.f32 %v3698_v25 }
 0xbf1   : > { %5155 = vpow2.f32 %v3704_v23 }
 0xbf2   : > { %4806 = vmatmul.msk.bf16.vlgmr.msra.gmra.mxu3 %vm843_vm0, %v3820_v34  ;;  %v3724_v33 = vpop.xlane.xlu2 %3723 }
 0xbf5   : > { %v6712_v61 = vpop.eup %5151 }
 0xbf6   : > { %v3761_v35 = vsel %vm843_vm0, %v6712_v61, 0.0  ;;  %v6716_v47 = vpop.eup %5153 }
 0xbf7   : > { %3762 = vadd.xlane.f32.xlu0 %v3761_v35  ;;  %v3737_v31 = vsel %vm843_vm0, %v6716_v47, 0.0  ;;  %v6720_v29 = vpop.eup %5155 }
 0xbf8   : > { %v3746_v40 = vsel %vm843_vm0, %v6720_v29, 0.0 }
 0xbfc   : > { %3738 = vadd.xlane.f32.xlu2 %v3737_v31 }
 0xbfd   : > { %v3439_v13 = vpop.permute.xlu0 %3438 }
 0xbfe   : > { %v3911_v19 = vunpack.c.l.b16 %v3439_v13 }
 0xbff   : > { %3747 = vadd.xlane.f32.xlu0 %v3746_v40 }
 0xc00   : > { %v3913_v37 = vpack.c.b16 %v3911_v19, %v3910_v58 }
 0xc02   : > { %3928 = vmatpush.bf16.msra.mxu1 %v3913_v37 }
 0xc04   : > { %v3754_v12 = vpop.xlane.xlu1 %3753 }
 0xc05   : > { %5157 = vrcp.f32 %v3754_v12 }
 0xc06   : > { %v3730_v43 = vpop.xlane.xlu2 %3729 }
 0xc0b   : > { %v5158_v28 = vpop.eup %5157 }
 0xc0c   : > { %v3792_v32 = vmul.f32 %v5158_v28, %v6650_v49 }
 0xc0e   : > { %v3733_v11 = vpop.xlane.xlu2 %3732  ;;  %v3808_v9 = vpack.c.bf16 %v3792_v32, %v3792_v32 }
 0xc0f   : > { %5159 = vrcp.f32 %v3733_v11 }
 0xc10   : > { %v3945_v8 = vunpack.c.l.b16 %v3808_v9 }
 0xc15   : > { %v5160_v56 = vpop.eup %5159 }
 0xc16   : > { %v3757_v52 = vpop.xlane.xlu2 %3756  ;;  %v3785_v46 = vmul.f32 %v5160_v56, %v6661_v21 }
 0xc17   : > { %5161 = vrcp.f32 %v3757_v52  ;;  %v3243_v52 = vld [vmem:[%s6930_s19] sm:$0xf] }
 0xc18   : > { %5163 = vrcp.f32 %v3730_v43  ;;  %v3801_v42 = vpack.c.bf16 %v3785_v46, %v3785_v46  ;;  %v4017_v28 = vsel %vm1702_vm15, %v3243_v52, 0 }
 0xc19   : > { %5165 = vrcp.f32 %v3724_v33  ;;  %4026 = vmatpush.bf16.msrb.mxu3 %v4017_v28 }
 0xc1a   : > { %v3860_v1 = vunpack.c.l.b16 %v3801_v42 }
 0xc1d   : > { %v5162_v55 = vpop.eup %5161 }
 0xc1e   : > { %v3793_v17 = vmul.f32 %v5162_v55, %v6669_v26  ;;  %v3425_v18 = vpop.permute.xlu2 %3424  ;;  %v5164_v2 = vpop.eup %5163 }
 0xc1f   : > { %v3784_v45 = vmul.f32 %v5164_v2, %v6656_v51  ;;  %v3865_v49 = vunpack.c.l.b16 %v3425_v18  ;;  %v3745_v26 = vpop.xlane.xlu1 %3744  ;;  %v5166_v41 = vpop.eup %5165 }
 0xc20   : > { %v3809_v59 = vpack.c.bf16 %v3793_v17, %v3793_v17  ;;  %v3782_v51 = vmul.f32 %v5166_v41, %v6640_v48 }
 0xc21   : > { %v3800_v4 = vpack.c.bf16 %v3784_v45, %v3784_v45 }
 0xc22   : > { %v3946_v14 = vunpack.c.l.b16 %v3809_v59  ;;  %v3798_v62 = vpack.c.bf16 %v3782_v51, %v3782_v51 }
 0xc23   : > { %v3859_v21 = vunpack.c.l.b16 %v3800_v4 }
 0xc24   : > { %v3949_v5 = vpack.c.b16 %v3946_v14, %v3945_v8  ;;  %v3818_v34 = vunpack.c.l.b16 %v3798_v62 }
 0xc25   : > { %v3863_v15 = vpack.c.b16 %v3860_v1, %v3859_v21 }
 0xc26   : > { %v3427_v53 = vpop.permute.xlu2 %3426  ;;  %4812 = vmatmul.msk.bf16.vlgmr.msrb.gmra.mxu2 %vm843_vm0, %v3949_v5 }
 0xc27   : > { %v3866_v63 = vunpack.c.l.b16 %v3427_v53 }
 0xc28   : > { %v3727_v38 = vpop.xlane.xlu0 %3726 }
 0xc29   : > { %v3869_v7 = vpack.c.b16 %v3866_v63, %v3865_v49  ;;  %5167 = vrcp.f32 %v3727_v38 }
 0xc2a   : > { %5169 = vrcp.f32 %v3745_v26 }
 0xc2b   : > { %3886 = vmatpush.bf16.msra.mxu0 %v3869_v7 }
 0xc2e   : > { %v3433_v54 = vpop.permute.xlu2 %3432  ;;  %4808 = vmatmul.msk.bf16.vlgmr.msra.gmra.mxu0 %vm843_vm0, %v3863_v15 }
 0xc2f   : > { %v5168_v60 = vpop.eup %5167  ;;  %v3908_v31 = vunpack.c.l.b16 %v3433_v54 }
 0xc30   : > { %v3783_v25 = vmul.f32 %v5168_v60, %v6682_v39  ;;  %v3742_v22 = vpop.xlane.xlu0 %3741  ;;  %v5170_v36 = vpop.eup %5169 }
 0xc31   : > { %5171 = vrcp.f32 %v3742_v22  ;;  %v3789_v23 = vmul.f32 %v5170_v36, %v6663_v44  ;;  %v3760_v44 = vpop.xlane.xlu1 %3759 }
 0xc32   : > { %v3799_v0 = vpack.c.bf16 %v3783_v25, %v3783_v25  ;;  %5173 = vrcp.f32 %v3760_v44 }
 0xc33   : > { %v3805_v58 = vpack.c.bf16 %v3789_v23, %v3789_v23 }
 0xc34   : > { %v3819_v24 = vunpack.c.l.b16 %v3799_v0 }
 0xc35   : > { %v3903_v37 = vunpack.c.l.b16 %v3805_v58 }
 0xc36   : > { %v3435_v35 = vpop.permute.xlu2 %3434  ;;  %v3821_v13 = vpack.c.b16 %v3819_v24, %v3818_v34  ;;  %v3244_v34 = vld [vmem:[%s6930_s19 + $0x4] sm:$0xf] }
 0xc37   : > { %v3909_v33 = vunpack.c.l.b16 %v3435_v35  ;;  %v5172_v48 = vpop.eup %5171  ;;  %v4055_v23 = vsel %vm1702_vm15, %v3244_v34, 0  ;;  %v3245_v35 = vld [vmem:[%s6930_s19 + $0x8] sm:$0xf] }
 0xc38   : > { %v3788_v19 = vmul.f32 %v5172_v48, %v6690_v10  ;;  %4807 = vmatmul.msk.bf16.gmra.mxu3 %vm843_vm0, %v3821_v13  ;;  %v5174_v10 = vpop.eup %5173  ;;  %4064 = vmatpush.bf16.msrb.mxu0 %v4055_v23 }
 0xc39   : > { %v3912_v40 = vpack.c.b16 %v3909_v33, %v3908_v31  ;;  %v3736_v11 = vpop.xlane.xlu1 %3735  ;;  %v3794_v55 = vmul.f32 %v5174_v10, %v6677_v57  ;;  %v4093_v33 = vsel %vm1702_vm15, %v3245_v35, 0 }
 0xc3a   : > { %v3804_v39 = vpack.c.bf16 %v3788_v19, %v3788_v19  ;;  %5175 = vrcp.f32 %v3736_v11 }
 0xc3b   : > { %3929 = vmatpush.bf16.msra.mxu1 %v3912_v40  ;;  %v3810_v2 = vpack.c.bf16 %v3794_v55, %v3794_v55 }
 0xc3c   : > { %v3902_v43 = vunpack.c.l.b16 %v3804_v39 }
 0xc3d   : > { %v3947_v5 = vunpack.c.l.b16 %v3810_v2 }
 0xc3e   : > { %v3906_v12 = vpack.c.b16 %v3903_v37, %v3902_v43 }
 0xc3f   : > { %4102 = vmatpush.bf16.msrb.mxu1 %v4093_v33 }
 0xc40   : > { %4810 = vmatmul.msk.bf16.vlgmr.msra.gmra.mxu1 %vm843_vm0, %v3906_v12  ;;  %v5176_v17 = vpop.eup %5175 }
 0xc41   : > { %v3751_v32 = vpop.xlane.xlu1 %3750  ;;  %v3786_v46 = vmul.f32 %v5176_v17, %v6684_v27 }
 0xc43   : > { %v3802_v53 = vpack.c.bf16 %v3786_v46, %v3786_v46 }
 0xc45   : > { %v3861_v38 = vunpack.c.l.b16 %v3802_v53 }
 0xc6a   : > { %v3763_v56 = vpop.xlane.xlu0 %3762 }
 0xc6b   : > { %5177 = vrcp.f32 %v3763_v56 }
 0xc6c   : > { %5179 = vrcp.f32 %v3751_v32 }
 0xc6f   : > { %v3739_v9 = vpop.xlane.xlu2 %3738 }
 0xc70   : > { %5181 = vrcp.f32 %v3739_v9 }
 0xc71   : > { %v5178_v18 = vpop.eup %5177 }
 0xc72   : > { %v3795_v59 = vmul.f32 %v5178_v18, %v6712_v61  ;;  %v3748_v8 = vpop.xlane.xlu0 %3747  ;;  %v5180_v45 = vpop.eup %5179 }
 0xc73   : > { %5183 = vrcp.f32 %v3748_v8  ;;  %v3791_v57 = vmul.f32 %v5180_v45, %v6694_v3 }
 0xc74   : > { %v3811_v14 = vpack.c.bf16 %v3795_v59, %v3795_v59 }
 0xc75   : > { %v3845_v4 = vpop.f32.mrf.mxu3  ;;  %v3807_v27 = vpack.c.bf16 %v3791_v57, %v3791_v57 }
 0xc76   : > { %v5182_v42 = vpop.eup %5181  ;;  %v3948_v49 = vunpack.c.l.b16 %v3811_v14  ;;  %v3984_v15 = vpack.c.bf16 %v3845_v4, %v3845_v4 }
 0xc77   : > { %v3787_v63 = vmul.f32 %v5182_v42, %v6716_v47  ;;  %v3905_v60 = vunpack.c.l.b16 %v3807_v27 }
 0xc78   : > { %v3950_v26 = vpack.c.b16 %v3948_v49, %v3947_v5  ;;  %v4004_v47 = vunpack.c.l.b16 %v3984_v15 }
 0xc79   : > { %v3803_v1 = vpack.c.bf16 %v3787_v63, %v3787_v63  ;;  %v5184_v7 = vpop.eup %5183 }
 0xc7a   : > { %v3790_v61 = vmul.f32 %v5184_v7, %v6720_v29  ;;  %4813 = vmatmul.msk.bf16.gmra.mxu2 %vm843_vm0, %v3950_v26  ;;  %v3246_v29 = vld [vmem:[%s6930_s19 + $0xc] sm:$0xf] }
 0xc7b   : > { %v3862_v41 = vunpack.c.l.b16 %v3803_v1  ;;  %v4131_v0 = vsel %vm1702_vm15, %v3246_v29, 0 }
 0xc7c   : > { %v3806_v21 = vpack.c.bf16 %v3790_v61, %v3790_v61  ;;  %4140 = vmatpush.bf16.msra.mxu2 %v4131_v0 }
 0xc7d   : > { %v3864_v51 = vpack.c.b16 %v3862_v41, %v3861_v38  ;;  %v3847_v54 = vpop.f32.mrf.mxu3 }
 0xc7e   : > { %v3904_v62 = vunpack.c.l.b16 %v3806_v21  ;;  %v3985_v3 = vpack.c.bf16 %v3847_v54, %v3847_v54 }
 0xc7f   : > { %4809 = vmatmul.msk.bf16.gmra.mxu0 %vm843_vm0, %v3864_v51 }
 0xc80   : > { %v4005_v25 = vunpack.c.l.b16 %v3985_v3  ;;  %v3907_v22 = vpack.c.b16 %v3905_v60, %v3904_v62 }
 0xc82   : > { %v4008_v36 = vpack.c.b16 %v4005_v25, %v4004_v47  ;;  %4811 = vmatmul.msk.bf16.gmra.mxu1 %vm843_vm0, %v3907_v22 }
 0xc84   : > { %4814 = vmatmul.msk.bf16.vlgmr.msrb.gmra.mxu3 %vm1145_vm14, %v4008_v36 }
 0xca9   : > { %v3974_v24 = vpop.f32.mrf.mxu2 }
 0xcaa   : > { %v3996_v13 = vpack.c.bf16 %v3974_v24, %v3974_v24 }
 0xcab   : > { %v3888_v31 = vpop.f32.mrf.mxu0 }
 0xcac   : > { %v3988_v58 = vpack.c.bf16 %v3888_v31, %v3888_v31  ;;  %v4118_v39 = vunpack.c.l.b16 %v3996_v13 }
 0xcae   : > { %v4042_v12 = vunpack.c.l.b16 %v3988_v58 }
 0xcb1   : > { %v3976_v48 = vpop.f32.mrf.mxu2 }
 0xcb2   : > { %v3997_v19 = vpack.c.bf16 %v3976_v48, %v3976_v48 }
 0xcb3   : > { %v3890_v40 = vpop.f32.mrf.mxu0 }
 0xcb4   : > { %v4119_v37 = vunpack.c.l.b16 %v3997_v19  ;;  %v3989_v43 = vpack.c.bf16 %v3890_v40, %v3890_v40 }
 0xcb6   : > { %v4122_v44 = vpack.c.b16 %v4119_v37, %v4118_v39  ;;  %v4043_v11 = vunpack.c.l.b16 %v3989_v43 }
 0xcb8   : > { %v4046_v52 = vpack.c.b16 %v4043_v11, %v4042_v12  ;;  %4820 = vmatmul.msk.bf16.vlgmr.msra.gmra.mxu2 %vm1145_vm14, %v4122_v44 }
 0xcba   : > { %4816 = vmatmul.msk.bf16.vlgmr.msrb.gmra.mxu0 %vm1145_vm14, %v4046_v52 }
 0xcbb   : > { %v3850_v28 = vpop.f32.mrf.mxu3 }
 0xcbc   : > { %v3986_v32 = vpack.c.bf16 %v3850_v28, %v3850_v28 }
 0xcbd   : > { %v3931_v10 = vpop.f32.mrf.mxu1 }
 0xcbe   : > { %v3992_v55 = vpack.c.bf16 %v3931_v10, %v3931_v10  ;;  %v4006_v18 = vunpack.c.l.b16 %v3986_v32 }
 0xcc0   : > { %v4080_v59 = vunpack.c.l.b16 %v3992_v55 }
 0xcc3   : > { %v3852_v56 = vpop.f32.mrf.mxu3 }
 0xcc4   : > { %v3987_v9 = vpack.c.bf16 %v3852_v56, %v3852_v56 }
 0xcc5   : > { %v3933_v17 = vpop.f32.mrf.mxu1 }
 0xcc6   : > { %v4007_v2 = vunpack.c.l.b16 %v3987_v9  ;;  %v3993_v46 = vpack.c.bf16 %v3933_v17, %v3933_v17 }
 0xcc8   : > { %v4009_v8 = vpack.c.b16 %v4007_v2, %v4006_v18  ;;  %v4081_v45 = vunpack.c.l.b16 %v3993_v46 }
 0xcca   : > { %v4084_v14 = vpack.c.b16 %v4081_v45, %v4080_v59  ;;  %4815 = vmatmul.msk.bf16.gmra.mxu3 %vm1145_vm14, %v4009_v8 }
 0xccc   : > { %4818 = vmatmul.msk.bf16.vlgmr.msrb.gmra.mxu1 %vm1145_vm14, %v4084_v14 }
 0xcfc   : > { %v3893_v42 = vpop.f32.mrf.mxu0 }
 0xcfd   : > { %v3979_v5 = vpop.f32.mrf.mxu2  ;;  %v3990_v53 = vpack.c.bf16 %v3893_v42, %v3893_v42 }
 0xcfe   : > { %v3998_v49 = vpack.c.bf16 %v3979_v5, %v3979_v5 }
 0xcff   : > { %v3936_v4 = vpop.f32.mrf.mxu1  ;;  %v4044_v26 = vunpack.c.l.b16 %v3990_v53 }
 0xd00   : > { %v3994_v7 = vpack.c.bf16 %v3936_v4, %v3936_v4  ;;  %v4120_v61 = vunpack.c.l.b16 %v3998_v49 }
 0xd02   : > { %v4082_v54 = vunpack.c.l.b16 %v3994_v7 }
 0xd04   : > { %v3895_v57 = vpop.f32.mrf.mxu0 }
 0xd05   : > { %v3991_v63 = vpack.c.bf16 %v3895_v57, %v3895_v57  ;;  %v3981_v1 = vpop.f32.mrf.mxu2 }
 0xd06   : > { %v3999_v27 = vpack.c.bf16 %v3981_v1, %v3981_v1 }
 0xd07   : > { %v4045_v38 = vunpack.c.l.b16 %v3991_v63  ;;  %v3938_v41 = vpop.f32.mrf.mxu1  ;;  %v4028_v25 = vpop.f32.mrf.mxu3 }
 0xd08   : > { %v4121_v15 = vunpack.c.l.b16 %v3999_v27  ;;  %v3995_v51 = vpack.c.bf16 %v3938_v41, %v3938_v41  ;;  %v4152_v29 = vsel %vm843_vm0, %v4028_v25, 0.0 }
 0xd09   : > { %v4047_v21 = vpack.c.b16 %v4045_v38, %v4044_v26 }
 0xd0a   : > { %v4123_v60 = vpack.c.b16 %v4121_v15, %v4120_v61  ;;  %v4083_v62 = vunpack.c.l.b16 %v3995_v51  ;;  %v4893_v15 = vld [vmem:[%s6931_s20 + $0x8] sm:$0xff] }
 0xd0b   : > { %4817 = vmatmul.msk.bf16.gmra.mxu0 %vm1145_vm14, %v4047_v21  ;;  %4287 = vmatpush.bf16.msra.mxu3 %v4893_v15 }
 0xd0c   : > { %v4085_v3 = vpack.c.b16 %v4083_v62, %v4082_v54  ;;  %4821 = vmatmul.msk.bf16.gmra.mxu2 %vm1145_vm14, %v4123_v60  ;;  %v4892_v60 = vld [vmem:[%s6931_s20] sm:$0xff] }
 0xd0e   : > { %4819 = vmatmul.msk.bf16.gmra.mxu1 %vm1145_vm14, %v4085_v3 }
 0xd0f   : > { %v4030_v33 = vpop.f32.mrf.mxu3  ;;  %4288 = vmatpush.bf16.msra.mxu3 %v4892_v60 }
 0xd10   : > { %v4159_v19 = vsel %vm843_vm0, %v4030_v33, 0.0 }
 0xd37   : > { %v4066_v47 = vpop.f32.mrf.mxu0 }
 0xd38   : > { %v4153_v22 = vsel %vm843_vm0, %v4066_v47, 0.0 }
 0xd39   : > { %v4154_v0 = vadd.f32 %v4153_v22, %v4152_v29 }
 0xd3b   : > { %v4142_v36 = vpop.f32.mrf.mxu2 }
 0xd3c   : > { %v4157_v31 = vsel %vm843_vm0, %v4142_v36, 0.0 }
 0xd3f   : > { %v4068_v24 = vpop.f32.mrf.mxu0 }
 0xd40   : > { %v4160_v48 = vsel %vm843_vm0, %v4068_v24, 0.0 }
 0xd41   : > { %v4161_v40 = vadd.f32 %v4160_v48, %v4159_v19  ;;  %v6820_v19 = vld [vmem:[%s6987_s1] sm:$0xff] }
 0xd43   : > { %v4144_v39 = vpop.f32.mrf.mxu2 }
 0xd44   : > { %v4164_v52 = vsel %vm843_vm0, %v4144_v39, 0.0 }
 0xd49   : > { %v4104_v34 = vpop.f32.mrf.mxu1 }
 0xd4a   : > { %v4155_v23 = vsel %vm843_vm0, %v4104_v34, 0.0 }
 0xd4b   : > { %v4156_v35 = vadd.f32 %v4155_v23, %v4154_v0 }
 0xd4d   : > { %v4158_v13 = vadd.f32 %v4157_v31, %v4156_v35  ;;  %v4033_v56 = vpop.f32.mrf.mxu3 }
 0xd4e   : > { %v4166_v18 = vsel %vm843_vm0, %v4033_v56, 0.0 }
 0xd4f   : > { %v6775_v58 = vadd.f32 %v4158_v13, %v6433_v30 }
 0xd51   : > { %v4106_v37 = vpop.f32.mrf.mxu1  ;;  %v4184_v43 = vmul.f32 %v6775_v58, %v6775_v58 }
 0xd52   : > { %v4162_v12 = vsel %vm843_vm0, %v4106_v37, 0.0 }
 0xd53   : > { %v4163_v44 = vadd.f32 %v4162_v12, %v4161_v40  ;;  %v4188_v11 = vsel %vm843_vm0, %v4184_v43, 0.0  ;;  %v4252_v40 = vperm.slane %v6820_v19, 5 }
 0xd54   : > { %4189 = vadd.xlane.f32.xlu0 %v4188_v11 }
 0xd55   : > { %v4165_v28 = vadd.f32 %v4164_v52, %v4163_v44  ;;  %v4035_v14 = vpop.f32.mrf.mxu3 }
 0xd56   : > { %v4173_v57 = vsel %vm843_vm0, %v4035_v14, 0.0 }
 0xd57   : > { %v6784_v30 = vadd.f32 %v4165_v28, %v6443_v50 }
 0xd59   : > { %v4185_v10 = vmul.f32 %v6784_v30, %v6784_v30 }
 0xd5b   : > { %v4191_v32 = vsel %vm843_vm0, %v4185_v10, 0.0 }
 0xd5c   : > { %4192 = vadd.xlane.f32.xlu1 %v4191_v32  ;;  %v4897_v32 = vld [vmem:[%s6932_s21 + $0x18] sm:$0xff] }
 0xd5d   : > { %4348 = vmatpush.bf16.msra.mxu0 %v4897_v32 }
 0xd88   : > { %v4071_v55 = vpop.f32.mrf.mxu0 }
 0xd89   : > { %v4167_v9 = vsel %vm843_vm0, %v4071_v55, 0.0 }
 0xd8a   : > { %v4168_v46 = vadd.f32 %v4167_v9, %v4166_v18 }
 0xd8b   : > { %v4109_v17 = vpop.f32.mrf.mxu1 }
 0xd8c   : > { %v4169_v2 = vsel %vm843_vm0, %v4109_v17, 0.0 }
 0xd8d   : > { %v4170_v59 = vadd.f32 %v4169_v2, %v4168_v46 }
 0xd8f   : > { %v4147_v50 = vpop.f32.mrf.mxu2 }
 0xd90   : > { %v4073_v8 = vpop.f32.mrf.mxu0  ;;  %v4171_v45 = vsel %vm843_vm0, %v4147_v50, 0.0 }
 0xd91   : > { %v4172_v42 = vadd.f32 %v4171_v45, %v4170_v59  ;;  %v4174_v5 = vsel %vm843_vm0, %v4073_v8, 0.0 }
 0xd92   : > { %v4175_v63 = vadd.f32 %v4174_v5, %v4173_v57 }
 0xd93   : > { %v6795_v4 = vadd.f32 %v4172_v42, %v6453_v16  ;;  %v4111_v53 = vpop.f32.mrf.mxu1 }
 0xd94   : > { %v4176_v49 = vsel %vm843_vm0, %v4111_v53, 0.0 }
 0xd95   : > { %v4186_v1 = vmul.f32 %v6795_v4, %v6795_v4  ;;  %v4177_v26 = vadd.f32 %v4176_v49, %v4175_v63 }
 0xd97   : > { %v4149_v7 = vpop.f32.mrf.mxu2  ;;  %v4194_v38 = vsel %vm843_vm0, %v4186_v1, 0.0 }
 0xd98   : > { %v4178_v27 = vsel %vm843_vm0, %v4149_v7, 0.0  ;;  %4195 = vadd.xlane.f32.xlu0 %v4194_v38 }
 0xd99   : > { %v4179_v41 = vadd.f32 %v4178_v27, %v4177_v26  ;;  %v4896_v27 = vld [vmem:[%s6932_s21 + $0x10] sm:$0xff] }
 0xd9a   : > { %4349 = vmatpush.bf16.msra.mxu0 %v4896_v27 }
 0xd9b   : > { %v6804_v16 = vadd.f32 %v4179_v41, %v6463_v6  ;;  %v4895_v41 = vld [vmem:[%s6932_s21 + $0x8] sm:$0xff] }
 0xd9d   : > { %v4187_v61 = vmul.f32 %v6804_v16, %v6804_v16 }
 0xd9e   : > { %4350 = vmatpush.bf16.msra.mxu0 %v4895_v41 }
 0xd9f   : > { %v4197_v21 = vsel %vm843_vm0, %v4187_v61, 0.0  ;;  %v4894_v61 = vld [vmem:[%s6932_s21] sm:$0xff] }
 0xda0   : > { %4198 = vadd.xlane.f32.xlu1 %v4197_v21 }
 0xda2   : > { %4351 = vmatpush.bf16.msra.mxu0 %v4894_v61 }
 0xdc7   : > { %v4190_v51 = vpop.xlane.xlu0 %4189 }
 0xdc8   : > { %v4200_v54 = vmul.f32 %v4190_v51, %v5496_v20 }
 0xdca   : > { %v4204_v6 = vadd.f32 1e-06, %v4200_v54 }
 0xdcc   : > { %5185 = vrsqrt.f32 %v4204_v6  ;;  %vm4214_vm15 = vweird.f32 %v4204_v6 }
 0xdcf   : > { %v4193_v62 = vpop.xlane.xlu1 %4192 }
 0xdd0   : > { %v4201_v3 = vmul.f32 %v4193_v62, %v5496_v20 }
 0xdd2   : > { %v5186_v47 = vpop.eup %5185  ;;  %v4205_v25 = vadd.f32 1e-06, %v4201_v3 }
 0xdd3   : > { %v4209_v22 = vmul.f32 %v5186_v47, %v4204_v6  ;;  %vm4215_vm14 = vweird.f32 %v5186_v47 }
 0xdd4   : > { %5187 = vrsqrt.f32 %v4205_v25  ;;  %vm4216_vm13 = vmor %vm4214_vm15, %vm4215_vm14  ;;  %vm4224_vm2 = vweird.f32 %v4205_v25 }
 0xdd5   : > { %v4210_v36 = vmul.f32 %v5186_v47, %v4209_v22 }
 0xdd7   : > { %v4211_v29 = vmul.f32 0.5, %v4210_v36 }
 0xdd9   : > { %v4212_v0 = vsub.f32 1.5, %v4211_v29 }
 0xdda   : > { %v5188_v34 = vpop.eup %5187 }
 0xddb   : > { %v4219_v23 = vmul.f32 %v5188_v34, %v4205_v25  ;;  %v4213_v24 = vmul.f32 %v5186_v47, %v4212_v0  ;;  %vm4225_vm1 = vweird.f32 %v5188_v34 }
 0xddc   : > { %vm4226_vm3 = vmor %vm4224_vm2, %vm4225_vm1 }
 0xddd   : > { %v4220_v35 = vmul.f32 %v5188_v34, %v4219_v23  ;;  %v4217_v33 = vsel %vm4216_vm13, %v5186_v47, %v4213_v24 }
 0xdde   : > { %v4248_v39 = vmul.f32 %v4217_v33, %v6775_v58 }
 0xddf   : > { %v4221_v31 = vmul.f32 0.5, %v4220_v35 }
 0xde0   : > { %v4253_v12 = vmul.f32 %v4252_v40, %v4248_v39 }
 0xde1   : > { %v4222_v13 = vsub.f32 1.5, %v4221_v31 }
 0xde3   : > { %v4223_v48 = vmul.f32 %v5188_v34, %v4222_v13 }
 0xde5   : > { %v4227_v37 = vsel %vm4226_vm3, %v5188_v34, %v4223_v48 }
 0xde6   : > { %v4249_v43 = vmul.f32 %v4227_v37, %v6784_v30 }
 0xde8   : > { %v4254_v44 = vmul.f32 %v4252_v40, %v4249_v43 }
 0xdea   : > { %v4257_v11 = vpack.c.bf16 %v4254_v44, %v4253_v12  ;;  %v4898_v12 = vld [vmem:[%s6933_s22] sm:$0xff] }
 0xdec   : > { %4830 = vmatmul.msk.bf16.vlgmr.msra.gmra.mxu3 %vm843_vm0, %v4257_v11 }
 0xe0b   : > { %v4196_v52 = vpop.xlane.xlu0 %4195 }
 0xe0c   : > { %v4202_v28 = vmul.f32 %v4196_v52, %v5496_v20 }
 0xe0e   : > { %v4206_v10 = vadd.f32 1e-06, %v4202_v28 }
 0xe10   : > { %5189 = vrsqrt.f32 %v4206_v10  ;;  %vm4234_vm5 = vweird.f32 %v4206_v10 }
 0xe13   : > { %v4199_v56 = vpop.xlane.xlu1 %4198 }
 0xe14   : > { %v4203_v55 = vmul.f32 %v4199_v56, %v5496_v20 }
 0xe16   : > { %v5190_v9 = vpop.eup %5189  ;;  %v4207_v17 = vadd.f32 1e-06, %v4203_v55 }
 0xe17   : > { %v4229_v18 = vmul.f32 %v5190_v9, %v4206_v10  ;;  %vm4235_vm4 = vweird.f32 %v5190_v9 }
 0xe18   : > { %5191 = vrsqrt.f32 %v4207_v17  ;;  %vm4236_vm6 = vmor %vm4234_vm5, %vm4235_vm4  ;;  %vm4244_vm8 = vweird.f32 %v4207_v17 }
 0xe19   : > { %v4230_v2 = vmul.f32 %v5190_v9, %v4229_v18 }
 0xe1b   : > { %v4231_v46 = vmul.f32 0.5, %v4230_v2 }
 0xe1d   : > { %v4232_v59 = vsub.f32 1.5, %v4231_v46 }
 0xe1e   : > { %v5192_v8 = vpop.eup %5191 }
 0xe1f   : > { %v4239_v50 = vmul.f32 %v5192_v8, %v4207_v17  ;;  %v4233_v45 = vmul.f32 %v5190_v9, %v4232_v59  ;;  %vm4245_vm7 = vweird.f32 %v5192_v8 }
 0xe20   : > { %vm4246_vm9 = vmor %vm4244_vm8, %vm4245_vm7 }
 0xe21   : > { %v4240_v14 = vmul.f32 %v5192_v8, %v4239_v50  ;;  %v4237_v5 = vsel %vm4236_vm6, %v5190_v9, %v4233_v45  ;;  %v4435_v45 = vperm.slane %v6820_v19, 6 }
 0xe22   : > { %v4250_v49 = vmul.f32 %v4237_v5, %v6795_v4 }
 0xe23   : > { %v4241_v42 = vmul.f32 0.5, %v4240_v14 }
 0xe24   : > { %v4255_v26 = vmul.f32 %v4252_v40, %v4250_v49 }
 0xe25   : > { %v4242_v53 = vsub.f32 1.5, %v4241_v42 }
 0xe27   : > { %v4243_v57 = vmul.f32 %v5192_v8, %v4242_v53 }
 0xe29   : > { %v4247_v63 = vsel %vm4246_vm9, %v5192_v8, %v4243_v57 }
 0xe2a   : > { %v4251_v1 = vmul.f32 %v4247_v63, %v6804_v16 }
 0xe2c   : > { %v4256_v7 = vmul.f32 %v4252_v40, %v4251_v1 }
 0xe2e   : > { %v4258_v38 = vpack.c.bf16 %v4256_v7, %v4255_v26 }
 0xe30   : > { %4831 = vmatmul.msk.bf16.gmra.mxu3 %vm843_vm0, %v4258_v38 }
 0xe6f   : > { %v4290_v21 = vpop.f32.mrf.mxu3 }
 0xe70   : > { %v4300_v51 = vmax.f32 %v4290_v21, 0.0 }
 0xe77   : > { %v4292_v15 = vpop.f32.mrf.mxu3 }
 0xe78   : > { %v4301_v54 = vmax.f32 %v4292_v15, 0.0 }
 0xe7a   : > { %v4304_v60 = vpack.c.bf16 %v4301_v54, %v4300_v51 }
 0xe7c   : > { %4848 = vmatmul.msk.bf16.vlgmr.msra.gmra.mxu0 %vm2025_vm12, %v4304_v60 }
 0xeb3   : > { %v4295_v6 = vpop.f32.mrf.mxu3 }
 0xeb4   : > { %v4302_v3 = vmax.f32 %v4295_v6, 0.0 }
 0xebb   : > { %v4297_v62 = vpop.f32.mrf.mxu3 }
 0xebc   : > { %v4303_v47 = vmax.f32 %v4297_v62, 0.0 }
 0xebe   : > { %v4305_v25 = vpack.c.bf16 %v4303_v47, %v4302_v3 }
 0xec0   : > { %4849 = vmatmul.msk.bf16.gmra.mxu0 %vm2025_vm12, %v4305_v25 }
 0xef9   : > { %v4353_v22 = vpop.f32.mrf.mxu0 }
 0xefa   : > { %v4363_v36 = vadd.f32 %v4353_v22, %v6775_v58 }
 0xefc   : > { %v4367_v29 = vmul.f32 %v4363_v36, %v4363_v36 }
 0xefe   : > { %v4371_v0 = vsel %vm843_vm0, %v4367_v29, 0.0 }
 0xeff   : > { %4372 = vadd.xlane.f32.xlu0 %v4371_v0 }
 0xf01   : > { %v4355_v34 = vpop.f32.mrf.mxu0 }
 0xf02   : > { %v4364_v23 = vadd.f32 %v4355_v34, %v6784_v30 }
 0xf04   : > { %v4368_v24 = vmul.f32 %v4364_v23, %v4364_v23 }
 0xf06   : > { %v4374_v35 = vsel %vm843_vm0, %v4368_v24, 0.0 }
 0xf07   : > { %4375 = vadd.xlane.f32.xlu1 %v4374_v35 }
 0xf3d   : > { %v4358_v31 = vpop.f32.mrf.mxu0 }
 0xf3e   : > { %v6850_v33 = vadd.f32 %v4358_v31, %v6795_v4  ;;  %v4899_v4 = vld [vmem:[%s6933_s22 + $0x8] sm:$0xff] }
 0xf3f   : > { %4474 = vmatpush.bf16.msra.mxu1 %v4899_v4 }
 0xf40   : > { %v4369_v13 = vmul.f32 %v6850_v33, %v6850_v33 }
 0xf42   : > { %v4377_v58 = vsel %vm843_vm0, %v4369_v13, 0.0 }
 0xf43   : > { %4378 = vadd.xlane.f32.xlu0 %v4377_v58  ;;  %4475 = vmatpush.bf16.msra.mxu1 %v4898_v12 }
 0xf45   : > { %v4360_v48 = vpop.f32.mrf.mxu0 }
 0xf46   : > { %v6856_v40 = vadd.f32 %v4360_v48, %v6804_v16 }
 0xf48   : > { %v4370_v30 = vmul.f32 %v6856_v40, %v6856_v40 }
 0xf4a   : > { %v4380_v39 = vsel %vm843_vm0, %v4370_v30, 0.0 }
 0xf4b   : > { %4381 = vadd.xlane.f32.xlu1 %v4380_v39 }
 0xf72   : > { %v4373_v37 = vpop.xlane.xlu0 %4372 }
 0xf73   : > { %v4383_v43 = vmul.f32 %v4373_v37, %v5496_v20 }
 0xf75   : > { %v4387_v16 = vadd.f32 1e-06, %v4383_v43 }
 0xf77   : > { %5193 = vrsqrt.f32 %v4387_v16  ;;  %vm4397_vm10 = vweird.f32 %v4387_v16 }
 0xf7a   : > { %v4376_v44 = vpop.xlane.xlu1 %4375 }
 0xf7b   : > { %v4384_v11 = vmul.f32 %v4376_v44, %v5496_v20 }
 0xf7d   : > { %v5194_v52 = vpop.eup %5193  ;;  %v4388_v28 = vadd.f32 1e-06, %v4384_v11 }
 0xf7e   : > { %v4392_v10 = vmul.f32 %v5194_v52, %v4387_v16  ;;  %vm4398_vm12 = vweird.f32 %v5194_v52 }
 0xf7f   : > { %5195 = vrsqrt.f32 %v4388_v28  ;;  %vm4399_vm11 = vmor %vm4397_vm10, %vm4398_vm12  ;;  %vm4407_vm15 = vweird.f32 %v4388_v28 }
 0xf80   : > { %v4393_v32 = vmul.f32 %v5194_v52, %v4392_v10 }
 0xf82   : > { %v4394_v56 = vmul.f32 0.5, %v4393_v32 }
 0xf84   : > { %v4395_v55 = vsub.f32 1.5, %v4394_v56 }
 0xf85   : > { %v5196_v9 = vpop.eup %5195 }
 0xf86   : > { %v4402_v17 = vmul.f32 %v5196_v9, %v4388_v28  ;;  %v4396_v18 = vmul.f32 %v5194_v52, %v4395_v55  ;;  %vm4408_vm14 = vweird.f32 %v5196_v9 }
 0xf87   : > { %vm4409_vm13 = vmor %vm4407_vm15, %vm4408_vm14 }
 0xf88   : > { %v4403_v2 = vmul.f32 %v5196_v9, %v4402_v17  ;;  %v4400_v59 = vsel %vm4399_vm11, %v5194_v52, %v4396_v18 }
 0xf89   : > { %v4431_v14 = vmul.f32 %v4400_v59, %v4363_v36 }
 0xf8a   : > { %v4404_v46 = vmul.f32 0.5, %v4403_v2 }
 0xf8b   : > { %v4436_v53 = vmul.f32 %v4435_v45, %v4431_v14 }
 0xf8c   : > { %v4405_v8 = vsub.f32 1.5, %v4404_v46 }
 0xf8e   : > { %v4406_v50 = vmul.f32 %v5196_v9, %v4405_v8 }
 0xf90   : > { %v4410_v42 = vsel %vm4409_vm13, %v5196_v9, %v4406_v50 }
 0xf91   : > { %v4432_v5 = vmul.f32 %v4410_v42, %v4364_v23  ;;  %v4950_v23 = vld [vmem:[%s6934_s23] ss:$0 sm:$0xff] }
 0xf93   : > { %v4437_v57 = vmul.f32 %v4435_v45, %v4432_v5 }
 0xf95   : > { %v4440_v49 = vpack.c.bf16 %v4437_v57, %v4436_v53 }
 0xf97   : > { %4858 = vmatmul.msk.bf16.vlgmr.msra.gmra.mxu1 %vm843_vm0, %v4440_v49 }
 0xfb6   : > { %v4379_v63 = vpop.xlane.xlu0 %4378 }
 0xfb7   : > { %v4385_v1 = vmul.f32 %v4379_v63, %v5496_v20 }
 0xfb9   : > { %v4389_v26 = vadd.f32 1e-06, %v4385_v1 }
 0xfbb   : > { %5197 = vrsqrt.f32 %v4389_v26  ;;  %vm4417_vm2 = vweird.f32 %v4389_v26 }
 0xfbe   : > { %v4382_v7 = vpop.xlane.xlu1 %4381 }
 0xfbf   : > { %v4386_v38 = vmul.f32 %v4382_v7, %v5496_v20 }
 0xfc1   : > { %v5198_v27 = vpop.eup %5197  ;;  %v4390_v41 = vadd.f32 1e-06, %v4386_v38 }
 0xfc2   : > { %v4412_v19 = vmul.f32 %v5198_v27, %v4389_v26  ;;  %vm4418_vm1 = vweird.f32 %v5198_v27 }
 0xfc3   : > { %5199 = vrsqrt.f32 %v4390_v41  ;;  %vm4419_vm3 = vmor %vm4417_vm2, %vm4418_vm1  ;;  %vm4427_vm5 = vweird.f32 %v4390_v41 }
 0xfc4   : > { %v4413_v61 = vmul.f32 %v5198_v27, %v4412_v19 }
 0xfc6   : > { %v4414_v21 = vmul.f32 0.5, %v4413_v61 }
 0xfc8   : > { %v4415_v15 = vsub.f32 1.5, %v4414_v21 }
 0xfc9   : > { %v5200_v51 = vpop.eup %5199 }
 0xfca   : > { %v4422_v54 = vmul.f32 %v5200_v51, %v4390_v41  ;;  %v4416_v60 = vmul.f32 %v5198_v27, %v4415_v15  ;;  %vm4428_vm4 = vweird.f32 %v5200_v51 }
 0xfcb   : > { %vm4429_vm6 = vmor %vm4427_vm5, %vm4428_vm4 }
 0xfcc   : > { %v4423_v6 = vmul.f32 %v5200_v51, %v4422_v54  ;;  %v4420_v3 = vsel %vm4419_vm3, %v5198_v27, %v4416_v60 }
 0xfcd   : > { %v4433_v25 = vmul.f32 %v4420_v3, %v6850_v33 }
 0xfce   : > { %v4424_v62 = vmul.f32 0.5, %v4423_v6 }
 0xfcf   : > { %v4438_v29 = vmul.f32 %v4435_v45, %v4433_v25 }
 0xfd0   : > { %v4425_v47 = vsub.f32 1.5, %v4424_v62 }
 0xfd2   : > { %v4426_v20 = vmul.f32 %v5200_v51, %v4425_v47 }
 0xfd4   : > { %v4430_v22 = vsel %vm4429_vm6, %v5200_v51, %v4426_v20 }
 0xfd5   : > { %v4434_v36 = vmul.f32 %v4430_v22, %v6856_v40 }
 0xfd7   : > { %v4439_v0 = vmul.f32 %v4435_v45, %v4434_v36 }
 0xfd9   : > { %v4441_v34 = vpack.c.bf16 %v4439_v0, %v4438_v29 }
 0xfdb   : > { %4859 = vmatmul.msk.bf16.gmra.mxu1 %vm843_vm0, %v4441_v34 }
0x1014   : > { %v4477_v24 = vpop.f32.mrf.mxu1 }
0x1015   : > { %v4478_v35 = vadd.f32 %v4950_v23, %v4477_v24 }
0x1017   : > { %4487 = vst [vmem:[%s792_s0] sm:$0xff] %v4478_v35 }
0x101c   : > { %v4479_v31 = vpop.f32.mrf.mxu1 }
0x101d   : > { %v4480_v33 = vadd.f32 %v4950_v23, %v4479_v31 }
0x101f   : > { %4488 = vst [vmem:[%s792_s0 + $0x8] sm:$0xff] %v4480_v33 }
0x1058   : > { %v4482_v13 = vpop.f32.mrf.mxu1 }
0x1059   : > { %v4483_v58 = vadd.f32 %v4950_v23, %v4482_v13 }
0x105b   : > { %4489 = vst [vmem:[%s792_s0 + $0x10] sm:$0xff] %v4483_v58 }
0x1060   : > { %v4484_v48 = vpop.f32.mrf.mxu1 }
0x1061   : > { %v4485_v40 = vadd.f32 %v4950_v23, %v4484_v48 }
0x1063   : > { %4490 = vst [vmem:[%s792_s0 + $0x18] sm:$0xff] %v4485_v40 }
0x1064   : > { %5239 = shalt.err (!%p5236_p4)
}
0x1065   : > { %s5280_s12 = smov 128   ;;  %s5281_s0 = smov 8  }
0x1066   : > { %4905 = dma.vmem_to_hbm [thread:$0]  (%p5445_p5), %s4505_s28, 512, %s4507_s2, %s4492_s5, %s5280_s12, %s5280_s12, %s5281_s0  }
0x1067 PF: > { %s7001_s7 = sld [smem:[#allocation7_spill]] }
0x1068   : > { %s7002_s10 = sld [smem:[#allocation5_spill]] }
0x106d   : > { %p4911_p7 = scmp.ge.s32.totalorder %s7001_s7, 2 }
0x106e   : > { %s4521_s1 = sand.u32 1, %s7002_s10  }
0x106f   : > { %p4908_p8 = pnand %p4911_p7, %p5449_p6  ;;  %s4522_s6 = scalar_lea.sflag [#allocation3], %s4521_s1 }
0x1071   : > { %p4909_p9 = pneg %p4908_p8 }
0x1073   : > { %5257 = dma.done.wait (%p4909_p9), %s4522_s6, 512  }
0x1074   : > { %5259 = vsyncadd (%p4909_p9), %s4522_s6, 4294966784  ;;  %s7004_s28 = sld [smem:[#allocation8_spill]]  ;;  %s7007_s5 = smov %s5266_s26 }
0x1075   : > { %s7005_s27 = sld [smem:[#allocation6_spill]] }
0x1076   : > { %s7006_s24 = sld [smem:[#allocation9_spill]] }
0x107a   : > { %p34_p10 = scmp.ge.s32.totalorder %s7004_s28, 4  }
0x107b   : > { %s7008_s26 = smov %s7005_s27 }
0x107c   : > { %s7009_s27 = smov %s7006_s24  ;;  %36 = sbr.rel (!%p34_p10) target bundleno = 18 (0x12), region = 163 }
0x1081   :  { %4528 = vsyncpa [#allocation3], 1 }
0x1082   :  { %4530 = vsyncpa [#allocation3 + $0x1], 1 }

</bundles_post_ra>
